<compile_context>
chip_gen: v5e
topology: v5e:2x2
jax: 0.10.0
libtpu: 0.0.40
codegen_flags: <defaults>
</compile_context>

<pallas_src>
import math
import jax
import jax.numpy as jnp
from jax import lax
from jax.experimental import pallas as pl
from jax.experimental.pallas import tpu as pltpu

_PARAM_ORDER = (
    "cema_k", "cema_omega", "gmat", "gmat_t", "tn_w", "tn_b",
    "wv", "bv", "wu", "bu", "wz", "bz", "wr", "br", "whx", "bhx",
    "qk_gamma", "qk_beta", "cos", "sin",
    "wh", "bh", "ffn_w", "ffn_b",
    "w1", "b1", "w3", "b3", "w2", "b2",
)


def make_mega_block(cfg):
    D = cfg["model_dim"]
    Z = cfg["z_dim"]
    H = cfg["value_dim"]
    NH = cfg["num_heads"]
    C = cfg["chunk_size"]
    G = cfg["norm_num_groups"]
    EPS = cfg["norm_eps"]
    F = cfg["ffn_hidden_dim"]
    HD = Z // NH
    HD2 = HD // 2
    VD = H // NH
    GS = D // G
    ATT_SCALE = 1.0 / math.sqrt(HD)
    assert D % G == 0 and Z % NH == 0 and H % NH == 0 and HD % 2 == 0

    def kernel(x_ref, cema_k_ref, cema_omega_ref, gmat_ref, gmat_t_ref,
               tn_w_ref, tn_b_ref,
               wv_ref, bv_ref, wu_ref, bu_ref, wz_ref, bz_ref,
               wr_ref, br_ref, whx_ref, bhx_ref,
               qk_gamma_ref, qk_beta_ref, cos_ref, sin_ref,
               wh_ref, bh_ref, ffn_w_ref, ffn_b_ref,
               w1_ref, b1_ref, w3_ref, b3_ref, w2_ref, b2_ref,
               o_ref):
        f32 = jnp.float32
        bf16 = jnp.bfloat16
        x = x_ref[0].astype(f32)                      # (L, D)
        L = x.shape[0]
        NC = L // C

        # ---- TimestepNorm: cumulative-in-time group normalization --------
        gmat = gmat_ref[...]                          # (D, G) one-hot group map
        s1 = jnp.dot(x, gmat, preferred_element_type=f32)        # (L, G)
        s2 = jnp.dot(x * x, gmat, preferred_element_type=f32)

        def causal_cumsum(s):
            # log-step inclusive prefix sum along time (axis 0), VPU only.
            out = s
            d = 1
            while d < L:
                pad = jnp.zeros((d, out.shape[1]), f32)
                out = out + jnp.concatenate([pad, out[:L - d]], axis=0)
                d *= 2
            return out

        c1 = causal_cumsum(s1)
        c2 = causal_cumsum(s2)
        cnt = (lax.broadcasted_iota(jnp.int32, (L, 1), 0).astype(f32) + 1.0) * GS
        mean_g = c1 / cnt
        var_g = jnp.maximum(c2 / cnt - mean_g * mean_g, 0.0)
        gmat_t = gmat_t_ref[...]                      # (G, D)
        mean = jnp.dot(mean_g, gmat_t, preferred_element_type=f32)
        rstd = jnp.dot(lax.rsqrt(var_g + EPS), gmat_t, preferred_element_type=f32)
        xn = (x - mean) * rstd * tn_w_ref[...] + tn_b_ref[...]

        # ---- CEMA: causal depthwise conv, per-tap shifted VPU MACs --------
        K = cema_k_ref[...]                           # (L, D) taps, K[j] = lag j
        mx = xn * (cema_omega_ref[...] + K[0:1, :])   # lag-0 tap + residual term
        xpad = jnp.concatenate([jnp.zeros((L, D), f32), xn], axis=0)   # (2L, D)
        for j in range(1, L):
            shifted = xpad[L - j:2 * L - j, :]        # xn delayed by j, zero fill
            mx = mx + K[j:j + 1, :] * shifted

        # ---- gated-attention projections (bf16 -> f32 MXU) ----------------
        xn_b = xn.astype(bf16)
        mx_b = mx.astype(bf16)
        v_full = jax.nn.silu(jnp.dot(xn_b, wv_ref[...],
                                     preferred_element_type=f32) + bv_ref[...])
        u = jax.nn.sigmoid(jnp.dot(mx_b, wu_ref[...],
                                   preferred_element_type=f32) + bu_ref[...])
        z_full = jax.nn.silu(jnp.dot(mx_b, wz_ref[...],
                                     preferred_element_type=f32) + bz_ref[...])
        r_full = jax.nn.silu(jnp.dot(mx_b, wr_ref[...],
                                     preferred_element_type=f32) + br_ref[...])
        hx = jnp.dot(mx_b, whx_ref[...], preferred_element_type=f32) + bhx_ref[...]

        # ---- chunked causal multi-head softmax attention -------------------
        g2 = qk_gamma_ref[...]                        # (2, Z)
        bqk = qk_beta_ref[...]
        cos = cos_ref[...]                            # (L, HD) per-head rotary
        sin = sin_ref[...]
        ri = lax.broadcasted_iota(jnp.int32, (C, C), 0)
        ci = lax.broadcasted_iota(jnp.int32, (C, C), 1)
        cmask = ri >= ci                              # (C, C) chunk-local causal

        head_outs = []
        for h in range(NH):
            zs, ze = h * HD, (h + 1) * HD
            zh = z_full[:, zs:ze]                     # (L, HD)
            qh = zh * g2[0:1, zs:ze] + bqk[0:1, zs:ze]
            kh = zh * g2[1:2, zs:ze] + bqk[1:2, zs:ze]
            qrot = jnp.concatenate([-qh[:, HD2:], qh[:, :HD2]], axis=-1)
            krot = jnp.concatenate([-kh[:, HD2:], kh[:, :HD2]], axis=-1)
            qh = qh * cos + qrot * sin
            kh = kh * cos + krot * sin
            vh = v_full[:, h * VD:(h + 1) * VD]       # (L, VD)
            chunk_outs = []
            for c in range(NC):
                cs, ce = c * C, (c + 1) * C
                qc = qh[cs:ce]
                kc = kh[cs:ce]
                vc = vh[cs:ce]
                sc = lax.dot_general(qc, kc, (((1,), (1,)), ((), ())),
                                     preferred_element_type=f32) * ATT_SCALE
                sc = jnp.where(cmask, sc, jnp.float32(-1e30))
                m = jnp.max(sc, axis=-1, keepdims=True)
                e = jnp.exp(sc - m)
                pm = e / jnp.sum(e, axis=-1, keepdims=True)
                chunk_outs.append(jnp.dot(pm, vc, preferred_element_type=f32))
            head_outs.append(chunk_outs[0] if NC == 1
                             else jnp.concatenate(chunk_outs, axis=0))
        attn = head_outs[0] if NH == 1 else jnp.concatenate(head_outs, axis=-1)

        hmid = jnp.dot((attn * r_full).astype(bf16), wh_ref[...],
                       preferred_element_type=f32) + bh_ref[...]
        hgate = jax.nn.silu(hx + hmid)
        y = x + u * (hgate - x)                       # torch.addcmul gated residual

        # ---- NormalizedFeedForwardNetwork (swiglu), two-hop residual -------
        # TODO(synk): two-hop residual assumed: out = FFN(norm(y)) + x (block input).
        mu = jnp.mean(y, axis=-1, keepdims=True)
        yc = y - mu
        var = jnp.mean(yc * yc, axis=-1, keepdims=True)
        yn = yc * lax.rsqrt(var + EPS) * ffn_w_ref[...] + ffn_b_ref[...]
        yn_b = yn.astype(bf16)
        h1 = jax.nn.silu(jnp.dot(yn_b, w1_ref[...],
                                 preferred_element_type=f32) + b1_ref[...])
        h3 = jnp.dot(yn_b, w3_ref[...], preferred_element_type=f32) + b3_ref[...]
        ffn = jnp.dot((h1 * h3).astype(bf16), w2_ref[...],
                      preferred_element_type=f32) + b2_ref[...]
        o_ref[0] = (ffn + x).astype(o_ref.dtype)

    def forward(x, params):
        B, L, _ = x.shape
        assert L % C == 0, "sequence length must be a multiple of chunk_size"
        weights = [params[n] for n in _PARAM_ORDER]
        assert all(w.ndim == 2 for w in weights)

        in_specs = [pl.BlockSpec((1, L, D), lambda b: (b, 0, 0))]
        in_specs += [pl.BlockSpec(tuple(w.shape), lambda b: (0, 0)) for w in weights]
        out_specs = pl.BlockSpec((1, L, D), lambda b: (b, 0, 0))

        flops = 2 * B * L * (D * (2 * D + Z + 2 * H)   # wv/wu/wz/wr/whx
                             + H * D                   # wh
                             + 3 * D * F               # w1, w3, w2
                             + L * D                   # CEMA taps (VPU MACs)
                             + C * (Z + H))            # chunked attention
        transcend = B * L * (2 * D + Z + 2 * H + 2 * F + NH * C)
        bytes_accessed = (2 * int(x.size) * 4
                          + sum(int(w.size) * w.dtype.itemsize for w in weights))

        call = pl.pallas_call(
            kernel,
            out_shape=jax.ShapeDtypeStruct((B, L, D), jnp.float32),
            grid_spec=pltpu.PrefetchScalarGridSpec(
                num_scalar_prefetch=0,
                grid=(B,),
                in_specs=in_specs,
                out_specs=out_specs,
            ),
            compiler_params=pltpu.CompilerParams(
                dimension_semantics=("parallel",),
                vmem_limit_bytes=64 * 1024 * 1024),
            cost_estimate=pl.CostEstimate(
                flops=int(flops),
                transcendentals=int(transcend),
                bytes_accessed=int(bytes_accessed)),
        )
        return call(x, *weights)

    return forward


def init_params(key, cfg, L):
    D = cfg["model_dim"]
    Z = cfg["z_dim"]
    H = cfg["value_dim"]
    NH = cfg["num_heads"]
    N = cfg["cema_ndim"]
    G = cfg["norm_num_groups"]
    F = cfg["ffn_hidden_dim"]
    HD = Z // NH
    HD2 = HD // 2
    bf16 = jnp.bfloat16
    ks = iter(jax.random.split(key, 32))

    def nrm(shape, s):
        return jax.random.normal(next(ks), shape, jnp.float32) * s

    p = {}
    # CEMA parameters -> length-L causal depthwise conv taps + residual omega.
    a = jax.nn.sigmoid(nrm((D, N), 1.0))
    d = jax.nn.sigmoid(nrm((D, N), 1.0))
    theta = nrm((D, N), 0.2)
    gre = nrm((D, N), 1.0 / math.sqrt(N))
    gim = nrm((D, N), 1.0 / math.sqrt(N))
    qmag = 1.0 - a * d
    lags = jnp.arange(L, dtype=jnp.float32)[:, None, None]
    decay = qmag[None] ** lags
    ang = theta[None] * lags
    kern = a[None] * decay * (gre[None] * jnp.cos(ang) - gim[None] * jnp.sin(ang))
    p["cema_k"] = kern.sum(-1)                                   # (L, D)
    p["cema_omega"] = nrm((1, D), 0.1)
    # TimestepNorm group one-hot matrices + affine
    gs = D // G
    gmat = jax.nn.one_hot(jnp.arange(D) // gs, G, dtype=jnp.float32)
    p["gmat"] = gmat
    p["gmat_t"] = gmat.T
    p["tn_w"] = jnp.ones((1, D), jnp.float32)
    p["tn_b"] = jnp.zeros((1, D), jnp.float32)
    # Projections, stored (in, out); weights in bf16 for MXU throughput.
    p["wv"] = nrm((D, H), 1.0 / math.sqrt(D)).astype(bf16)
    p["bv"] = jnp.zeros((1, H), jnp.float32)
    p["wu"] = nrm((D, D), 1.0 / math.sqrt(D)).astype(bf16)
    p["bu"] = jnp.zeros((1, D), jnp.float32)
    p["wz"] = nrm((D, Z), 1.0 / math.sqrt(D)).astype(bf16)
    p["bz"] = jnp.zeros((1, Z), jnp.float32)
    p["wr"] = nrm((D, H), 1.0 / math.sqrt(D)).astype(bf16)
    p["br"] = jnp.zeros((1, H), jnp.float32)
    p["whx"] = nrm((D, D), 1.0 / math.sqrt(D)).astype(bf16)
    p["bhx"] = jnp.zeros((1, D), jnp.float32)
    p["qk_gamma"] = nrm((2, Z), 0.1) + 1.0
    p["qk_beta"] = nrm((2, Z), 0.1)
    # Rotary tables (freqs_cis): per-head (L, HD) cos/sin.
    inv_freq = 1.0 / (10000.0 ** (jnp.arange(HD2, dtype=jnp.float32) / HD2))
    ang_r = jnp.arange(L, dtype=jnp.float32)[:, None] * inv_freq[None, :]
    p["cos"] = jnp.concatenate([jnp.cos(ang_r)] * 2, -1)         # (L, HD)
    p["sin"] = jnp.concatenate([jnp.sin(ang_r)] * 2, -1)
    p["wh"] = nrm((H, D), 1.0 / math.sqrt(H)).astype(bf16)
    p["bh"] = jnp.zeros((1, D), jnp.float32)
    p["ffn_w"] = jnp.ones((1, D), jnp.float32)
    p["ffn_b"] = jnp.zeros((1, D), jnp.float32)
    p["w1"] = nrm((D, F), 1.0 / math.sqrt(D)).astype(bf16)
    p["b1"] = jnp.zeros((1, F), jnp.float32)
    p["w3"] = nrm((D, F), 1.0 / math.sqrt(D)).astype(bf16)
    p["b3"] = jnp.zeros((1, F), jnp.float32)
    p["w2"] = nrm((F, D), 1.0 / math.sqrt(F)).astype(bf16)
    p["b2"] = jnp.zeros((1, D), jnp.float32)
    return p


def ref_forward(x, p, cfg):
    """Plain-JAX reference of the same math (lowering cross-check)."""
    D = cfg["model_dim"]; Z = cfg["z_dim"]; H = cfg["value_dim"]
    NH = cfg["num_heads"]; C = cfg["chunk_size"]; G = cfg["norm_num_groups"]
    EPS = cfg["norm_eps"]
    B, L, _ = x.shape
    HD = Z // NH; HD2 = HD // 2; VD = H // NH
    NC = L // C
    gs = D // G
    bf16 = jnp.bfloat16

    def mm(a, w):
        return jnp.dot(a.astype(bf16), w.astype(bf16),
                       preferred_element_type=jnp.float32)

    with jax.default_matmul_precision("float32"):
        # TimestepNorm
        s1 = x.reshape(B, L, G, gs).sum(-1)
        s2 = (x * x).reshape(B, L, G, gs).sum(-1)
        c1 = jnp.cumsum(s1, axis=1)
        c2 = jnp.cumsum(s2, axis=1)
        cnt = (jnp.arange(L, dtype=jnp.float32) + 1.0)[None, :, None] * gs
        mean_g = c1 / cnt
        var_g = jnp.maximum(c2 / cnt - mean_g * mean_g, 0.0)
        mean = jnp.repeat(mean_g, gs, axis=-1)
        rstd = jnp.repeat(lax.rsqrt(var_g + EPS), gs, axis=-1)
        xn = (x - mean) * rstd * p["tn_w"] + p["tn_b"]
        # CEMA
        K = p["cema_k"]
        mx = xn * (p["cema_omega"] + K[0:1, :])[None]
        for j in range(1, L):
            shifted = jnp.concatenate(
                [jnp.zeros((B, j, D), jnp.float32), xn[:, :L - j]], axis=1)
            mx = mx + K[j][None, None, :] * shifted
        # Gated-attention projections
        v = jax.nn.silu(mm(xn, p["wv"]) + p["bv"])
        u = jax.nn.sigmoid(mm(mx, p["wu"]) + p["bu"])
        z = jax.nn.silu(mm(mx, p["wz"]) + p["bz"])
        r = jax.nn.silu(mm(mx, p["wr"]) + p["br"])
        hx = mm(mx, p["whx"]) + p["bhx"]
        q = z * p["qk_gamma"][0] + p["qk_beta"][0]
        k = z * p["qk_gamma"][1] + p["qk_beta"][1]
        qh = q.reshape(B, L, NH, HD)
        kh = k.reshape(B, L, NH, HD)
        cos = p["cos"][None, :, None, :]
        sin = p["sin"][None, :, None, :]

        def rot(t):
            return jnp.concatenate([-t[..., HD2:], t[..., :HD2]], axis=-1)

        qh = qh * cos + rot(qh) * sin
        kh = kh * cos + rot(kh) * sin
        vh = v.reshape(B, L, NH, VD)
        qc = qh.reshape(B, NC, C, NH, HD)
        kc = kh.reshape(B, NC, C, NH, HD)
        vc = vh.reshape(B, NC, C, NH, VD)
        sc = jnp.einsum("bnqhd,bnkhd->bnhqk", qc, kc) / math.sqrt(HD)
        cmask = jnp.tril(jnp.ones((C, C), bool))
        sc = jnp.where(cmask, sc, -1e30)
        pm = jax.nn.softmax(sc, axis=-1)
        attn = jnp.einsum("bnhqk,bnkhd->bnqhd", pm, vc).reshape(B, L, H)
        hgate = jax.nn.silu(hx + mm(attn * r, p["wh"]) + p["bh"])
        y = x + u * (hgate - x)
        # NFFN (swiglu), two-hop residual to block input
        mu = y.mean(-1, keepdims=True)
        yc = y - mu
        var = (yc * yc).mean(-1, keepdims=True)
        yn = yc * lax.rsqrt(var + EPS) * p["ffn_w"] + p["ffn_b"]
        h1 = jax.nn.silu(mm(yn, p["w1"]) + p["b1"])
        h3 = mm(yn, p["w3"]) + p["b3"]
        ffn = mm(h1 * h3, p["w2"]) + p["b2"]
        return ffn + x


if __name__ == "__main__":
    cfg = dict(
        model_dim=64, z_dim=32, value_dim=64, num_heads=4, cema_ndim=4,
        chunk_size=8, norm_num_groups=4, norm_eps=1e-5,
        ffn_hidden_dim=128, swiglu=True,
    )
    B, L = 2, 16
    key = jax.random.PRNGKey(0)
    params = init_params(key, cfg, L)
    x = jax.random.normal(jax.random.fold_in(key, 123),
                          (B, L, cfg["model_dim"]), jnp.float32)
    forward = make_mega_block(cfg)
    out = jax.block_until_ready(forward(x, params))
    ref = ref_forward(x, params, cfg)
    assert out.shape == (B, L, cfg["model_dim"])
    assert bool(jnp.all(jnp.isfinite(out)))
    if not jnp.allclose(out, ref, atol=2e-2, rtol=2e-2):
        err = float(jnp.max(jnp.abs(out - ref)))
        raise SystemExit(
            f"FAIL: pallas output mismatch vs JAX reference (max abs err {err:.3e})")
    print("KERNEL_OK")
</pallas_src>

<mosaic_0001>
module attributes {stable_mosaic.version = 11 : i64} {
  func.func @kernel(%arg0: i32, %arg1: memref<1x16x64xf32, #tpu.memory_space<vmem>>, %arg2: memref<16x64xf32, #tpu.memory_space<vmem>>, %arg3: memref<1x64xf32, #tpu.memory_space<vmem>>, %arg4: memref<64x4xf32, #tpu.memory_space<vmem>>, %arg5: memref<4x64xf32, #tpu.memory_space<vmem>>, %arg6: memref<1x64xf32, #tpu.memory_space<vmem>>, %arg7: memref<1x64xf32, #tpu.memory_space<vmem>>, %arg8: memref<64x64xbf16, #tpu.memory_space<vmem>>, %arg9: memref<1x64xf32, #tpu.memory_space<vmem>>, %arg10: memref<64x64xbf16, #tpu.memory_space<vmem>>, %arg11: memref<1x64xf32, #tpu.memory_space<vmem>>, %arg12: memref<64x32xbf16, #tpu.memory_space<vmem>>, %arg13: memref<1x32xf32, #tpu.memory_space<vmem>>, %arg14: memref<64x64xbf16, #tpu.memory_space<vmem>>, %arg15: memref<1x64xf32, #tpu.memory_space<vmem>>, %arg16: memref<64x64xbf16, #tpu.memory_space<vmem>>, %arg17: memref<1x64xf32, #tpu.memory_space<vmem>>, %arg18: memref<2x32xf32, #tpu.memory_space<vmem>>, %arg19: memref<2x32xf32, #tpu.memory_space<vmem>>, %arg20: memref<16x8xf32, #tpu.memory_space<vmem>>, %arg21: memref<16x8xf32, #tpu.memory_space<vmem>>, %arg22: memref<64x64xbf16, #tpu.memory_space<vmem>>, %arg23: memref<1x64xf32, #tpu.memory_space<vmem>>, %arg24: memref<1x64xf32, #tpu.memory_space<vmem>>, %arg25: memref<1x64xf32, #tpu.memory_space<vmem>>, %arg26: memref<64x128xbf16, #tpu.memory_space<vmem>>, %arg27: memref<1x128xf32, #tpu.memory_space<vmem>>, %arg28: memref<64x128xbf16, #tpu.memory_space<vmem>>, %arg29: memref<1x128xf32, #tpu.memory_space<vmem>>, %arg30: memref<128x64xbf16, #tpu.memory_space<vmem>>, %arg31: memref<1x64xf32, #tpu.memory_space<vmem>>, %arg32: memref<1x16x64xf32, #tpu.memory_space<vmem>>) attributes {dimension_semantics = [#tpu.dimension_semantics<parallel>], iteration_bounds = array<i64: 2>, scalar_prefetch = 0 : i64, scratch_operands = 0 : i64, tpu.core_type = #tpu.core_type<tc>, window_params = [{transform_indices = @transform_0, window_bounds = array<i64: 1, 16, 64>}, {pipeline_mode = #tpu.pipeline_mode<synchronous>, transform_indices = @transform_1, window_bounds = array<i64: 16, 64>}, {pipeline_mode = #tpu.pipeline_mode<synchronous>, transform_indices = @transform_2, window_bounds = array<i64: 1, 64>}, {pipeline_mode = #tpu.pipeline_mode<synchronous>, transform_indices = @transform_3, window_bounds = array<i64: 64, 4>}, {pipeline_mode = #tpu.pipeline_mode<synchronous>, transform_indices = @transform_4, window_bounds = array<i64: 4, 64>}, {pipeline_mode = #tpu.pipeline_mode<synchronous>, transform_indices = @transform_5, window_bounds = array<i64: 1, 64>}, {pipeline_mode = #tpu.pipeline_mode<synchronous>, transform_indices = @transform_6, window_bounds = array<i64: 1, 64>}, {pipeline_mode = #tpu.pipeline_mode<synchronous>, transform_indices = @transform_7, window_bounds = array<i64: 64, 64>}, {pipeline_mode = #tpu.pipeline_mode<synchronous>, transform_indices = @transform_8, window_bounds = array<i64: 1, 64>}, {pipeline_mode = #tpu.pipeline_mode<synchronous>, transform_indices = @transform_9, window_bounds = array<i64: 64, 64>}, {pipeline_mode = #tpu.pipeline_mode<synchronous>, transform_indices = @transform_10, window_bounds = array<i64: 1, 64>}, {pipeline_mode = #tpu.pipeline_mode<synchronous>, transform_indices = @transform_11, window_bounds = array<i64: 64, 32>}, {pipeline_mode = #tpu.pipeline_mode<synchronous>, transform_indices = @transform_12, window_bounds = array<i64: 1, 32>}, {pipeline_mode = #tpu.pipeline_mode<synchronous>, transform_indices = @transform_13, window_bounds = array<i64: 64, 64>}, {pipeline_mode = #tpu.pipeline_mode<synchronous>, transform_indices = @transform_14, window_bounds = array<i64: 1, 64>}, {pipeline_mode = #tpu.pipeline_mode<synchronous>, transform_indices = @transform_15, window_bounds = array<i64: 64, 64>}, {pipeline_mode = #tpu.pipeline_mode<synchronous>, transform_indices = @transform_16, window_bounds = array<i64: 1, 64>}, {pipeline_mode = #tpu.pipeline_mode<synchronous>, transform_indices = @transform_17, window_bounds = array<i64: 2, 32>}, {pipeline_mode = #tpu.pipeline_mode<synchronous>, transform_indices = @transform_18, window_bounds = array<i64: 2, 32>}, {pipeline_mode = #tpu.pipeline_mode<synchronous>, transform_indices = @transform_19, window_bounds = array<i64: 16, 8>}, {pipeline_mode = #tpu.pipeline_mode<synchronous>, transform_indices = @transform_20, window_bounds = array<i64: 16, 8>}, {pipeline_mode = #tpu.pipeline_mode<synchronous>, transform_indices = @transform_21, window_bounds = array<i64: 64, 64>}, {pipeline_mode = #tpu.pipeline_mode<synchronous>, transform_indices = @transform_22, window_bounds = array<i64: 1, 64>}, {pipeline_mode = #tpu.pipeline_mode<synchronous>, transform_indices = @transform_23, window_bounds = array<i64: 1, 64>}, {pipeline_mode = #tpu.pipeline_mode<synchronous>, transform_indices = @transform_24, window_bounds = array<i64: 1, 64>}, {pipeline_mode = #tpu.pipeline_mode<synchronous>, transform_indices = @transform_25, window_bounds = array<i64: 64, 128>}, {pipeline_mode = #tpu.pipeline_mode<synchronous>, transform_indices = @transform_26, window_bounds = array<i64: 1, 128>}, {pipeline_mode = #tpu.pipeline_mode<synchronous>, transform_indices = @transform_27, window_bounds = array<i64: 64, 128>}, {pipeline_mode = #tpu.pipeline_mode<synchronous>, transform_indices = @transform_28, window_bounds = array<i64: 1, 128>}, {pipeline_mode = #tpu.pipeline_mode<synchronous>, transform_indices = @transform_29, window_bounds = array<i64: 128, 64>}, {pipeline_mode = #tpu.pipeline_mode<synchronous>, transform_indices = @transform_30, window_bounds = array<i64: 1, 64>}, {transform_indices = @transform_31, window_bounds = array<i64: 1, 16, 64>}]} {
    %c0 = arith.constant 0 : index
    %c0_0 = arith.constant 0 : index
    %c0_1 = arith.constant 0 : index
    %0 = vector.load %arg1[%c0, %c0_0, %c0_1] : memref<1x16x64xf32, #tpu.memory_space<vmem>>, vector<1x16x64xf32>
    %1 = vector.shape_cast %0 : vector<1x16x64xf32> to vector<16x64xf32>
    %c0_2 = arith.constant 0 : index
    %c0_3 = arith.constant 0 : index
    %2 = vector.load %arg4[%c0_2, %c0_3] : memref<64x4xf32, #tpu.memory_space<vmem>>, vector<64x4xf32>
    %cst = arith.constant dense<0.000000e+00> : vector<16x4xf32>
    %3 = tpu.matmul %1, %2, %cst {dimension_numbers = #tpu.dot_dimension_numbers<[1], [0], [0], [1], [0, 0, 1, 1], [], []>} : vector<16x64xf32>, vector<64x4xf32>, vector<16x4xf32> -> vector<16x4xf32>
    %4 = arith.mulf %1, %1 : vector<16x64xf32>
    %cst_4 = arith.constant dense<0.000000e+00> : vector<16x4xf32>
    %5 = tpu.matmul %4, %2, %cst_4 {dimension_numbers = #tpu.dot_dimension_numbers<[1], [0], [0], [1], [0, 0, 1, 1], [], []>} : vector<16x64xf32>, vector<64x4xf32>, vector<16x4xf32> -> vector<16x4xf32>
    %cst_5 = arith.constant 0.000000e+00 : f32
    %6 = vector.broadcast %cst_5 : f32 to vector<1x4xf32>
    %7 = vector.extract_strided_slice %3 {offsets = [0, 0], sizes = [15, 4], strides = [1, 1]} : vector<16x4xf32> to vector<15x4xf32>
    %8 = tpu.concatenate %6, %7 in 0 : vector<1x4xf32>, vector<15x4xf32> -> vector<16x4xf32>
    %9 = arith.addf %3, %8 : vector<16x4xf32>
    %cst_6 = arith.constant 0.000000e+00 : f32
    %10 = vector.broadcast %cst_6 : f32 to vector<2x4xf32>
    %11 = vector.extract_strided_slice %9 {offsets = [0, 0], sizes = [14, 4], strides = [1, 1]} : vector<16x4xf32> to vector<14x4xf32>
    %12 = tpu.concatenate %10, %11 in 0 : vector<2x4xf32>, vector<14x4xf32> -> vector<16x4xf32>
    %13 = arith.addf %9, %12 : vector<16x4xf32>
    %cst_7 = arith.constant 0.000000e+00 : f32
    %14 = vector.broadcast %cst_7 : f32 to vector<4x4xf32>
    %15 = vector.extract_strided_slice %13 {offsets = [0, 0], sizes = [12, 4], strides = [1, 1]} : vector<16x4xf32> to vector<12x4xf32>
    %16 = tpu.concatenate %14, %15 in 0 : vector<4x4xf32>, vector<12x4xf32> -> vector<16x4xf32>
    %17 = arith.addf %13, %16 : vector<16x4xf32>
    %cst_8 = arith.constant 0.000000e+00 : f32
    %18 = vector.broadcast %cst_8 : f32 to vector<8x4xf32>
    %19 = vector.extract_strided_slice %17 {offsets = [0, 0], sizes = [8, 4], strides = [1, 1]} : vector<16x4xf32> to vector<8x4xf32>
    %20 = tpu.concatenate %18, %19 in 0 : vector<8x4xf32>, vector<8x4xf32> -> vector<16x4xf32>
    %21 = arith.addf %17, %20 : vector<16x4xf32>
    %cst_9 = arith.constant 0.000000e+00 : f32
    %22 = vector.broadcast %cst_9 : f32 to vector<1x4xf32>
    %23 = vector.extract_strided_slice %5 {offsets = [0, 0], sizes = [15, 4], strides = [1, 1]} : vector<16x4xf32> to vector<15x4xf32>
    %24 = tpu.concatenate %22, %23 in 0 : vector<1x4xf32>, vector<15x4xf32> -> vector<16x4xf32>
    %25 = arith.addf %5, %24 : vector<16x4xf32>
    %cst_10 = arith.constant 0.000000e+00 : f32
    %26 = vector.broadcast %cst_10 : f32 to vector<2x4xf32>
    %27 = vector.extract_strided_slice %25 {offsets = [0, 0], sizes = [14, 4], strides = [1, 1]} : vector<16x4xf32> to vector<14x4xf32>
    %28 = tpu.concatenate %26, %27 in 0 : vector<2x4xf32>, vector<14x4xf32> -> vector<16x4xf32>
    %29 = arith.addf %25, %28 : vector<16x4xf32>
    %cst_11 = arith.constant 0.000000e+00 : f32
    %30 = vector.broadcast %cst_11 : f32 to vector<4x4xf32>
    %31 = vector.extract_strided_slice %29 {offsets = [0, 0], sizes = [12, 4], strides = [1, 1]} : vector<16x4xf32> to vector<12x4xf32>
    %32 = tpu.concatenate %30, %31 in 0 : vector<4x4xf32>, vector<12x4xf32> -> vector<16x4xf32>
    %33 = arith.addf %29, %32 : vector<16x4xf32>
    %cst_12 = arith.constant 0.000000e+00 : f32
    %34 = vector.broadcast %cst_12 : f32 to vector<8x4xf32>
    %35 = vector.extract_strided_slice %33 {offsets = [0, 0], sizes = [8, 4], strides = [1, 1]} : vector<16x4xf32> to vector<8x4xf32>
    %36 = tpu.concatenate %34, %35 in 0 : vector<8x4xf32>, vector<8x4xf32> -> vector<16x4xf32>
    %37 = arith.addf %33, %36 : vector<16x4xf32>
    %38 = tpu.iota {dimensions = array<i32: 0>} : vector<16x1xi32>
    %39 = arith.sitofp %38 : vector<16x1xi32> to vector<16x1xf32>
    %cst_13 = arith.constant 1.000000e+00 : f32
    %40 = vector.broadcast %cst_13 : f32 to vector<16x1xf32>
    %41 = arith.addf %39, %40 : vector<16x1xf32>
    %cst_14 = arith.constant 1.600000e+01 : f32
    %42 = vector.broadcast %cst_14 : f32 to vector<16x1xf32>
    %43 = arith.mulf %41, %42 : vector<16x1xf32>
    %44 = vector.broadcast %43 : vector<16x1xf32> to vector<16x4xf32>
    %45 = arith.divf %21, %44 : vector<16x4xf32>
    %46 = vector.broadcast %43 : vector<16x1xf32> to vector<16x4xf32>
    %47 = arith.divf %37, %46 : vector<16x4xf32>
    %48 = arith.mulf %45, %45 : vector<16x4xf32>
    %49 = arith.subf %47, %48 : vector<16x4xf32>
    %cst_15 = arith.constant 0.000000e+00 : f32
    %50 = vector.broadcast %cst_15 : f32 to vector<16x4xf32>
    %51 = arith.maximumf %49, %50 : vector<16x4xf32>
    %c0_16 = arith.constant 0 : index
    %c0_17 = arith.constant 0 : index
    %52 = vector.load %arg5[%c0_16, %c0_17] : memref<4x64xf32, #tpu.memory_space<vmem>>, vector<4x64xf32>
    %cst_18 = arith.constant dense<0.000000e+00> : vector<16x64xf32>
    %53 = tpu.matmul %45, %52, %cst_18 {dimension_numbers = #tpu.dot_dimension_numbers<[1], [0], [0], [1], [0, 0, 1, 1], [], []>} : vector<16x4xf32>, vector<4x64xf32>, vector<16x64xf32> -> vector<16x64xf32>
    %cst_19 = arith.constant 9.99999974E-6 : f32
    %54 = vector.broadcast %cst_19 : f32 to vector<16x4xf32>
    %55 = arith.addf %51, %54 : vector<16x4xf32>
    %56 = math.rsqrt %55 : vector<16x4xf32>
    %cst_20 = arith.constant dense<0.000000e+00> : vector<16x64xf32>
    %57 = tpu.matmul %56, %52, %cst_20 {dimension_numbers = #tpu.dot_dimension_numbers<[1], [0], [0], [1], [0, 0, 1, 1], [], []>} : vector<16x4xf32>, vector<4x64xf32>, vector<16x64xf32> -> vector<16x64xf32>
    %58 = arith.subf %1, %53 : vector<16x64xf32>
    %59 = arith.mulf %58, %57 : vector<16x64xf32>
    %c0_21 = arith.constant 0 : index
    %c0_22 = arith.constant 0 : index
    %60 = vector.load %arg6[%c0_21, %c0_22] : memref<1x64xf32, #tpu.memory_space<vmem>>, vector<1x64xf32>
    %61 = vector.broadcast %60 : vector<1x64xf32> to vector<16x64xf32>
    %62 = arith.mulf %59, %61 : vector<16x64xf32>
    %c0_23 = arith.constant 0 : index
    %c0_24 = arith.constant 0 : index
    %63 = vector.load %arg7[%c0_23, %c0_24] : memref<1x64xf32, #tpu.memory_space<vmem>>, vector<1x64xf32>
    %64 = vector.broadcast %63 : vector<1x64xf32> to vector<16x64xf32>
    %65 = arith.addf %62, %64 : vector<16x64xf32>
    %c0_25 = arith.constant 0 : index
    %c0_26 = arith.constant 0 : index
    %66 = vector.load %arg2[%c0_25, %c0_26] : memref<16x64xf32, #tpu.memory_space<vmem>>, vector<16x64xf32>
    %c0_27 = arith.constant 0 : index
    %c0_28 = arith.constant 0 : index
    %67 = vector.load %arg3[%c0_27, %c0_28] : memref<1x64xf32, #tpu.memory_space<vmem>>, vector<1x64xf32>
    %68 = vector.extract_strided_slice %66 {offsets = [0, 0], sizes = [1, 64], strides = [1, 1]} : vector<16x64xf32> to vector<1x64xf32>
    %69 = arith.addf %67, %68 : vector<1x64xf32>
    %70 = vector.broadcast %69 : vector<1x64xf32> to vector<16x64xf32>
    %71 = arith.mulf %65, %70 : vector<16x64xf32>
    %cst_29 = arith.constant 0.000000e+00 : f32
    %72 = vector.broadcast %cst_29 : f32 to vector<16x64xf32>
    %73 = tpu.concatenate %72, %65 in 0 : vector<16x64xf32>, vector<16x64xf32> -> vector<32x64xf32>
    %74 = vector.extract_strided_slice %73 {offsets = [15, 0], sizes = [16, 64], strides = [1, 1]} : vector<32x64xf32> to vector<16x64xf32>
    %75 = vector.extract_strided_slice %66 {offsets = [1, 0], sizes = [1, 64], strides = [1, 1]} : vector<16x64xf32> to vector<1x64xf32>
    %76 = vector.broadcast %75 : vector<1x64xf32> to vector<16x64xf32>
    %77 = arith.mulf %76, %74 : vector<16x64xf32>
    %78 = arith.addf %71, %77 : vector<16x64xf32>
    %79 = vector.extract_strided_slice %73 {offsets = [14, 0], sizes = [16, 64], strides = [1, 1]} : vector<32x64xf32> to vector<16x64xf32>
    %80 = vector.extract_strided_slice %66 {offsets = [2, 0], sizes = [1, 64], strides = [1, 1]} : vector<16x64xf32> to vector<1x64xf32>
    %81 = vector.broadcast %80 : vector<1x64xf32> to vector<16x64xf32>
    %82 = arith.mulf %81, %79 : vector<16x64xf32>
    %83 = arith.addf %78, %82 : vector<16x64xf32>
    %84 = vector.extract_strided_slice %73 {offsets = [13, 0], sizes = [16, 64], strides = [1, 1]} : vector<32x64xf32> to vector<16x64xf32>
    %85 = vector.extract_strided_slice %66 {offsets = [3, 0], sizes = [1, 64], strides = [1, 1]} : vector<16x64xf32> to vector<1x64xf32>
    %86 = vector.broadcast %85 : vector<1x64xf32> to vector<16x64xf32>
    %87 = arith.mulf %86, %84 : vector<16x64xf32>
    %88 = arith.addf %83, %87 : vector<16x64xf32>
    %89 = vector.extract_strided_slice %73 {offsets = [12, 0], sizes = [16, 64], strides = [1, 1]} : vector<32x64xf32> to vector<16x64xf32>
    %90 = vector.extract_strided_slice %66 {offsets = [4, 0], sizes = [1, 64], strides = [1, 1]} : vector<16x64xf32> to vector<1x64xf32>
    %91 = vector.broadcast %90 : vector<1x64xf32> to vector<16x64xf32>
    %92 = arith.mulf %91, %89 : vector<16x64xf32>
    %93 = arith.addf %88, %92 : vector<16x64xf32>
    %94 = vector.extract_strided_slice %73 {offsets = [11, 0], sizes = [16, 64], strides = [1, 1]} : vector<32x64xf32> to vector<16x64xf32>
    %95 = vector.extract_strided_slice %66 {offsets = [5, 0], sizes = [1, 64], strides = [1, 1]} : vector<16x64xf32> to vector<1x64xf32>
    %96 = vector.broadcast %95 : vector<1x64xf32> to vector<16x64xf32>
    %97 = arith.mulf %96, %94 : vector<16x64xf32>
    %98 = arith.addf %93, %97 : vector<16x64xf32>
    %99 = vector.extract_strided_slice %73 {offsets = [10, 0], sizes = [16, 64], strides = [1, 1]} : vector<32x64xf32> to vector<16x64xf32>
    %100 = vector.extract_strided_slice %66 {offsets = [6, 0], sizes = [1, 64], strides = [1, 1]} : vector<16x64xf32> to vector<1x64xf32>
    %101 = vector.broadcast %100 : vector<1x64xf32> to vector<16x64xf32>
    %102 = arith.mulf %101, %99 : vector<16x64xf32>
    %103 = arith.addf %98, %102 : vector<16x64xf32>
    %104 = vector.extract_strided_slice %73 {offsets = [9, 0], sizes = [16, 64], strides = [1, 1]} : vector<32x64xf32> to vector<16x64xf32>
    %105 = vector.extract_strided_slice %66 {offsets = [7, 0], sizes = [1, 64], strides = [1, 1]} : vector<16x64xf32> to vector<1x64xf32>
    %106 = vector.broadcast %105 : vector<1x64xf32> to vector<16x64xf32>
    %107 = arith.mulf %106, %104 : vector<16x64xf32>
    %108 = arith.addf %103, %107 : vector<16x64xf32>
    %109 = vector.extract_strided_slice %73 {offsets = [8, 0], sizes = [16, 64], strides = [1, 1]} : vector<32x64xf32> to vector<16x64xf32>
    %110 = vector.extract_strided_slice %66 {offsets = [8, 0], sizes = [1, 64], strides = [1, 1]} : vector<16x64xf32> to vector<1x64xf32>
    %111 = vector.broadcast %110 : vector<1x64xf32> to vector<16x64xf32>
    %112 = arith.mulf %111, %109 : vector<16x64xf32>
    %113 = arith.addf %108, %112 : vector<16x64xf32>
    %114 = vector.extract_strided_slice %73 {offsets = [7, 0], sizes = [16, 64], strides = [1, 1]} : vector<32x64xf32> to vector<16x64xf32>
    %115 = vector.extract_strided_slice %66 {offsets = [9, 0], sizes = [1, 64], strides = [1, 1]} : vector<16x64xf32> to vector<1x64xf32>
    %116 = vector.broadcast %115 : vector<1x64xf32> to vector<16x64xf32>
    %117 = arith.mulf %116, %114 : vector<16x64xf32>
    %118 = arith.addf %113, %117 : vector<16x64xf32>
    %119 = vector.extract_strided_slice %73 {offsets = [6, 0], sizes = [16, 64], strides = [1, 1]} : vector<32x64xf32> to vector<16x64xf32>
    %120 = vector.extract_strided_slice %66 {offsets = [10, 0], sizes = [1, 64], strides = [1, 1]} : vector<16x64xf32> to vector<1x64xf32>
    %121 = vector.broadcast %120 : vector<1x64xf32> to vector<16x64xf32>
    %122 = arith.mulf %121, %119 : vector<16x64xf32>
    %123 = arith.addf %118, %122 : vector<16x64xf32>
    %124 = vector.extract_strided_slice %73 {offsets = [5, 0], sizes = [16, 64], strides = [1, 1]} : vector<32x64xf32> to vector<16x64xf32>
    %125 = vector.extract_strided_slice %66 {offsets = [11, 0], sizes = [1, 64], strides = [1, 1]} : vector<16x64xf32> to vector<1x64xf32>
    %126 = vector.broadcast %125 : vector<1x64xf32> to vector<16x64xf32>
    %127 = arith.mulf %126, %124 : vector<16x64xf32>
    %128 = arith.addf %123, %127 : vector<16x64xf32>
    %129 = vector.extract_strided_slice %73 {offsets = [4, 0], sizes = [16, 64], strides = [1, 1]} : vector<32x64xf32> to vector<16x64xf32>
    %130 = vector.extract_strided_slice %66 {offsets = [12, 0], sizes = [1, 64], strides = [1, 1]} : vector<16x64xf32> to vector<1x64xf32>
    %131 = vector.broadcast %130 : vector<1x64xf32> to vector<16x64xf32>
    %132 = arith.mulf %131, %129 : vector<16x64xf32>
    %133 = arith.addf %128, %132 : vector<16x64xf32>
    %134 = vector.extract_strided_slice %73 {offsets = [3, 0], sizes = [16, 64], strides = [1, 1]} : vector<32x64xf32> to vector<16x64xf32>
    %135 = vector.extract_strided_slice %66 {offsets = [13, 0], sizes = [1, 64], strides = [1, 1]} : vector<16x64xf32> to vector<1x64xf32>
    %136 = vector.broadcast %135 : vector<1x64xf32> to vector<16x64xf32>
    %137 = arith.mulf %136, %134 : vector<16x64xf32>
    %138 = arith.addf %133, %137 : vector<16x64xf32>
    %139 = vector.extract_strided_slice %73 {offsets = [2, 0], sizes = [16, 64], strides = [1, 1]} : vector<32x64xf32> to vector<16x64xf32>
    %140 = vector.extract_strided_slice %66 {offsets = [14, 0], sizes = [1, 64], strides = [1, 1]} : vector<16x64xf32> to vector<1x64xf32>
    %141 = vector.broadcast %140 : vector<1x64xf32> to vector<16x64xf32>
    %142 = arith.mulf %141, %139 : vector<16x64xf32>
    %143 = arith.addf %138, %142 : vector<16x64xf32>
    %144 = vector.extract_strided_slice %73 {offsets = [1, 0], sizes = [16, 64], strides = [1, 1]} : vector<32x64xf32> to vector<16x64xf32>
    %145 = vector.extract_strided_slice %66 {offsets = [15, 0], sizes = [1, 64], strides = [1, 1]} : vector<16x64xf32> to vector<1x64xf32>
    %146 = vector.broadcast %145 : vector<1x64xf32> to vector<16x64xf32>
    %147 = arith.mulf %146, %144 : vector<16x64xf32>
    %148 = arith.addf %143, %147 : vector<16x64xf32>
    %149 = arith.truncf %65 : vector<16x64xf32> to vector<16x64xbf16>
    %150 = arith.truncf %148 : vector<16x64xf32> to vector<16x64xbf16>
    %c0_30 = arith.constant 0 : index
    %c0_31 = arith.constant 0 : index
    %151 = vector.load %arg8[%c0_30, %c0_31] : memref<64x64xbf16, #tpu.memory_space<vmem>>, vector<64x64xbf16>
    %cst_32 = arith.constant dense<0.000000e+00> : vector<16x64xf32>
    %152 = tpu.matmul %149, %151, %cst_32 {dimension_numbers = #tpu.dot_dimension_numbers<[1], [0], [0], [1], [0, 0, 1, 1], [], []>} : vector<16x64xbf16>, vector<64x64xbf16>, vector<16x64xf32> -> vector<16x64xf32>
    %c0_33 = arith.constant 0 : index
    %c0_34 = arith.constant 0 : index
    %153 = vector.load %arg9[%c0_33, %c0_34] : memref<1x64xf32, #tpu.memory_space<vmem>>, vector<1x64xf32>
    %154 = vector.broadcast %153 : vector<1x64xf32> to vector<16x64xf32>
    %155 = arith.addf %152, %154 : vector<16x64xf32>
    %156 = arith.negf %155 : vector<16x64xf32>
    %157 = math.exp %156 : vector<16x64xf32>
    %cst_35 = arith.constant 1.000000e+00 : f32
    %158 = vector.broadcast %cst_35 : f32 to vector<16x64xf32>
    %159 = arith.addf %158, %157 : vector<16x64xf32>
    %160 = arith.divf %158, %159 : vector<16x64xf32>
    %161 = arith.mulf %155, %160 : vector<16x64xf32>
    %c0_36 = arith.constant 0 : index
    %c0_37 = arith.constant 0 : index
    %162 = vector.load %arg10[%c0_36, %c0_37] : memref<64x64xbf16, #tpu.memory_space<vmem>>, vector<64x64xbf16>
    %cst_38 = arith.constant dense<0.000000e+00> : vector<16x64xf32>
    %163 = tpu.matmul %150, %162, %cst_38 {dimension_numbers = #tpu.dot_dimension_numbers<[1], [0], [0], [1], [0, 0, 1, 1], [], []>} : vector<16x64xbf16>, vector<64x64xbf16>, vector<16x64xf32> -> vector<16x64xf32>
    %c0_39 = arith.constant 0 : index
    %c0_40 = arith.constant 0 : index
    %164 = vector.load %arg11[%c0_39, %c0_40] : memref<1x64xf32, #tpu.memory_space<vmem>>, vector<1x64xf32>
    %165 = vector.broadcast %164 : vector<1x64xf32> to vector<16x64xf32>
    %166 = arith.addf %163, %165 : vector<16x64xf32>
    %167 = arith.negf %166 : vector<16x64xf32>
    %168 = math.exp %167 : vector<16x64xf32>
    %cst_41 = arith.constant 1.000000e+00 : f32
    %169 = vector.broadcast %cst_41 : f32 to vector<16x64xf32>
    %170 = arith.addf %169, %168 : vector<16x64xf32>
    %171 = arith.divf %169, %170 : vector<16x64xf32>
    %c0_42 = arith.constant 0 : index
    %c0_43 = arith.constant 0 : index
    %172 = vector.load %arg12[%c0_42, %c0_43] : memref<64x32xbf16, #tpu.memory_space<vmem>>, vector<64x32xbf16>
    %cst_44 = arith.constant dense<0.000000e+00> : vector<16x32xf32>
    %173 = tpu.matmul %150, %172, %cst_44 {dimension_numbers = #tpu.dot_dimension_numbers<[1], [0], [0], [1], [0, 0, 1, 1], [], []>} : vector<16x64xbf16>, vector<64x32xbf16>, vector<16x32xf32> -> vector<16x32xf32>
    %c0_45 = arith.constant 0 : index
    %c0_46 = arith.constant 0 : index
    %174 = vector.load %arg13[%c0_45, %c0_46] : memref<1x32xf32, #tpu.memory_space<vmem>>, vector<1x32xf32>
    %175 = vector.broadcast %174 : vector<1x32xf32> to vector<16x32xf32>
    %176 = arith.addf %173, %175 : vector<16x32xf32>
    %177 = arith.negf %176 : vector<16x32xf32>
    %178 = math.exp %177 : vector<16x32xf32>
    %cst_47 = arith.constant 1.000000e+00 : f32
    %179 = vector.broadcast %cst_47 : f32 to vector<16x32xf32>
    %180 = arith.addf %179, %178 : vector<16x32xf32>
    %181 = arith.divf %179, %180 : vector<16x32xf32>
    %182 = arith.mulf %176, %181 : vector<16x32xf32>
    %c0_48 = arith.constant 0 : index
    %c0_49 = arith.constant 0 : index
    %183 = vector.load %arg14[%c0_48, %c0_49] : memref<64x64xbf16, #tpu.memory_space<vmem>>, vector<64x64xbf16>
    %cst_50 = arith.constant dense<0.000000e+00> : vector<16x64xf32>
    %184 = tpu.matmul %150, %183, %cst_50 {dimension_numbers = #tpu.dot_dimension_numbers<[1], [0], [0], [1], [0, 0, 1, 1], [], []>} : vector<16x64xbf16>, vector<64x64xbf16>, vector<16x64xf32> -> vector<16x64xf32>
    %c0_51 = arith.constant 0 : index
    %c0_52 = arith.constant 0 : index
    %185 = vector.load %arg15[%c0_51, %c0_52] : memref<1x64xf32, #tpu.memory_space<vmem>>, vector<1x64xf32>
    %186 = vector.broadcast %185 : vector<1x64xf32> to vector<16x64xf32>
    %187 = arith.addf %184, %186 : vector<16x64xf32>
    %188 = arith.negf %187 : vector<16x64xf32>
    %189 = math.exp %188 : vector<16x64xf32>
    %cst_53 = arith.constant 1.000000e+00 : f32
    %190 = vector.broadcast %cst_53 : f32 to vector<16x64xf32>
    %191 = arith.addf %190, %189 : vector<16x64xf32>
    %192 = arith.divf %190, %191 : vector<16x64xf32>
    %193 = arith.mulf %187, %192 : vector<16x64xf32>
    %c0_54 = arith.constant 0 : index
    %c0_55 = arith.constant 0 : index
    %194 = vector.load %arg16[%c0_54, %c0_55] : memref<64x64xbf16, #tpu.memory_space<vmem>>, vector<64x64xbf16>
    %cst_56 = arith.constant dense<0.000000e+00> : vector<16x64xf32>
    %195 = tpu.matmul %150, %194, %cst_56 {dimension_numbers = #tpu.dot_dimension_numbers<[1], [0], [0], [1], [0, 0, 1, 1], [], []>} : vector<16x64xbf16>, vector<64x64xbf16>, vector<16x64xf32> -> vector<16x64xf32>
    %c0_57 = arith.constant 0 : index
    %c0_58 = arith.constant 0 : index
    %196 = vector.load %arg17[%c0_57, %c0_58] : memref<1x64xf32, #tpu.memory_space<vmem>>, vector<1x64xf32>
    %197 = vector.broadcast %196 : vector<1x64xf32> to vector<16x64xf32>
    %198 = arith.addf %195, %197 : vector<16x64xf32>
    %c0_59 = arith.constant 0 : index
    %c0_60 = arith.constant 0 : index
    %199 = vector.load %arg18[%c0_59, %c0_60] : memref<2x32xf32, #tpu.memory_space<vmem>>, vector<2x32xf32>
    %c0_61 = arith.constant 0 : index
    %c0_62 = arith.constant 0 : index
    %200 = vector.load %arg19[%c0_61, %c0_62] : memref<2x32xf32, #tpu.memory_space<vmem>>, vector<2x32xf32>
    %c0_63 = arith.constant 0 : index
    %c0_64 = arith.constant 0 : index
    %201 = vector.load %arg20[%c0_63, %c0_64] : memref<16x8xf32, #tpu.memory_space<vmem>>, vector<16x8xf32>
    %c0_65 = arith.constant 0 : index
    %c0_66 = arith.constant 0 : index
    %202 = vector.load %arg21[%c0_65, %c0_66] : memref<16x8xf32, #tpu.memory_space<vmem>>, vector<16x8xf32>
    %203 = tpu.iota {dimensions = array<i32: 0>} : vector<8x8xi32>
    %204 = tpu.iota {dimensions = array<i32: 1>} : vector<8x8xi32>
    %205 = arith.cmpi sge, %203, %204 : vector<8x8xi32>
    %206 = vector.extract_strided_slice %182 {offsets = [0, 0], sizes = [16, 8], strides = [1, 1]} : vector<16x32xf32> to vector<16x8xf32>
    %207 = vector.extract_strided_slice %199 {offsets = [0, 0], sizes = [1, 8], strides = [1, 1]} : vector<2x32xf32> to vector<1x8xf32>
    %208 = vector.broadcast %207 : vector<1x8xf32> to vector<16x8xf32>
    %209 = arith.mulf %206, %208 : vector<16x8xf32>
    %210 = vector.extract_strided_slice %200 {offsets = [0, 0], sizes = [1, 8], strides = [1, 1]} : vector<2x32xf32> to vector<1x8xf32>
    %211 = vector.broadcast %210 : vector<1x8xf32> to vector<16x8xf32>
    %212 = arith.addf %209, %211 : vector<16x8xf32>
    %213 = vector.extract_strided_slice %199 {offsets = [1, 0], sizes = [1, 8], strides = [1, 1]} : vector<2x32xf32> to vector<1x8xf32>
    %214 = vector.broadcast %213 : vector<1x8xf32> to vector<16x8xf32>
    %215 = arith.mulf %206, %214 : vector<16x8xf32>
    %216 = vector.extract_strided_slice %200 {offsets = [1, 0], sizes = [1, 8], strides = [1, 1]} : vector<2x32xf32> to vector<1x8xf32>
    %217 = vector.broadcast %216 : vector<1x8xf32> to vector<16x8xf32>
    %218 = arith.addf %215, %217 : vector<16x8xf32>
    %219 = vector.extract_strided_slice %212 {offsets = [0, 4], sizes = [16, 4], strides = [1, 1]} : vector<16x8xf32> to vector<16x4xf32>
    %cst_67 = arith.constant 0.000000e+00 : f32
    %220 = vector.broadcast %cst_67 : f32 to vector<16x4xf32>
    %221 = arith.subf %220, %219 : vector<16x4xf32>
    %222 = vector.extract_strided_slice %212 {offsets = [0, 0], sizes = [16, 4], strides = [1, 1]} : vector<16x8xf32> to vector<16x4xf32>
    %223 = tpu.concatenate %221, %222 in 1 : vector<16x4xf32>, vector<16x4xf32> -> vector<16x8xf32>
    %224 = vector.extract_strided_slice %218 {offsets = [0, 4], sizes = [16, 4], strides = [1, 1]} : vector<16x8xf32> to vector<16x4xf32>
    %cst_68 = arith.constant 0.000000e+00 : f32
    %225 = vector.broadcast %cst_68 : f32 to vector<16x4xf32>
    %226 = arith.subf %225, %224 : vector<16x4xf32>
    %227 = vector.extract_strided_slice %218 {offsets = [0, 0], sizes = [16, 4], strides = [1, 1]} : vector<16x8xf32> to vector<16x4xf32>
    %228 = tpu.concatenate %226, %227 in 1 : vector<16x4xf32>, vector<16x4xf32> -> vector<16x8xf32>
    %229 = arith.mulf %212, %201 : vector<16x8xf32>
    %230 = arith.mulf %223, %202 : vector<16x8xf32>
    %231 = arith.addf %229, %230 : vector<16x8xf32>
    %232 = arith.mulf %218, %201 : vector<16x8xf32>
    %233 = arith.mulf %228, %202 : vector<16x8xf32>
    %234 = arith.addf %232, %233 : vector<16x8xf32>
    %235 = vector.extract_strided_slice %161 {offsets = [0, 0], sizes = [16, 16], strides = [1, 1]} : vector<16x64xf32> to vector<16x16xf32>
    %236 = vector.extract_strided_slice %231 {offsets = [0, 0], sizes = [8, 8], strides = [1, 1]} : vector<16x8xf32> to vector<8x8xf32>
    %237 = vector.extract_strided_slice %234 {offsets = [0, 0], sizes = [8, 8], strides = [1, 1]} : vector<16x8xf32> to vector<8x8xf32>
    %238 = vector.extract_strided_slice %235 {offsets = [0, 0], sizes = [8, 16], strides = [1, 1]} : vector<16x16xf32> to vector<8x16xf32>
    %cst_69 = arith.constant dense<0.000000e+00> : vector<8x8xf32>
    %239 = tpu.matmul %236, %237, %cst_69 {dimension_numbers = #tpu.dot_dimension_numbers<[1], [1], [0], [0], [0, 0, 1, 0], [], []>} : vector<8x8xf32>, vector<8x8xf32>, vector<8x8xf32> -> vector<8x8xf32>
    %cst_70 = arith.constant 0.353553385 : f32
    %240 = vector.broadcast %cst_70 : f32 to vector<8x8xf32>
    %241 = arith.mulf %239, %240 : vector<8x8xf32>
    %cst_71 = arith.constant -1.000000e+30 : f32
    %242 = vector.broadcast %cst_71 : f32 to vector<8x8xf32>
    %243 = arith.select %205, %241, %242 : vector<8x8xi1>, vector<8x8xf32>
    %cst_72 = arith.constant dense<0xFF800000> : vector<8xf32>
    %244 = vector.multi_reduction <maximumf>, %243, %cst_72 [1] : vector<8x8xf32> to vector<8xf32>
    %245 = vector.shape_cast %244 : vector<8xf32> to vector<8x1xf32>
    %246 = vector.broadcast %245 : vector<8x1xf32> to vector<8x8xf32>
    %247 = arith.subf %243, %246 : vector<8x8xf32>
    %248 = math.exp %247 : vector<8x8xf32>
    %cst_73 = arith.constant dense<0.000000e+00> : vector<8xf32>
    %249 = vector.multi_reduction <add>, %248, %cst_73 [1] : vector<8x8xf32> to vector<8xf32>
    %250 = vector.shape_cast %249 : vector<8xf32> to vector<8x1xf32>
    %251 = vector.broadcast %250 : vector<8x1xf32> to vector<8x8xf32>
    %252 = arith.divf %248, %251 : vector<8x8xf32>
    %cst_74 = arith.constant dense<0.000000e+00> : vector<8x16xf32>
    %253 = tpu.matmul %252, %238, %cst_74 {dimension_numbers = #tpu.dot_dimension_numbers<[1], [0], [0], [1], [0, 0, 1, 1], [], []>} : vector<8x8xf32>, vector<8x16xf32>, vector<8x16xf32> -> vector<8x16xf32>
    %254 = vector.extract_strided_slice %231 {offsets = [8, 0], sizes = [8, 8], strides = [1, 1]} : vector<16x8xf32> to vector<8x8xf32>
    %255 = vector.extract_strided_slice %234 {offsets = [8, 0], sizes = [8, 8], strides = [1, 1]} : vector<16x8xf32> to vector<8x8xf32>
    %256 = vector.extract_strided_slice %235 {offsets = [8, 0], sizes = [8, 16], strides = [1, 1]} : vector<16x16xf32> to vector<8x16xf32>
    %cst_75 = arith.constant dense<0.000000e+00> : vector<8x8xf32>
    %257 = tpu.matmul %254, %255, %cst_75 {dimension_numbers = #tpu.dot_dimension_numbers<[1], [1], [0], [0], [0, 0, 1, 0], [], []>} : vector<8x8xf32>, vector<8x8xf32>, vector<8x8xf32> -> vector<8x8xf32>
    %cst_76 = arith.constant 0.353553385 : f32
    %258 = vector.broadcast %cst_76 : f32 to vector<8x8xf32>
    %259 = arith.mulf %257, %258 : vector<8x8xf32>
    %cst_77 = arith.constant -1.000000e+30 : f32
    %260 = vector.broadcast %cst_77 : f32 to vector<8x8xf32>
    %261 = arith.select %205, %259, %260 : vector<8x8xi1>, vector<8x8xf32>
    %cst_78 = arith.constant dense<0xFF800000> : vector<8xf32>
    %262 = vector.multi_reduction <maximumf>, %261, %cst_78 [1] : vector<8x8xf32> to vector<8xf32>
    %263 = vector.shape_cast %262 : vector<8xf32> to vector<8x1xf32>
    %264 = vector.broadcast %263 : vector<8x1xf32> to vector<8x8xf32>
    %265 = arith.subf %261, %264 : vector<8x8xf32>
    %266 = math.exp %265 : vector<8x8xf32>
    %cst_79 = arith.constant dense<0.000000e+00> : vector<8xf32>
    %267 = vector.multi_reduction <add>, %266, %cst_79 [1] : vector<8x8xf32> to vector<8xf32>
    %268 = vector.shape_cast %267 : vector<8xf32> to vector<8x1xf32>
    %269 = vector.broadcast %268 : vector<8x1xf32> to vector<8x8xf32>
    %270 = arith.divf %266, %269 : vector<8x8xf32>
    %cst_80 = arith.constant dense<0.000000e+00> : vector<8x16xf32>
    %271 = tpu.matmul %270, %256, %cst_80 {dimension_numbers = #tpu.dot_dimension_numbers<[1], [0], [0], [1], [0, 0, 1, 1], [], []>} : vector<8x8xf32>, vector<8x16xf32>, vector<8x16xf32> -> vector<8x16xf32>
    %272 = tpu.concatenate %253, %271 in 0 : vector<8x16xf32>, vector<8x16xf32> -> vector<16x16xf32>
    %273 = vector.extract_strided_slice %182 {offsets = [0, 8], sizes = [16, 8], strides = [1, 1]} : vector<16x32xf32> to vector<16x8xf32>
    %274 = vector.extract_strided_slice %199 {offsets = [0, 8], sizes = [1, 8], strides = [1, 1]} : vector<2x32xf32> to vector<1x8xf32>
    %275 = vector.broadcast %274 : vector<1x8xf32> to vector<16x8xf32>
    %276 = arith.mulf %273, %275 : vector<16x8xf32>
    %277 = vector.extract_strided_slice %200 {offsets = [0, 8], sizes = [1, 8], strides = [1, 1]} : vector<2x32xf32> to vector<1x8xf32>
    %278 = vector.broadcast %277 : vector<1x8xf32> to vector<16x8xf32>
    %279 = arith.addf %276, %278 : vector<16x8xf32>
    %280 = vector.extract_strided_slice %199 {offsets = [1, 8], sizes = [1, 8], strides = [1, 1]} : vector<2x32xf32> to vector<1x8xf32>
    %281 = vector.broadcast %280 : vector<1x8xf32> to vector<16x8xf32>
    %282 = arith.mulf %273, %281 : vector<16x8xf32>
    %283 = vector.extract_strided_slice %200 {offsets = [1, 8], sizes = [1, 8], strides = [1, 1]} : vector<2x32xf32> to vector<1x8xf32>
    %284 = vector.broadcast %283 : vector<1x8xf32> to vector<16x8xf32>
    %285 = arith.addf %282, %284 : vector<16x8xf32>
    %286 = vector.extract_strided_slice %279 {offsets = [0, 4], sizes = [16, 4], strides = [1, 1]} : vector<16x8xf32> to vector<16x4xf32>
    %cst_81 = arith.constant 0.000000e+00 : f32
    %287 = vector.broadcast %cst_81 : f32 to vector<16x4xf32>
    %288 = arith.subf %287, %286 : vector<16x4xf32>
    %289 = vector.extract_strided_slice %279 {offsets = [0, 0], sizes = [16, 4], strides = [1, 1]} : vector<16x8xf32> to vector<16x4xf32>
    %290 = tpu.concatenate %288, %289 in 1 : vector<16x4xf32>, vector<16x4xf32> -> vector<16x8xf32>
    %291 = vector.extract_strided_slice %285 {offsets = [0, 4], sizes = [16, 4], strides = [1, 1]} : vector<16x8xf32> to vector<16x4xf32>
    %cst_82 = arith.constant 0.000000e+00 : f32
    %292 = vector.broadcast %cst_82 : f32 to vector<16x4xf32>
    %293 = arith.subf %292, %291 : vector<16x4xf32>
    %294 = vector.extract_strided_slice %285 {offsets = [0, 0], sizes = [16, 4], strides = [1, 1]} : vector<16x8xf32> to vector<16x4xf32>
    %295 = tpu.concatenate %293, %294 in 1 : vector<16x4xf32>, vector<16x4xf32> -> vector<16x8xf32>
    %296 = arith.mulf %279, %201 : vector<16x8xf32>
    %297 = arith.mulf %290, %202 : vector<16x8xf32>
    %298 = arith.addf %296, %297 : vector<16x8xf32>
    %299 = arith.mulf %285, %201 : vector<16x8xf32>
    %300 = arith.mulf %295, %202 : vector<16x8xf32>
    %301 = arith.addf %299, %300 : vector<16x8xf32>
    %302 = vector.extract_strided_slice %161 {offsets = [0, 16], sizes = [16, 16], strides = [1, 1]} : vector<16x64xf32> to vector<16x16xf32>
    %303 = vector.extract_strided_slice %298 {offsets = [0, 0], sizes = [8, 8], strides = [1, 1]} : vector<16x8xf32> to vector<8x8xf32>
    %304 = vector.extract_strided_slice %301 {offsets = [0, 0], sizes = [8, 8], strides = [1, 1]} : vector<16x8xf32> to vector<8x8xf32>
    %305 = vector.extract_strided_slice %302 {offsets = [0, 0], sizes = [8, 16], strides = [1, 1]} : vector<16x16xf32> to vector<8x16xf32>
    %cst_83 = arith.constant dense<0.000000e+00> : vector<8x8xf32>
    %306 = tpu.matmul %303, %304, %cst_83 {dimension_numbers = #tpu.dot_dimension_numbers<[1], [1], [0], [0], [0, 0, 1, 0], [], []>} : vector<8x8xf32>, vector<8x8xf32>, vector<8x8xf32> -> vector<8x8xf32>
    %cst_84 = arith.constant 0.353553385 : f32
    %307 = vector.broadcast %cst_84 : f32 to vector<8x8xf32>
    %308 = arith.mulf %306, %307 : vector<8x8xf32>
    %cst_85 = arith.constant -1.000000e+30 : f32
    %309 = vector.broadcast %cst_85 : f32 to vector<8x8xf32>
    %310 = arith.select %205, %308, %309 : vector<8x8xi1>, vector<8x8xf32>
    %cst_86 = arith.constant dense<0xFF800000> : vector<8xf32>
    %311 = vector.multi_reduction <maximumf>, %310, %cst_86 [1] : vector<8x8xf32> to vector<8xf32>
    %312 = vector.shape_cast %311 : vector<8xf32> to vector<8x1xf32>
    %313 = vector.broadcast %312 : vector<8x1xf32> to vector<8x8xf32>
    %314 = arith.subf %310, %313 : vector<8x8xf32>
    %315 = math.exp %314 : vector<8x8xf32>
    %cst_87 = arith.constant dense<0.000000e+00> : vector<8xf32>
    %316 = vector.multi_reduction <add>, %315, %cst_87 [1] : vector<8x8xf32> to vector<8xf32>
    %317 = vector.shape_cast %316 : vector<8xf32> to vector<8x1xf32>
    %318 = vector.broadcast %317 : vector<8x1xf32> to vector<8x8xf32>
    %319 = arith.divf %315, %318 : vector<8x8xf32>
    %cst_88 = arith.constant dense<0.000000e+00> : vector<8x16xf32>
    %320 = tpu.matmul %319, %305, %cst_88 {dimension_numbers = #tpu.dot_dimension_numbers<[1], [0], [0], [1], [0, 0, 1, 1], [], []>} : vector<8x8xf32>, vector<8x16xf32>, vector<8x16xf32> -> vector<8x16xf32>
    %321 = vector.extract_strided_slice %298 {offsets = [8, 0], sizes = [8, 8], strides = [1, 1]} : vector<16x8xf32> to vector<8x8xf32>
    %322 = vector.extract_strided_slice %301 {offsets = [8, 0], sizes = [8, 8], strides = [1, 1]} : vector<16x8xf32> to vector<8x8xf32>
    %323 = vector.extract_strided_slice %302 {offsets = [8, 0], sizes = [8, 16], strides = [1, 1]} : vector<16x16xf32> to vector<8x16xf32>
    %cst_89 = arith.constant dense<0.000000e+00> : vector<8x8xf32>
    %324 = tpu.matmul %321, %322, %cst_89 {dimension_numbers = #tpu.dot_dimension_numbers<[1], [1], [0], [0], [0, 0, 1, 0], [], []>} : vector<8x8xf32>, vector<8x8xf32>, vector<8x8xf32> -> vector<8x8xf32>
    %cst_90 = arith.constant 0.353553385 : f32
    %325 = vector.broadcast %cst_90 : f32 to vector<8x8xf32>
    %326 = arith.mulf %324, %325 : vector<8x8xf32>
    %cst_91 = arith.constant -1.000000e+30 : f32
    %327 = vector.broadcast %cst_91 : f32 to vector<8x8xf32>
    %328 = arith.select %205, %326, %327 : vector<8x8xi1>, vector<8x8xf32>
    %cst_92 = arith.constant dense<0xFF800000> : vector<8xf32>
    %329 = vector.multi_reduction <maximumf>, %328, %cst_92 [1] : vector<8x8xf32> to vector<8xf32>
    %330 = vector.shape_cast %329 : vector<8xf32> to vector<8x1xf32>
    %331 = vector.broadcast %330 : vector<8x1xf32> to vector<8x8xf32>
    %332 = arith.subf %328, %331 : vector<8x8xf32>
    %333 = math.exp %332 : vector<8x8xf32>
    %cst_93 = arith.constant dense<0.000000e+00> : vector<8xf32>
    %334 = vector.multi_reduction <add>, %333, %cst_93 [1] : vector<8x8xf32> to vector<8xf32>
    %335 = vector.shape_cast %334 : vector<8xf32> to vector<8x1xf32>
    %336 = vector.broadcast %335 : vector<8x1xf32> to vector<8x8xf32>
    %337 = arith.divf %333, %336 : vector<8x8xf32>
    %cst_94 = arith.constant dense<0.000000e+00> : vector<8x16xf32>
    %338 = tpu.matmul %337, %323, %cst_94 {dimension_numbers = #tpu.dot_dimension_numbers<[1], [0], [0], [1], [0, 0, 1, 1], [], []>} : vector<8x8xf32>, vector<8x16xf32>, vector<8x16xf32> -> vector<8x16xf32>
    %339 = tpu.concatenate %320, %338 in 0 : vector<8x16xf32>, vector<8x16xf32> -> vector<16x16xf32>
    %340 = vector.extract_strided_slice %182 {offsets = [0, 16], sizes = [16, 8], strides = [1, 1]} : vector<16x32xf32> to vector<16x8xf32>
    %341 = vector.extract_strided_slice %199 {offsets = [0, 16], sizes = [1, 8], strides = [1, 1]} : vector<2x32xf32> to vector<1x8xf32>
    %342 = vector.broadcast %341 : vector<1x8xf32> to vector<16x8xf32>
    %343 = arith.mulf %340, %342 : vector<16x8xf32>
    %344 = vector.extract_strided_slice %200 {offsets = [0, 16], sizes = [1, 8], strides = [1, 1]} : vector<2x32xf32> to vector<1x8xf32>
    %345 = vector.broadcast %344 : vector<1x8xf32> to vector<16x8xf32>
    %346 = arith.addf %343, %345 : vector<16x8xf32>
    %347 = vector.extract_strided_slice %199 {offsets = [1, 16], sizes = [1, 8], strides = [1, 1]} : vector<2x32xf32> to vector<1x8xf32>
    %348 = vector.broadcast %347 : vector<1x8xf32> to vector<16x8xf32>
    %349 = arith.mulf %340, %348 : vector<16x8xf32>
    %350 = vector.extract_strided_slice %200 {offsets = [1, 16], sizes = [1, 8], strides = [1, 1]} : vector<2x32xf32> to vector<1x8xf32>
    %351 = vector.broadcast %350 : vector<1x8xf32> to vector<16x8xf32>
    %352 = arith.addf %349, %351 : vector<16x8xf32>
    %353 = vector.extract_strided_slice %346 {offsets = [0, 4], sizes = [16, 4], strides = [1, 1]} : vector<16x8xf32> to vector<16x4xf32>
    %cst_95 = arith.constant 0.000000e+00 : f32
    %354 = vector.broadcast %cst_95 : f32 to vector<16x4xf32>
    %355 = arith.subf %354, %353 : vector<16x4xf32>
    %356 = vector.extract_strided_slice %346 {offsets = [0, 0], sizes = [16, 4], strides = [1, 1]} : vector<16x8xf32> to vector<16x4xf32>
    %357 = tpu.concatenate %355, %356 in 1 : vector<16x4xf32>, vector<16x4xf32> -> vector<16x8xf32>
    %358 = vector.extract_strided_slice %352 {offsets = [0, 4], sizes = [16, 4], strides = [1, 1]} : vector<16x8xf32> to vector<16x4xf32>
    %cst_96 = arith.constant 0.000000e+00 : f32
    %359 = vector.broadcast %cst_96 : f32 to vector<16x4xf32>
    %360 = arith.subf %359, %358 : vector<16x4xf32>
    %361 = vector.extract_strided_slice %352 {offsets = [0, 0], sizes = [16, 4], strides = [1, 1]} : vector<16x8xf32> to vector<16x4xf32>
    %362 = tpu.concatenate %360, %361 in 1 : vector<16x4xf32>, vector<16x4xf32> -> vector<16x8xf32>
    %363 = arith.mulf %346, %201 : vector<16x8xf32>
    %364 = arith.mulf %357, %202 : vector<16x8xf32>
    %365 = arith.addf %363, %364 : vector<16x8xf32>
    %366 = arith.mulf %352, %201 : vector<16x8xf32>
    %367 = arith.mulf %362, %202 : vector<16x8xf32>
    %368 = arith.addf %366, %367 : vector<16x8xf32>
    %369 = vector.extract_strided_slice %161 {offsets = [0, 32], sizes = [16, 16], strides = [1, 1]} : vector<16x64xf32> to vector<16x16xf32>
    %370 = vector.extract_strided_slice %365 {offsets = [0, 0], sizes = [8, 8], strides = [1, 1]} : vector<16x8xf32> to vector<8x8xf32>
    %371 = vector.extract_strided_slice %368 {offsets = [0, 0], sizes = [8, 8], strides = [1, 1]} : vector<16x8xf32> to vector<8x8xf32>
    %372 = vector.extract_strided_slice %369 {offsets = [0, 0], sizes = [8, 16], strides = [1, 1]} : vector<16x16xf32> to vector<8x16xf32>
    %cst_97 = arith.constant dense<0.000000e+00> : vector<8x8xf32>
    %373 = tpu.matmul %370, %371, %cst_97 {dimension_numbers = #tpu.dot_dimension_numbers<[1], [1], [0], [0], [0, 0, 1, 0], [], []>} : vector<8x8xf32>, vector<8x8xf32>, vector<8x8xf32> -> vector<8x8xf32>
    %cst_98 = arith.constant 0.353553385 : f32
    %374 = vector.broadcast %cst_98 : f32 to vector<8x8xf32>
    %375 = arith.mulf %373, %374 : vector<8x8xf32>
    %cst_99 = arith.constant -1.000000e+30 : f32
    %376 = vector.broadcast %cst_99 : f32 to vector<8x8xf32>
    %377 = arith.select %205, %375, %376 : vector<8x8xi1>, vector<8x8xf32>
    %cst_100 = arith.constant dense<0xFF800000> : vector<8xf32>
    %378 = vector.multi_reduction <maximumf>, %377, %cst_100 [1] : vector<8x8xf32> to vector<8xf32>
    %379 = vector.shape_cast %378 : vector<8xf32> to vector<8x1xf32>
    %380 = vector.broadcast %379 : vector<8x1xf32> to vector<8x8xf32>
    %381 = arith.subf %377, %380 : vector<8x8xf32>
    %382 = math.exp %381 : vector<8x8xf32>
    %cst_101 = arith.constant dense<0.000000e+00> : vector<8xf32>
    %383 = vector.multi_reduction <add>, %382, %cst_101 [1] : vector<8x8xf32> to vector<8xf32>
    %384 = vector.shape_cast %383 : vector<8xf32> to vector<8x1xf32>
    %385 = vector.broadcast %384 : vector<8x1xf32> to vector<8x8xf32>
    %386 = arith.divf %382, %385 : vector<8x8xf32>
    %cst_102 = arith.constant dense<0.000000e+00> : vector<8x16xf32>
    %387 = tpu.matmul %386, %372, %cst_102 {dimension_numbers = #tpu.dot_dimension_numbers<[1], [0], [0], [1], [0, 0, 1, 1], [], []>} : vector<8x8xf32>, vector<8x16xf32>, vector<8x16xf32> -> vector<8x16xf32>
    %388 = vector.extract_strided_slice %365 {offsets = [8, 0], sizes = [8, 8], strides = [1, 1]} : vector<16x8xf32> to vector<8x8xf32>
    %389 = vector.extract_strided_slice %368 {offsets = [8, 0], sizes = [8, 8], strides = [1, 1]} : vector<16x8xf32> to vector<8x8xf32>
    %390 = vector.extract_strided_slice %369 {offsets = [8, 0], sizes = [8, 16], strides = [1, 1]} : vector<16x16xf32> to vector<8x16xf32>
    %cst_103 = arith.constant dense<0.000000e+00> : vector<8x8xf32>
    %391 = tpu.matmul %388, %389, %cst_103 {dimension_numbers = #tpu.dot_dimension_numbers<[1], [1], [0], [0], [0, 0, 1, 0], [], []>} : vector<8x8xf32>, vector<8x8xf32>, vector<8x8xf32> -> vector<8x8xf32>
    %cst_104 = arith.constant 0.353553385 : f32
    %392 = vector.broadcast %cst_104 : f32 to vector<8x8xf32>
    %393 = arith.mulf %391, %392 : vector<8x8xf32>
    %cst_105 = arith.constant -1.000000e+30 : f32
    %394 = vector.broadcast %cst_105 : f32 to vector<8x8xf32>
    %395 = arith.select %205, %393, %394 : vector<8x8xi1>, vector<8x8xf32>
    %cst_106 = arith.constant dense<0xFF800000> : vector<8xf32>
    %396 = vector.multi_reduction <maximumf>, %395, %cst_106 [1] : vector<8x8xf32> to vector<8xf32>
    %397 = vector.shape_cast %396 : vector<8xf32> to vector<8x1xf32>
    %398 = vector.broadcast %397 : vector<8x1xf32> to vector<8x8xf32>
    %399 = arith.subf %395, %398 : vector<8x8xf32>
    %400 = math.exp %399 : vector<8x8xf32>
    %cst_107 = arith.constant dense<0.000000e+00> : vector<8xf32>
    %401 = vector.multi_reduction <add>, %400, %cst_107 [1] : vector<8x8xf32> to vector<8xf32>
    %402 = vector.shape_cast %401 : vector<8xf32> to vector<8x1xf32>
    %403 = vector.broadcast %402 : vector<8x1xf32> to vector<8x8xf32>
    %404 = arith.divf %400, %403 : vector<8x8xf32>
    %cst_108 = arith.constant dense<0.000000e+00> : vector<8x16xf32>
    %405 = tpu.matmul %404, %390, %cst_108 {dimension_numbers = #tpu.dot_dimension_numbers<[1], [0], [0], [1], [0, 0, 1, 1], [], []>} : vector<8x8xf32>, vector<8x16xf32>, vector<8x16xf32> -> vector<8x16xf32>
    %406 = tpu.concatenate %387, %405 in 0 : vector<8x16xf32>, vector<8x16xf32> -> vector<16x16xf32>
    %407 = vector.extract_strided_slice %182 {offsets = [0, 24], sizes = [16, 8], strides = [1, 1]} : vector<16x32xf32> to vector<16x8xf32>
    %408 = vector.extract_strided_slice %199 {offsets = [0, 24], sizes = [1, 8], strides = [1, 1]} : vector<2x32xf32> to vector<1x8xf32>
    %409 = vector.broadcast %408 : vector<1x8xf32> to vector<16x8xf32>
    %410 = arith.mulf %407, %409 : vector<16x8xf32>
    %411 = vector.extract_strided_slice %200 {offsets = [0, 24], sizes = [1, 8], strides = [1, 1]} : vector<2x32xf32> to vector<1x8xf32>
    %412 = vector.broadcast %411 : vector<1x8xf32> to vector<16x8xf32>
    %413 = arith.addf %410, %412 : vector<16x8xf32>
    %414 = vector.extract_strided_slice %199 {offsets = [1, 24], sizes = [1, 8], strides = [1, 1]} : vector<2x32xf32> to vector<1x8xf32>
    %415 = vector.broadcast %414 : vector<1x8xf32> to vector<16x8xf32>
    %416 = arith.mulf %407, %415 : vector<16x8xf32>
    %417 = vector.extract_strided_slice %200 {offsets = [1, 24], sizes = [1, 8], strides = [1, 1]} : vector<2x32xf32> to vector<1x8xf32>
    %418 = vector.broadcast %417 : vector<1x8xf32> to vector<16x8xf32>
    %419 = arith.addf %416, %418 : vector<16x8xf32>
    %420 = vector.extract_strided_slice %413 {offsets = [0, 4], sizes = [16, 4], strides = [1, 1]} : vector<16x8xf32> to vector<16x4xf32>
    %cst_109 = arith.constant 0.000000e+00 : f32
    %421 = vector.broadcast %cst_109 : f32 to vector<16x4xf32>
    %422 = arith.subf %421, %420 : vector<16x4xf32>
    %423 = vector.extract_strided_slice %413 {offsets = [0, 0], sizes = [16, 4], strides = [1, 1]} : vector<16x8xf32> to vector<16x4xf32>
    %424 = tpu.concatenate %422, %423 in 1 : vector<16x4xf32>, vector<16x4xf32> -> vector<16x8xf32>
    %425 = vector.extract_strided_slice %419 {offsets = [0, 4], sizes = [16, 4], strides = [1, 1]} : vector<16x8xf32> to vector<16x4xf32>
    %cst_110 = arith.constant 0.000000e+00 : f32
    %426 = vector.broadcast %cst_110 : f32 to vector<16x4xf32>
    %427 = arith.subf %426, %425 : vector<16x4xf32>
    %428 = vector.extract_strided_slice %419 {offsets = [0, 0], sizes = [16, 4], strides = [1, 1]} : vector<16x8xf32> to vector<16x4xf32>
    %429 = tpu.concatenate %427, %428 in 1 : vector<16x4xf32>, vector<16x4xf32> -> vector<16x8xf32>
    %430 = arith.mulf %413, %201 : vector<16x8xf32>
    %431 = arith.mulf %424, %202 : vector<16x8xf32>
    %432 = arith.addf %430, %431 : vector<16x8xf32>
    %433 = arith.mulf %419, %201 : vector<16x8xf32>
    %434 = arith.mulf %429, %202 : vector<16x8xf32>
    %435 = arith.addf %433, %434 : vector<16x8xf32>
    %436 = vector.extract_strided_slice %161 {offsets = [0, 48], sizes = [16, 16], strides = [1, 1]} : vector<16x64xf32> to vector<16x16xf32>
    %437 = vector.extract_strided_slice %432 {offsets = [0, 0], sizes = [8, 8], strides = [1, 1]} : vector<16x8xf32> to vector<8x8xf32>
    %438 = vector.extract_strided_slice %435 {offsets = [0, 0], sizes = [8, 8], strides = [1, 1]} : vector<16x8xf32> to vector<8x8xf32>
    %439 = vector.extract_strided_slice %436 {offsets = [0, 0], sizes = [8, 16], strides = [1, 1]} : vector<16x16xf32> to vector<8x16xf32>
    %cst_111 = arith.constant dense<0.000000e+00> : vector<8x8xf32>
    %440 = tpu.matmul %437, %438, %cst_111 {dimension_numbers = #tpu.dot_dimension_numbers<[1], [1], [0], [0], [0, 0, 1, 0], [], []>} : vector<8x8xf32>, vector<8x8xf32>, vector<8x8xf32> -> vector<8x8xf32>
    %cst_112 = arith.constant 0.353553385 : f32
    %441 = vector.broadcast %cst_112 : f32 to vector<8x8xf32>
    %442 = arith.mulf %440, %441 : vector<8x8xf32>
    %cst_113 = arith.constant -1.000000e+30 : f32
    %443 = vector.broadcast %cst_113 : f32 to vector<8x8xf32>
    %444 = arith.select %205, %442, %443 : vector<8x8xi1>, vector<8x8xf32>
    %cst_114 = arith.constant dense<0xFF800000> : vector<8xf32>
    %445 = vector.multi_reduction <maximumf>, %444, %cst_114 [1] : vector<8x8xf32> to vector<8xf32>
    %446 = vector.shape_cast %445 : vector<8xf32> to vector<8x1xf32>
    %447 = vector.broadcast %446 : vector<8x1xf32> to vector<8x8xf32>
    %448 = arith.subf %444, %447 : vector<8x8xf32>
    %449 = math.exp %448 : vector<8x8xf32>
    %cst_115 = arith.constant dense<0.000000e+00> : vector<8xf32>
    %450 = vector.multi_reduction <add>, %449, %cst_115 [1] : vector<8x8xf32> to vector<8xf32>
    %451 = vector.shape_cast %450 : vector<8xf32> to vector<8x1xf32>
    %452 = vector.broadcast %451 : vector<8x1xf32> to vector<8x8xf32>
    %453 = arith.divf %449, %452 : vector<8x8xf32>
    %cst_116 = arith.constant dense<0.000000e+00> : vector<8x16xf32>
    %454 = tpu.matmul %453, %439, %cst_116 {dimension_numbers = #tpu.dot_dimension_numbers<[1], [0], [0], [1], [0, 0, 1, 1], [], []>} : vector<8x8xf32>, vector<8x16xf32>, vector<8x16xf32> -> vector<8x16xf32>
    %455 = vector.extract_strided_slice %432 {offsets = [8, 0], sizes = [8, 8], strides = [1, 1]} : vector<16x8xf32> to vector<8x8xf32>
    %456 = vector.extract_strided_slice %435 {offsets = [8, 0], sizes = [8, 8], strides = [1, 1]} : vector<16x8xf32> to vector<8x8xf32>
    %457 = vector.extract_strided_slice %436 {offsets = [8, 0], sizes = [8, 16], strides = [1, 1]} : vector<16x16xf32> to vector<8x16xf32>
    %cst_117 = arith.constant dense<0.000000e+00> : vector<8x8xf32>
    %458 = tpu.matmul %455, %456, %cst_117 {dimension_numbers = #tpu.dot_dimension_numbers<[1], [1], [0], [0], [0, 0, 1, 0], [], []>} : vector<8x8xf32>, vector<8x8xf32>, vector<8x8xf32> -> vector<8x8xf32>
    %cst_118 = arith.constant 0.353553385 : f32
    %459 = vector.broadcast %cst_118 : f32 to vector<8x8xf32>
    %460 = arith.mulf %458, %459 : vector<8x8xf32>
    %cst_119 = arith.constant -1.000000e+30 : f32
    %461 = vector.broadcast %cst_119 : f32 to vector<8x8xf32>
    %462 = arith.select %205, %460, %461 : vector<8x8xi1>, vector<8x8xf32>
    %cst_120 = arith.constant dense<0xFF800000> : vector<8xf32>
    %463 = vector.multi_reduction <maximumf>, %462, %cst_120 [1] : vector<8x8xf32> to vector<8xf32>
    %464 = vector.shape_cast %463 : vector<8xf32> to vector<8x1xf32>
    %465 = vector.broadcast %464 : vector<8x1xf32> to vector<8x8xf32>
    %466 = arith.subf %462, %465 : vector<8x8xf32>
    %467 = math.exp %466 : vector<8x8xf32>
    %cst_121 = arith.constant dense<0.000000e+00> : vector<8xf32>
    %468 = vector.multi_reduction <add>, %467, %cst_121 [1] : vector<8x8xf32> to vector<8xf32>
    %469 = vector.shape_cast %468 : vector<8xf32> to vector<8x1xf32>
    %470 = vector.broadcast %469 : vector<8x1xf32> to vector<8x8xf32>
    %471 = arith.divf %467, %470 : vector<8x8xf32>
    %cst_122 = arith.constant dense<0.000000e+00> : vector<8x16xf32>
    %472 = tpu.matmul %471, %457, %cst_122 {dimension_numbers = #tpu.dot_dimension_numbers<[1], [0], [0], [1], [0, 0, 1, 1], [], []>} : vector<8x8xf32>, vector<8x16xf32>, vector<8x16xf32> -> vector<8x16xf32>
    %473 = tpu.concatenate %454, %472 in 0 : vector<8x16xf32>, vector<8x16xf32> -> vector<16x16xf32>
    %474 = tpu.concatenate %272, %339, %406, %473 in 1 : vector<16x16xf32>, vector<16x16xf32>, vector<16x16xf32>, vector<16x16xf32> -> vector<16x64xf32>
    %475 = arith.mulf %474, %193 : vector<16x64xf32>
    %476 = arith.truncf %475 : vector<16x64xf32> to vector<16x64xbf16>
    %c0_123 = arith.constant 0 : index
    %c0_124 = arith.constant 0 : index
    %477 = vector.load %arg22[%c0_123, %c0_124] : memref<64x64xbf16, #tpu.memory_space<vmem>>, vector<64x64xbf16>
    %cst_125 = arith.constant dense<0.000000e+00> : vector<16x64xf32>
    %478 = tpu.matmul %476, %477, %cst_125 {dimension_numbers = #tpu.dot_dimension_numbers<[1], [0], [0], [1], [0, 0, 1, 1], [], []>} : vector<16x64xbf16>, vector<64x64xbf16>, vector<16x64xf32> -> vector<16x64xf32>
    %c0_126 = arith.constant 0 : index
    %c0_127 = arith.constant 0 : index
    %479 = vector.load %arg23[%c0_126, %c0_127] : memref<1x64xf32, #tpu.memory_space<vmem>>, vector<1x64xf32>
    %480 = vector.broadcast %479 : vector<1x64xf32> to vector<16x64xf32>
    %481 = arith.addf %478, %480 : vector<16x64xf32>
    %482 = arith.addf %198, %481 : vector<16x64xf32>
    %483 = arith.negf %482 : vector<16x64xf32>
    %484 = math.exp %483 : vector<16x64xf32>
    %cst_128 = arith.constant 1.000000e+00 : f32
    %485 = vector.broadcast %cst_128 : f32 to vector<16x64xf32>
    %486 = arith.addf %485, %484 : vector<16x64xf32>
    %487 = arith.divf %485, %486 : vector<16x64xf32>
    %488 = arith.mulf %482, %487 : vector<16x64xf32>
    %489 = arith.subf %488, %1 : vector<16x64xf32>
    %490 = arith.mulf %171, %489 : vector<16x64xf32>
    %491 = arith.addf %1, %490 : vector<16x64xf32>
    %cst_129 = arith.constant dense<0.000000e+00> : vector<16xf32>
    %492 = vector.multi_reduction <add>, %491, %cst_129 [1] : vector<16x64xf32> to vector<16xf32>
    %493 = vector.shape_cast %492 : vector<16xf32> to vector<16x1xf32>
    %cst_130 = arith.constant 6.400000e+01 : f32
    %494 = vector.broadcast %cst_130 : f32 to vector<16x1xf32>
    %495 = arith.divf %493, %494 : vector<16x1xf32>
    %496 = vector.broadcast %495 : vector<16x1xf32> to vector<16x64xf32>
    %497 = arith.subf %491, %496 : vector<16x64xf32>
    %498 = arith.mulf %497, %497 : vector<16x64xf32>
    %cst_131 = arith.constant dense<0.000000e+00> : vector<16xf32>
    %499 = vector.multi_reduction <add>, %498, %cst_131 [1] : vector<16x64xf32> to vector<16xf32>
    %500 = vector.shape_cast %499 : vector<16xf32> to vector<16x1xf32>
    %cst_132 = arith.constant 6.400000e+01 : f32
    %501 = vector.broadcast %cst_132 : f32 to vector<16x1xf32>
    %502 = arith.divf %500, %501 : vector<16x1xf32>
    %cst_133 = arith.constant 9.99999974E-6 : f32
    %503 = vector.broadcast %cst_133 : f32 to vector<16x1xf32>
    %504 = arith.addf %502, %503 : vector<16x1xf32>
    %505 = math.rsqrt %504 : vector<16x1xf32>
    %506 = vector.broadcast %505 : vector<16x1xf32> to vector<16x64xf32>
    %507 = arith.mulf %497, %506 : vector<16x64xf32>
    %c0_134 = arith.constant 0 : index
    %c0_135 = arith.constant 0 : index
    %508 = vector.load %arg24[%c0_134, %c0_135] : memref<1x64xf32, #tpu.memory_space<vmem>>, vector<1x64xf32>
    %509 = vector.broadcast %508 : vector<1x64xf32> to vector<16x64xf32>
    %510 = arith.mulf %507, %509 : vector<16x64xf32>
    %c0_136 = arith.constant 0 : index
    %c0_137 = arith.constant 0 : index
    %511 = vector.load %arg25[%c0_136, %c0_137] : memref<1x64xf32, #tpu.memory_space<vmem>>, vector<1x64xf32>
    %512 = vector.broadcast %511 : vector<1x64xf32> to vector<16x64xf32>
    %513 = arith.addf %510, %512 : vector<16x64xf32>
    %514 = arith.truncf %513 : vector<16x64xf32> to vector<16x64xbf16>
    %c0_138 = arith.constant 0 : index
    %c0_139 = arith.constant 0 : index
    %515 = vector.load %arg26[%c0_138, %c0_139] : memref<64x128xbf16, #tpu.memory_space<vmem>>, vector<64x128xbf16>
    %cst_140 = arith.constant dense<0.000000e+00> : vector<16x128xf32>
    %516 = tpu.matmul %514, %515, %cst_140 {dimension_numbers = #tpu.dot_dimension_numbers<[1], [0], [0], [1], [0, 0, 1, 1], [], []>} : vector<16x64xbf16>, vector<64x128xbf16>, vector<16x128xf32> -> vector<16x128xf32>
    %c0_141 = arith.constant 0 : index
    %c0_142 = arith.constant 0 : index
    %517 = vector.load %arg27[%c0_141, %c0_142] : memref<1x128xf32, #tpu.memory_space<vmem>>, vector<1x128xf32>
    %518 = vector.broadcast %517 : vector<1x128xf32> to vector<16x128xf32>
    %519 = arith.addf %516, %518 : vector<16x128xf32>
    %520 = arith.negf %519 : vector<16x128xf32>
    %521 = math.exp %520 : vector<16x128xf32>
    %cst_143 = arith.constant 1.000000e+00 : f32
    %522 = vector.broadcast %cst_143 : f32 to vector<16x128xf32>
    %523 = arith.addf %522, %521 : vector<16x128xf32>
    %524 = arith.divf %522, %523 : vector<16x128xf32>
    %525 = arith.mulf %519, %524 : vector<16x128xf32>
    %c0_144 = arith.constant 0 : index
    %c0_145 = arith.constant 0 : index
    %526 = vector.load %arg28[%c0_144, %c0_145] : memref<64x128xbf16, #tpu.memory_space<vmem>>, vector<64x128xbf16>
    %cst_146 = arith.constant dense<0.000000e+00> : vector<16x128xf32>
    %527 = tpu.matmul %514, %526, %cst_146 {dimension_numbers = #tpu.dot_dimension_numbers<[1], [0], [0], [1], [0, 0, 1, 1], [], []>} : vector<16x64xbf16>, vector<64x128xbf16>, vector<16x128xf32> -> vector<16x128xf32>
    %c0_147 = arith.constant 0 : index
    %c0_148 = arith.constant 0 : index
    %528 = vector.load %arg29[%c0_147, %c0_148] : memref<1x128xf32, #tpu.memory_space<vmem>>, vector<1x128xf32>
    %529 = vector.broadcast %528 : vector<1x128xf32> to vector<16x128xf32>
    %530 = arith.addf %527, %529 : vector<16x128xf32>
    %531 = arith.mulf %525, %530 : vector<16x128xf32>
    %532 = arith.truncf %531 : vector<16x128xf32> to vector<16x128xbf16>
    %c0_149 = arith.constant 0 : index
    %c0_150 = arith.constant 0 : index
    %533 = vector.load %arg30[%c0_149, %c0_150] : memref<128x64xbf16, #tpu.memory_space<vmem>>, vector<128x64xbf16>
    %cst_151 = arith.constant dense<0.000000e+00> : vector<16x64xf32>
    %534 = tpu.matmul %532, %533, %cst_151 {dimension_numbers = #tpu.dot_dimension_numbers<[1], [0], [0], [1], [0, 0, 1, 1], [], []>} : vector<16x128xbf16>, vector<128x64xbf16>, vector<16x64xf32> -> vector<16x64xf32>
    %c0_152 = arith.constant 0 : index
    %c0_153 = arith.constant 0 : index
    %535 = vector.load %arg31[%c0_152, %c0_153] : memref<1x64xf32, #tpu.memory_space<vmem>>, vector<1x64xf32>
    %536 = vector.broadcast %535 : vector<1x64xf32> to vector<16x64xf32>
    %537 = arith.addf %534, %536 : vector<16x64xf32>
    %538 = arith.addf %537, %1 : vector<16x64xf32>
    %c0_154 = arith.constant 0 : index
    %c0_155 = arith.constant 0 : index
    %c0_156 = arith.constant 0 : index
    %539 = vector.load %arg32[%c0_154, %c0_155, %c0_156] : memref<1x16x64xf32, #tpu.memory_space<vmem>>, vector<1x16x64xf32>
    %540 = vector.shape_cast %539 : vector<1x16x64xf32> to vector<16x64xf32>
    %541 = vector.shape_cast %538 : vector<16x64xf32> to vector<1x16x64xf32>
    tpu.vector_store %arg32[%c0_154, %c0_155, %c0_156], %541 {strides = array<i32>} : memref<1x16x64xf32, #tpu.memory_space<vmem>>, vector<1x16x64xf32>,
    return
  }
  func.func @transform_0(%arg0: i32) -> (i32, i32, i32) {
    %c0_i32 = arith.constant 0 : i32
    %c0_i32_0 = arith.constant 0 : i32
    %c0_i32_1 = arith.constant 0 : i32
    return %arg0, %c0_i32, %c0_i32_0 : i32, i32, i32
  }
  func.func @transform_1(%arg0: i32) -> (i32, i32) {
    %c0_i32 = arith.constant 0 : i32
    %c0_i32_0 = arith.constant 0 : i32
    %c0_i32_1 = arith.constant 0 : i32
    return %c0_i32, %c0_i32_0 : i32, i32
  }
  func.func @transform_2(%arg0: i32) -> (i32, i32) {
    %c0_i32 = arith.constant 0 : i32
    %c0_i32_0 = arith.constant 0 : i32
    %c0_i32_1 = arith.constant 0 : i32
    return %c0_i32, %c0_i32_0 : i32, i32
  }
  func.func @transform_3(%arg0: i32) -> (i32, i32) {
    %c0_i32 = arith.constant 0 : i32
    %c0_i32_0 = arith.constant 0 : i32
    %c0_i32_1 = arith.constant 0 : i32
    return %c0_i32, %c0_i32_0 : i32, i32
  }
  func.func @transform_4(%arg0: i32) -> (i32, i32) {
    %c0_i32 = arith.constant 0 : i32
    %c0_i32_0 = arith.constant 0 : i32
    %c0_i32_1 = arith.constant 0 : i32
    return %c0_i32, %c0_i32_0 : i32, i32
  }
  func.func @transform_5(%arg0: i32) -> (i32, i32) {
    %c0_i32 = arith.constant 0 : i32
    %c0_i32_0 = arith.constant 0 : i32
    %c0_i32_1 = arith.constant 0 : i32
    return %c0_i32, %c0_i32_0 : i32, i32
  }
  func.func @transform_6(%arg0: i32) -> (i32, i32) {
    %c0_i32 = arith.constant 0 : i32
    %c0_i32_0 = arith.constant 0 : i32
    %c0_i32_1 = arith.constant 0 : i32
    return %c0_i32, %c0_i32_0 : i32, i32
  }
  func.func @transform_7(%arg0: i32) -> (i32, i32) {
    %c0_i32 = arith.constant 0 : i32
    %c0_i32_0 = arith.constant 0 : i32
    %c0_i32_1 = arith.constant 0 : i32
    return %c0_i32, %c0_i32_0 : i32, i32
  }
  func.func @transform_8(%arg0: i32) -> (i32, i32) {
    %c0_i32 = arith.constant 0 : i32
    %c0_i32_0 = arith.constant 0 : i32
    %c0_i32_1 = arith.constant 0 : i32
    return %c0_i32, %c0_i32_0 : i32, i32
  }
  func.func @transform_9(%arg0: i32) -> (i32, i32) {
    %c0_i32 = arith.constant 0 : i32
    %c0_i32_0 = arith.constant 0 : i32
    %c0_i32_1 = arith.constant 0 : i32
    return %c0_i32, %c0_i32_0 : i32, i32
  }
  func.func @transform_10(%arg0: i32) -> (i32, i32) {
    %c0_i32 = arith.constant 0 : i32
    %c0_i32_0 = arith.constant 0 : i32
    %c0_i32_1 = arith.constant 0 : i32
    return %c0_i32, %c0_i32_0 : i32, i32
  }
  func.func @transform_11(%arg0: i32) -> (i32, i32) {
    %c0_i32 = arith.constant 0 : i32
    %c0_i32_0 = arith.constant 0 : i32
    %c0_i32_1 = arith.constant 0 : i32
    return %c0_i32, %c0_i32_0 : i32, i32
  }
  func.func @transform_12(%arg0: i32) -> (i32, i32) {
    %c0_i32 = arith.constant 0 : i32
    %c0_i32_0 = arith.constant 0 : i32
    %c0_i32_1 = arith.constant 0 : i32
    return %c0_i32, %c0_i32_0 : i32, i32
  }
  func.func @transform_13(%arg0: i32) -> (i32, i32) {
    %c0_i32 = arith.constant 0 : i32
    %c0_i32_0 = arith.constant 0 : i32
    %c0_i32_1 = arith.constant 0 : i32
    return %c0_i32, %c0_i32_0 : i32, i32
  }
  func.func @transform_14(%arg0: i32) -> (i32, i32) {
    %c0_i32 = arith.constant 0 : i32
    %c0_i32_0 = arith.constant 0 : i32
    %c0_i32_1 = arith.constant 0 : i32
    return %c0_i32, %c0_i32_0 : i32, i32
  }
  func.func @transform_15(%arg0: i32) -> (i32, i32) {
    %c0_i32 = arith.constant 0 : i32
    %c0_i32_0 = arith.constant 0 : i32
    %c0_i32_1 = arith.constant 0 : i32
    return %c0_i32, %c0_i32_0 : i32, i32
  }
  func.func @transform_16(%arg0: i32) -> (i32, i32) {
    %c0_i32 = arith.constant 0 : i32
    %c0_i32_0 = arith.constant 0 : i32
    %c0_i32_1 = arith.constant 0 : i32
    return %c0_i32, %c0_i32_0 : i32, i32
  }
  func.func @transform_17(%arg0: i32) -> (i32, i32) {
    %c0_i32 = arith.constant 0 : i32
    %c0_i32_0 = arith.constant 0 : i32
    %c0_i32_1 = arith.constant 0 : i32
    return %c0_i32, %c0_i32_0 : i32, i32
  }
  func.func @transform_18(%arg0: i32) -> (i32, i32) {
    %c0_i32 = arith.constant 0 : i32
    %c0_i32_0 = arith.constant 0 : i32
    %c0_i32_1 = arith.constant 0 : i32
    return %c0_i32, %c0_i32_0 : i32, i32
  }
  func.func @transform_19(%arg0: i32) -> (i32, i32) {
    %c0_i32 = arith.constant 0 : i32
    %c0_i32_0 = arith.constant 0 : i32
    %c0_i32_1 = arith.constant 0 : i32
    return %c0_i32, %c0_i32_0 : i32, i32
  }
  func.func @transform_20(%arg0: i32) -> (i32, i32) {
    %c0_i32 = arith.constant 0 : i32
    %c0_i32_0 = arith.constant 0 : i32
    %c0_i32_1 = arith.constant 0 : i32
    return %c0_i32, %c0_i32_0 : i32, i32
  }
  func.func @transform_21(%arg0: i32) -> (i32, i32) {
    %c0_i32 = arith.constant 0 : i32
    %c0_i32_0 = arith.constant 0 : i32
    %c0_i32_1 = arith.constant 0 : i32
    return %c0_i32, %c0_i32_0 : i32, i32
  }
  func.func @transform_22(%arg0: i32) -> (i32, i32) {
    %c0_i32 = arith.constant 0 : i32
    %c0_i32_0 = arith.constant 0 : i32
    %c0_i32_1 = arith.constant 0 : i32
    return %c0_i32, %c0_i32_0 : i32, i32
  }
  func.func @transform_23(%arg0: i32) -> (i32, i32) {
    %c0_i32 = arith.constant 0 : i32
    %c0_i32_0 = arith.constant 0 : i32
    %c0_i32_1 = arith.constant 0 : i32
    return %c0_i32, %c0_i32_0 : i32, i32
  }
  func.func @transform_24(%arg0: i32) -> (i32, i32) {
    %c0_i32 = arith.constant 0 : i32
    %c0_i32_0 = arith.constant 0 : i32
    %c0_i32_1 = arith.constant 0 : i32
    return %c0_i32, %c0_i32_0 : i32, i32
  }
  func.func @transform_25(%arg0: i32) -> (i32, i32) {
    %c0_i32 = arith.constant 0 : i32
    %c0_i32_0 = arith.constant 0 : i32
    %c0_i32_1 = arith.constant 0 : i32
    return %c0_i32, %c0_i32_0 : i32, i32
  }
  func.func @transform_26(%arg0: i32) -> (i32, i32) {
    %c0_i32 = arith.constant 0 : i32
    %c0_i32_0 = arith.constant 0 : i32
    %c0_i32_1 = arith.constant 0 : i32
    return %c0_i32, %c0_i32_0 : i32, i32
  }
  func.func @transform_27(%arg0: i32) -> (i32, i32) {
    %c0_i32 = arith.constant 0 : i32
    %c0_i32_0 = arith.constant 0 : i32
    %c0_i32_1 = arith.constant 0 : i32
    return %c0_i32, %c0_i32_0 : i32, i32
  }
  func.func @transform_28(%arg0: i32) -> (i32, i32) {
    %c0_i32 = arith.constant 0 : i32
    %c0_i32_0 = arith.constant 0 : i32
    %c0_i32_1 = arith.constant 0 : i32
    return %c0_i32, %c0_i32_0 : i32, i32
  }
  func.func @transform_29(%arg0: i32) -> (i32, i32) {
    %c0_i32 = arith.constant 0 : i32
    %c0_i32_0 = arith.constant 0 : i32
    %c0_i32_1 = arith.constant 0 : i32
    return %c0_i32, %c0_i32_0 : i32, i32
  }
  func.func @transform_30(%arg0: i32) -> (i32, i32) {
    %c0_i32 = arith.constant 0 : i32
    %c0_i32_0 = arith.constant 0 : i32
    %c0_i32_1 = arith.constant 0 : i32
    return %c0_i32, %c0_i32_0 : i32, i32
  }
  func.func @transform_31(%arg0: i32) -> (i32, i32, i32) {
    %c0_i32 = arith.constant 0 : i32
    %c0_i32_0 = arith.constant 0 : i32
    %c0_i32_1 = arith.constant 0 : i32
    return %arg0, %c0_i32, %c0_i32_0 : i32, i32, i32
  }
}

</mosaic_0001>

<bundles_post_ra>
// kernel: tpu_custom_call.1
= control target key start
LH: loop header
LB: loop body
LE: loop exit
PB: predicated region body
PF: predicated region fallthrough
CT: control target
= control target key end

     0   :  { %s4555_s6 = smov 1   ;;  %s4556_s10 = smov 2   ;;  %s5627_s0 = inlined_call_operand.smem [shape: u32[32], index: -1, kind: input, shape index: {}] }
   0x1   :  { %s4623_s5 = sld [smem:[%s5627_s0]]   ;;  %s4557_s14 = smov 3  }
   0x2   :  { %s4628_s9 = sld [smem:[%s5627_s0 + %s4555_s6]]   ;;  %s4558_s18 = smov 4  }
   0x3   :  { %s4633_s13 = sld [smem:[%s5627_s0 + %s4556_s10]]   ;;  %s4559_s22 = smov 5  }
   0x4   :  { %s4638_s17 = sld [smem:[%s5627_s0 + %s4557_s14]]   ;;  %s4560_s26 = smov 6  }
   0x5   :  { %s4643_s21 = sld [smem:[%s5627_s0 + %s4558_s18]]   ;;  %s4561_s30 = smov 7  }
   0x6   :  { %s4648_s25 = sld [smem:[%s5627_s0 + %s4559_s22]]   ;;  %s4562_s4 = smov 8  }
   0x7   :  { %5654 = sst [smem:[#allocation27_spill]] %s4623_s5  ;;  %s4563_s10 = smov 9  }
   0x8   :  { %5655 = sst [smem:[#allocation28_spill]] %s4628_s9  ;;  %s4564_s15 = smov 10  }
   0x9   :  { %s4653_s29 = sld [smem:[%s5627_s0 + %s4560_s26]]   ;;  %s4565_s20 = smov 11  }
   0xa   :  { %s4658_s3 = sld [smem:[%s5627_s0 + %s4561_s30]]   ;;  %s4566_s26 = smov 12  }
   0xb   :  { %s4663_s8 = sld [smem:[%s5627_s0 + %s4562_s4]]   ;;  %s4567_s1 = smov 13  }
   0xc   :  { %s4668_s14 = sld [smem:[%s5627_s0 + %s4563_s10]]   ;;  %s4568_s7 = smov 14  }
   0xd   :  { %s4673_s19 = sld [smem:[%s5627_s0 + %s4564_s15]]   ;;  %s4569_s15 = smov 15  }
   0xe   :  { %s4678_s24 = sld [smem:[%s5627_s0 + %s4565_s20]]   ;;  %s4570_s22 = smov 16  }
   0xf   :  { %s4683_s30 = sld [smem:[%s5627_s0 + %s4566_s26]]   ;;  %s4571_s28 = smov 17  }
  0x10   :  { %5656 = sst [smem:[#allocation29_spill]] %s4658_s3 }
  0x11   :  { %5657 = sst [smem:[#allocation30_spill]] %s4663_s8 }
  0x12   :  { %s4688_s6 = sld [smem:[%s5627_s0 + %s4567_s1]]  }
  0x13   :  { %s4693_s12 = sld [smem:[%s5627_s0 + %s4568_s7]]   ;;  %s4572_s7 = smov 18  }
  0x14   :  { %5658 = sst [smem:[#allocation31_spill]] %s4678_s24 }
  0x15   :  { %s4698_s20 = sld [smem:[%s5627_s0 + %s4569_s15]]   ;;  %s4573_s15 = smov 19  }
  0x16   :  { %s4703_s27 = sld [smem:[%s5627_s0 + %s4570_s22]]   ;;  %s4574_s22 = smov 20  }
  0x17   :  { %s4708_s4 = sld [smem:[%s5627_s0 + %s4571_s28]]   ;;  %s4575_s28 = smov 21  }
  0x18   :  { %5659 = sst [smem:[#allocation32_spill]] %s4688_s6 }
  0x19   :  { %s4713_s6 = sld [smem:[%s5627_s0 + %s4572_s7]]   ;;  %s4576_s7 = smov 22  }
  0x1a   :  { %s4723_s24 = sld [smem:[%s5627_s0 + %s4574_s22]]   ;;  %s4578_s22 = smov 24  }
  0x1b   :  { %5660 = sst [smem:[#allocation33_spill]] %s4698_s20 }
  0x1c   :  { %s4718_s20 = sld [smem:[%s5627_s0 + %s4573_s15]]   ;;  %s4577_s15 = smov 23  }
  0x1d   :  { %5661 = sst [smem:[#allocation34_spill]] %s4708_s4 }
  0x1e   :  { %s4728_s4 = sld [smem:[%s5627_s0 + %s4575_s28]]   ;;  %s4579_s28 = smov 25  }
  0x1f   :  { %5662 = sst [smem:[#allocation35_spill]] %s4713_s6 }
  0x20   :  { %5664 = sst [smem:[#allocation37_spill]] %s4723_s24 }
  0x21   :  { %s4733_s6 = sld [smem:[%s5627_s0 + %s4576_s7]]   ;;  %s4580_s7 = smov 26  }
  0x22   :  { %5663 = sst [smem:[#allocation36_spill]] %s4718_s20 }
  0x23   :  { %s4738_s20 = sld [smem:[%s5627_s0 + %s4577_s15]]   ;;  %s4581_s15 = smov 27  }
  0x24   :  { %5665 = sst [smem:[#allocation38_spill]] %s4728_s4 }
  0x25   :  { %s4743_s24 = sld [smem:[%s5627_s0 + %s4578_s22]]   ;;  %s4582_s22 = smov 28  }
  0x26   :  { %s4748_s4 = sld [smem:[%s5627_s0 + %s4579_s28]]   ;;  %s4583_s28 = smov 29  }
  0x27   :  { %5666 = sst [smem:[#allocation39_spill]] %s4733_s6 }
  0x28   :  { %s4753_s6 = sld [smem:[%s5627_s0 + %s4580_s7]]   ;;  %s4584_s7 = smov 30  }
  0x29   :  { %5667 = sst [smem:[#allocation40_spill]] %s4738_s20 }
  0x2a   :  { %s4758_s20 = sld [smem:[%s5627_s0 + %s4581_s15]]   ;;  %s4585_s15 = smov 31  }
  0x2b   :  { %5668 = sst [smem:[#allocation41_spill]] %s4743_s24 }
  0x2c   :  { %5669 = sst [smem:[#allocation42_spill]] %s4748_s4 }
  0x2d   :  { %s4763_s24 = sld [smem:[%s5627_s0 + %s4582_s22]]  }
  0x2e   :  { %5670 = sst [smem:[#allocation43_spill]] %s4753_s6 }
  0x2f   :  { %s4768_s4 = sld [smem:[%s5627_s0 + %s4583_s28]]  }
  0x30   :  { %5671 = sst [smem:[#allocation44_spill]] %s4758_s20 }
  0x31   :  { %s4773_s6 = sld [smem:[%s5627_s0 + %s4584_s7]]  }
  0x32   :  { %s4778_s20 = sld [smem:[%s5627_s0 + %s4585_s15]]  }
  0x35   :  { %5672 = sst [smem:[#allocation45_spill]] %s4768_s4 }
  0x37   :  { %5673 = sst [smem:[#allocation46_spill]] %s4773_s6 }
  0x38   :  { %5674 = sst [smem:[#allocation47_spill]] %s4778_s20 }
  0x39   :  { %68 = vsyncpa [#allocation3], 0 }
  0x3a   :  { %69 = vsyncpa [#allocation6], 0 }
  0x3b   :  { %70 = vsyncpa [#allocation9], 0 }
  0x3c   :  { %71 = vsyncpa [#allocation12], 0 }
  0x3d   :  { %72 = vsyncpa [#allocation15], 0 }
  0x3e   :  { %73 = vsyncpa [#allocation18], 0 }
  0x3f   :  { %74 = vsyncpa [#allocation4], 0 }
  0x40   :  { %76 = vsyncpa [#allocation4 + $0x1], 0  ;;  %s4780_s22 = smov 0   ;;  %s4782_s23 = smov 0  }
  0x41   :  { %s4784_s26 = smov 0   ;;  %s4786_s28 = smov 0  }
  0x42 LB: > { %s5675_s9 = sld [smem:[#allocation28_spill]]  ;;  %s4801_s0 = sadd.s32 4294967295, %s4553_s28   ;;  %s4553_s28 = sphi %s4786_s28, %s5721_s28   ;;  %s4549_s26 = sphi %s4784_s26, %s5723_s26   ;;  %s4545_s23 = sphi %s4782_s23, %s5725_s23   ;;  %s4541_s22 = sphi %s4780_s22, %s5724_s22  }
  0x43   : > { %s5676_s4 = sld [smem:[#allocation45_spill]]  ;;  %s3575_s1 = sadd.s32 4294967294, %s4553_s28  }
  0x44   : > { %s5677_s3 = sld [smem:[#allocation29_spill]]  ;;  %s4805_s2 = sadd.s32 1, %s4553_s28  }
  0x45   : > { %s5678_s8 = sld [smem:[#allocation30_spill]]  ;;  %s745_s7 = sadd.s32 1, %s4549_s26 }
  0x46   : > { %5679 = sst [smem:[#allocation48_spill]] %s4541_s22  ;;  %s742_s10 = ssub.s32 %s4553_s28, %s4805_s2 }
  0x47   : > { %5680 = sst [smem:[#allocation49_spill]] %s4549_s26  ;;  %p755_p0 = scmp.ne.s32.totalorder %s4549_s26, %s4545_s23 }
  0x48   : > { %5681 = sst [smem:[#allocation50_spill]] %s4553_s28  ;;  %p743_p1 = scmp.eq.s32.totalorder %s742_s10, 0 }
  0x49   : > { %5682 = sst [smem:[#allocation51_spill]] %s4805_s2  ;;  %p756_p2 = scmp.eq.s32.totalorder %s4801_s0, 1 }
  0x4a   : > { %p761_p3 = scmp.ne.s32.totalorder %s4545_s23, %s4541_s22  ;;  %p762_p4 = scmp.eq.s32.totalorder %s3575_s1, 1 }
  0x4b   : > { %s4816_s11 = scalar_select %p743_p1, %s4549_s26, %s745_s7  }
  0x4c   : > { %p4818_p5 = por %p756_p2, %p755_p0  ;;  %p4822_p6 = por %p762_p4, %p761_p3 }
  0x4d   : > { %5683 = sst [smem:[#allocation52_spill]] %s4816_s11  ;;  %p3576_p7 = scmp.ge.s32.totalorder %s4553_s28, 1 }
  0x4e   : > { %s5684_s15 = scalar_select %p4818_p5, 1, 0 }
  0x4f   : > { %s5686_s16 = scalar_select %p4822_p6, 1, 0 }
  0x50   : > { %5685 = sst [smem:[#allocation53_spill]] %s5684_s15  ;;  %p769_p8 = scmp.lt.s32.totalorder %s4553_s28, 3 }
  0x51   : > { %5687 = sst [smem:[#allocation54_spill]] %s5686_s16  ;;  %p3940_p9 = scmp.eq.s32.totalorder %s4801_s0, 0 }
  0x52   : > { %p4829_p10 = pnand %p3576_p7, %p769_p8  ;;  %s795_s1 = sshll.u32 %s4633_s13, 4  ;;  %s796_s1 = int_to_ptr.hbm [resolvable:$true] %s795_s1 }
  0x53   : > { %s4586_s7 = smov [#allocation5]   ;;  %s822_s11 = sshll.u32 %s4648_s25, 4  ;;  %s4843_s11 = int_to_ptr.hbm [resolvable:$true] %s822_s11 }
  0x54   : > { %p3905_p11 = pneg %p4829_p10  ;;  %s797_s10 = sshll.u32 %s4586_s7, 4  ;;  %s798_s10 = int_to_ptr.vmem [resolvable:$true] %s797_s10 }
  0x55   : > { %s849_s2 = sshll.u32 %s5678_s8, 4  ;;  %s4587_s16 = smov [#allocation8]   ;;  %s4861_s2 = int_to_ptr.hbm [resolvable:$true] %s849_s2 }
  0x56   : > { %p4839_p12 = pnand %p3940_p9, %p3905_p11  ;;  %s4846_s22 = sshll.u32 %s4587_s16, 4  ;;  %s825_s22 = int_to_ptr.vmem [resolvable:$true] %s4846_s22 }
  0x57   : > { %s4167_s28 = sshra.s32 %s796_s1, 4  ;;  %s4174_s20 = scalar_lea.hbm %s4633_s13, 1  ;;  %s4168_s28 = int_to_ptr.hbm [resolvable:$true] %s4167_s28 }
  0x58   : > { %s4169_s15 = scalar_lea.hbm %s4168_s28, 1  ;;  %p4850_p0 = pneg %p4839_p12 }
  0x59   : > { %p4170_p13 = scmp.ne.s32.totalorder %s4168_s28, %s4169_s15  ;;  %p4175_p3 = scmp.lt.s32.totalorder %s4168_s28, %s4633_s13 }
  0x5a   : > { %p4176_p4 = scmp.lt.s32.totalorder %s4174_s20, %s4169_s15 }
  0x5b   : > { %p4172_p1 = pnand %p4850_p0, %p4170_p13 }
  0x5c   : > { %p4177_p7 = por %p4176_p4, %p4175_p3 }
  0x5d   : > { %p4173_p2 = pneg %p4172_p1 }
  0x5f   : > { %p4178_p8 = pnand %p4177_p7, %p4173_p2 }
  0x61   : > { %4181 = shalt.err (!%p4178_p8)
}
  0x62   : > { %3911 = dma.hbm_to_vmem [thread:$0]  (!%p4839_p12), %s796_s1, 16, %s798_s10, [#allocation6]  }
  0x63   : > { %s4197_s16 = sshra.s32 %s4843_s11, 4  ;;  %s4204_s20 = scalar_lea.hbm %s4648_s25, 1  ;;  %s4198_s16 = int_to_ptr.hbm [resolvable:$true] %s4197_s16 }
  0x64   : > { %s4199_s6 = scalar_lea.hbm %s4198_s16, 1  ;;  %p4205_p2 = scmp.lt.s32.totalorder %s4198_s16, %s4648_s25 }
  0x65   : > { %p4200_p11 = scmp.ne.s32.totalorder %s4198_s16, %s4199_s6  ;;  %p4206_p3 = scmp.lt.s32.totalorder %s4204_s20, %s4199_s6 }
  0x67   : > { %p4202_p13 = pnand %p4200_p11, %p4850_p0  ;;  %p4207_p4 = por %p4206_p3, %p4205_p2 }
  0x69   : > { %p4203_p1 = pneg %p4202_p13 }
  0x6b   : > { %p4208_p7 = pnand %p4207_p4, %p4203_p1 }
  0x6d   : > { %4211 = shalt.err (!%p4208_p7)
}
  0x6e   : > { %3917 = dma.hbm_to_vmem [thread:$0]  (!%p4839_p12), %s4843_s11, 16, %s825_s22, [#allocation9]  }
  0x6f   : > { %s879_s28 = sshll.u32 %s4683_s30, 4  ;;  %s4588_s15 = smov [#allocation11]   ;;  %s4872_s28 = int_to_ptr.hbm [resolvable:$true] %s879_s28 }
  0x70   : > { %s851_s1 = sshll.u32 %s4588_s15, 4  ;;  %s4227_s10 = sshra.s32 %s4861_s2, 4  ;;  %s852_s1 = int_to_ptr.vmem [resolvable:$true] %s851_s1  ;;  %s4228_s10 = int_to_ptr.hbm [resolvable:$true] %s4227_s10 }
  0x71   : > { %s4229_s6 = scalar_lea.hbm %s4228_s10, 1  ;;  %s4234_s16 = scalar_lea.hbm %s5678_s8, 1 }
  0x72   : > { %p4230_p8 = scmp.ne.s32.totalorder %s4228_s10, %s4229_s6  ;;  %p4235_p1 = scmp.lt.s32.totalorder %s4228_s10, %s5678_s8 }
  0x73   : > { %p4236_p2 = scmp.lt.s32.totalorder %s4234_s16, %s4229_s6 }
  0x74   : > { %p4232_p11 = pnand %p4230_p8, %p4850_p0 }
  0x75   : > { %p4237_p3 = por %p4236_p2, %p4235_p1 }
  0x76   : > { %p4233_p13 = pneg %p4232_p11 }
  0x78   : > { %p4238_p4 = pnand %p4237_p3, %p4233_p13 }
  0x7a   : > { %4241 = shalt.err (!%p4238_p4)
}
  0x7b   : > { %3923 = dma.hbm_to_vmem [thread:$0]  (!%p4839_p12), %s4861_s2, 16, %s852_s1, [#allocation12]  }
  0x7c   : > { %s4589_s22 = smov [#allocation14]   ;;  %s780_s20 = sshll.u32 %s5675_s9, 4  ;;  %s4883_s20 = int_to_ptr.hbm [resolvable:$true] %s780_s20 }
  0x7d   : > { %s881_s11 = sshll.u32 %s4589_s22, 4  ;;  %s4257_s15 = sshra.s32 %s4872_s28, 4  ;;  %s882_s11 = int_to_ptr.vmem [resolvable:$true] %s881_s11  ;;  %s4258_s15 = int_to_ptr.hbm [resolvable:$true] %s4257_s15 }
  0x7e   : > { %s4259_s10 = scalar_lea.hbm %s4258_s15, 1  ;;  %s4264_s6 = scalar_lea.hbm %s4683_s30, 1 }
  0x7f   : > { %p4260_p7 = scmp.ne.s32.totalorder %s4258_s15, %s4259_s10  ;;  %p4265_p13 = scmp.lt.s32.totalorder %s4258_s15, %s4683_s30 }
  0x80   : > { %p4266_p1 = scmp.lt.s32.totalorder %s4264_s6, %s4259_s10 }
  0x81   : > { %p4262_p8 = pnand %p4260_p7, %p4850_p0 }
  0x82   : > { %p4267_p2 = por %p4266_p1, %p4265_p13 }
  0x83   : > { %p4263_p11 = pneg %p4262_p8 }
  0x85   : > { %p4268_p3 = pnand %p4267_p2, %p4263_p11 }
  0x87   : > { %4271 = shalt.err (!%p4268_p3)
}
  0x88   : > { %3929 = dma.hbm_to_vmem [thread:$0]  (!%p4839_p12), %s4872_s28, 16, %s882_s11, [#allocation15]  }
  0x89   : > { %s4590_s2 = smov [#allocation2]   ;;  %s810_s16 = sshll.u32 %s4643_s21, 4  ;;  %s811_s16 = int_to_ptr.hbm [resolvable:$true] %s810_s16 }
  0x8a   : > { %s782_s1 = sshll.u32 %s4590_s2, 4  ;;  %s4287_s22 = sshra.s32 %s4883_s20, 4  ;;  %s783_s1 = int_to_ptr.vmem [resolvable:$true] %s782_s1  ;;  %s4288_s22 = int_to_ptr.hbm [resolvable:$true] %s4287_s22 }
  0x8b   : > { %s4289_s15 = scalar_lea.hbm %s4288_s22, 16  ;;  %s4294_s10 = scalar_lea.hbm %s5675_s9, 16 }
  0x8c   : > { %p4290_p4 = scmp.ne.s32.totalorder %s4288_s22, %s4289_s15  ;;  %p4295_p11 = scmp.lt.s32.totalorder %s4288_s22, %s5675_s9 }
  0x8d   : > { %p4296_p13 = scmp.lt.s32.totalorder %s4294_s10, %s4289_s15 }
  0x8e   : > { %p4292_p7 = pnand %p4290_p4, %p4850_p0 }
  0x8f   : > { %p4297_p1 = por %p4296_p13, %p4295_p11 }
  0x90   : > { %p4293_p8 = pneg %p4292_p7 }
  0x92   : > { %p4298_p2 = pnand %p4297_p1, %p4293_p8 }
  0x94   : > { %4301 = shalt.err (!%p4298_p2)
}
  0x95   : > { %s4591_s6 = smov 128   ;;  %s4592_s28 = smov 8  }
  0x96   : > { %3908 = dma.hbm_to_vmem [thread:$0]  (!%p4839_p12), %s4883_s20, 256, %s783_s1, [#allocation3], %s4591_s6, %s4591_s6, %s4592_s28  }
  0x97   : > { %s4593_s11 = smov [#allocation7]   ;;  %s834_s8 = sshll.u32 %s4653_s29, 4  ;;  %s4903_s8 = int_to_ptr.hbm [resolvable:$true] %s834_s8 }
  0x98   : > { %s812_s2 = sshll.u32 %s4593_s11, 4  ;;  %s4317_s22 = sshra.s32 %s811_s16, 4  ;;  %s813_s2 = int_to_ptr.vmem [resolvable:$true] %s812_s2  ;;  %s4318_s22 = int_to_ptr.hbm [resolvable:$true] %s4317_s22 }
  0x99   : > { %s4319_s15 = scalar_lea.hbm %s4318_s22, 4  ;;  %s4324_s10 = scalar_lea.hbm %s4643_s21, 4 }
  0x9a   : > { %p4320_p3 = scmp.ne.s32.totalorder %s4318_s22, %s4319_s15  ;;  %p4325_p8 = scmp.lt.s32.totalorder %s4318_s22, %s4643_s21 }
  0x9b   : > { %p4326_p11 = scmp.lt.s32.totalorder %s4324_s10, %s4319_s15 }
  0x9c   : > { %p4322_p4 = pnand %p4320_p3, %p4850_p0 }
  0x9d   : > { %p4327_p13 = por %p4326_p11, %p4325_p8 }
  0x9e   : > { %p4323_p7 = pneg %p4322_p4 }
  0xa0   : > { %p4328_p1 = pnand %p4327_p13, %p4323_p7 }
  0xa2   : > { %4331 = shalt.err (!%p4328_p1)
}
  0xa3   : > { %3914 = dma.hbm_to_vmem [thread:$0]  (!%p4839_p12), %s811_s16, 64, %s813_s2, [#allocation6]  }
  0xa4   : > { %s864_s20 = sshll.u32 %s4673_s19, 4  ;;  %s4594_s1 = smov [#allocation10]   ;;  %s4912_s20 = int_to_ptr.hbm [resolvable:$true] %s864_s20 }
  0xa5   : > { %s836_s6 = sshll.u32 %s4594_s1, 4  ;;  %s4347_s28 = sshra.s32 %s4903_s8, 4  ;;  %s837_s6 = int_to_ptr.vmem [resolvable:$true] %s836_s6  ;;  %s4348_s28 = int_to_ptr.hbm [resolvable:$true] %s4347_s28 }
  0xa6   : > { %s4349_s11 = scalar_lea.hbm %s4348_s28, 1  ;;  %s4354_s22 = scalar_lea.hbm %s4653_s29, 1 }
  0xa7   : > { %p4350_p2 = scmp.ne.s32.totalorder %s4348_s28, %s4349_s11  ;;  %p4355_p7 = scmp.lt.s32.totalorder %s4348_s28, %s4653_s29 }
  0xa8   : > { %p4356_p8 = scmp.lt.s32.totalorder %s4354_s22, %s4349_s11 }
  0xa9   : > { %p4352_p3 = pnand %p4350_p2, %p4850_p0 }
  0xaa   : > { %p4357_p11 = por %p4356_p8, %p4355_p7 }
  0xab   : > { %p4353_p4 = pneg %p4352_p3 }
  0xad   : > { %p4358_p13 = pnand %p4357_p11, %p4353_p4 }
  0xaf   : > { %4361 = shalt.err (!%p4358_p13)
}
  0xb0   : > { %3920 = dma.hbm_to_vmem [thread:$0]  (!%p4839_p12), %s4903_s8, 16, %s837_s6, [#allocation9]  }
  0xb1   : > { %s4595_s16 = smov [#allocation13]   ;;  %s894_s15 = sshll.u32 %s4693_s12, 4  ;;  %s4923_s15 = int_to_ptr.hbm [resolvable:$true] %s894_s15 }
  0xb2   : > { %s866_s2 = sshll.u32 %s4595_s16, 4  ;;  %s4377_s10 = sshra.s32 %s4912_s20, 4  ;;  %s867_s2 = int_to_ptr.vmem [resolvable:$true] %s866_s2  ;;  %s4378_s10 = int_to_ptr.hbm [resolvable:$true] %s4377_s10 }
  0xb3   : > { %s4379_s1 = scalar_lea.hbm %s4378_s10, 1  ;;  %s4384_s28 = scalar_lea.hbm %s4673_s19, 1 }
  0xb4   : > { %p4380_p1 = scmp.ne.s32.totalorder %s4378_s10, %s4379_s1  ;;  %p4385_p4 = scmp.lt.s32.totalorder %s4378_s10, %s4673_s19 }
  0xb5   : > { %p4386_p7 = scmp.lt.s32.totalorder %s4384_s28, %s4379_s1 }
  0xb6   : > { %p4382_p2 = pnand %p4380_p1, %p4850_p0 }
  0xb7   : > { %p4387_p8 = por %p4386_p7, %p4385_p4 }
  0xb8   : > { %p4383_p3 = pneg %p4382_p2 }
  0xba   : > { %p4388_p11 = pnand %p4387_p8, %p4383_p3 }
  0xbc   : > { %4391 = shalt.err (!%p4388_p11)
}
  0xbd   : > { %3926 = dma.hbm_to_vmem [thread:$0]  (!%p4839_p12), %s4912_s20, 16, %s867_s2, [#allocation12]  }
  0xbe   : > { %s909_s8 = sshll.u32 %s4703_s27, 4  ;;  %s4596_s6 = smov [#allocation16]   ;;  %s4934_s8 = int_to_ptr.hbm [resolvable:$true] %s909_s8 }
  0xbf   : > { %s896_s11 = sshll.u32 %s4596_s6, 4  ;;  %s4407_s22 = sshra.s32 %s4923_s15, 4  ;;  %s897_s11 = int_to_ptr.vmem [resolvable:$true] %s896_s11  ;;  %s4408_s22 = int_to_ptr.hbm [resolvable:$true] %s4407_s22 }
  0xc0   : > { %s4409_s16 = scalar_lea.hbm %s4408_s22, 1  ;;  %s4414_s10 = scalar_lea.hbm %s4693_s12, 1 }
  0xc1   : > { %p4410_p13 = scmp.ne.s32.totalorder %s4408_s22, %s4409_s16  ;;  %p4415_p3 = scmp.lt.s32.totalorder %s4408_s22, %s4693_s12 }
  0xc2   : > { %p4416_p4 = scmp.lt.s32.totalorder %s4414_s10, %s4409_s16 }
  0xc3   : > { %p4412_p1 = pnand %p4410_p13, %p4850_p0 }
  0xc4   : > { %p4417_p7 = por %p4416_p4, %p4415_p3 }
  0xc5   : > { %p4413_p2 = pneg %p4412_p1 }
  0xc7   : > { %p4418_p8 = pnand %p4417_p7, %p4413_p2 }
  0xc9   : > { %4421 = shalt.err (!%p4418_p8)
}
  0xca   : > { %3932 = dma.hbm_to_vmem [thread:$0]  (!%p4839_p12), %s4923_s15, 16, %s897_s11, [#allocation15]  }
  0xcb   : > { %s4597_s20 = smov [#allocation17]   ;;  %s4437_s1 = sshra.s32 %s4934_s8, 4  ;;  %s4438_s1 = int_to_ptr.hbm [resolvable:$true] %s4437_s1 }
  0xcc   : > { %s911_s2 = sshll.u32 %s4597_s20, 4  ;;  %s4439_s28 = scalar_lea.hbm %s4438_s1, 1  ;;  %s912_s2 = int_to_ptr.vmem [resolvable:$true] %s911_s2 }
  0xcd   : > { %p4440_p11 = scmp.ne.s32.totalorder %s4438_s1, %s4439_s28  ;;  %s4444_s6 = scalar_lea.hbm %s4703_s27, 1 }
  0xce   : > { %p4445_p2 = scmp.lt.s32.totalorder %s4438_s1, %s4703_s27  ;;  %p4446_p3 = scmp.lt.s32.totalorder %s4444_s6, %s4439_s28 }
  0xcf   : > { %p4442_p13 = pnand %p4440_p11, %p4850_p0 }
  0xd0   : > { %p4447_p4 = por %p4446_p3, %p4445_p2 }
  0xd1   : > { %p4443_p1 = pneg %p4442_p13 }
  0xd3   : > { %p4448_p7 = pnand %p4447_p4, %p4443_p1 }
  0xd5   : > { %4451 = shalt.err (!%p4448_p7)
}
  0xd6   : > { %3935 = dma.hbm_to_vmem [thread:$0]  (!%p4839_p12), %s4934_s8, 16, %s912_s2, [#allocation18]  }
  0xd7   : > { %974 = sbr.rel (%p4829_p10) target bundleno = 2749 (0xabd), region = 144 }
  0xdc   : > { %4512 = dma.done.wait (%p3940_p9), [#allocation3], 256  }
  0xdd   : > { %4514 = vsyncadd (%p3940_p9), [#allocation3], 4294967040 }
  0xde   : > { %4516 = dma.done.wait (%p3940_p9), [#allocation6], 80  }
  0xdf   : > { %4518 = vsyncadd (%p3940_p9), [#allocation6], 4294967216 }
  0xe0   : > { %4520 = dma.done.wait (%p3940_p9), [#allocation9], 32  }
  0xe1   : > { %4522 = vsyncadd (%p3940_p9), [#allocation9], 4294967264 }
  0xe2   : > { %4524 = dma.done.wait (%p3940_p9), [#allocation12], 32  }
  0xe3   : > { %4526 = vsyncadd (%p3940_p9), [#allocation12], 4294967264 }
  0xe4   : > { %4528 = dma.done.wait (%p3940_p9), [#allocation15], 32  }
  0xe5   : > { %4530 = vsyncadd (%p3940_p9), [#allocation15], 4294967264 }
  0xe6   : > { %4532 = dma.done.wait (%p3940_p9), [#allocation18], 16  }
  0xe7   : > { %4534 = vsyncadd (%p3940_p9), [#allocation18], 4294967280  ;;  %s5691_s5 = sld [smem:[#allocation27_spill]]  ;;  %p1100_p10 = scmp.lt.s32.totalorder %s4801_s0, 1  ;;  %v1115_v0 = vld [vmem:[%s4638_s17 + $0x38] sm:$0xff]  ;;  %v1114_v1 = vld [vmem:[%s4638_s17 + $0x30] sm:$0xff]  ;;  %v1244_v12 = vlaneseq }
  0xe8   : > { %1131 = vmatpush.msra.mxu0 %v1115_v0  ;;  %1162 = vmatpush.msra.mxu1 %v1115_v0  ;;  %v1113_v2 = vld [vmem:[%s4638_s17 + $0x28] sm:$0xff]  ;;  %v1112_v3 = vld [vmem:[%s4638_s17 + $0x20] sm:$0xff]  ;;  %v1111_v4 = vld [vmem:[%s4638_s17 + $0x18] sm:$0xff]  ;;  %vm1116_vm0 = vcmask 523264   ;;  %vm1201_vm1 = vcmask 1043456   ;;  %vm1179_vm2 = vcmask 1040384  }
  0xe9   : > { %s1101_s26 = scalar_select %p1100_p10, %s4801_s0, 1  ;;  %v1110_v5 = vld [vmem:[%s4638_s17 + $0x10] sm:$0xff]  ;;  %v1109_v7 = vld [vmem:[%s4638_s17 + $0x8] sm:$0xff]  ;;  %v1108_v8 = vld [vmem:[%s4638_s17] sm:$0xff]  ;;  %v5008_v13 = vshrl.u32 %v1244_v12, 7  ;;  %vm1190_vm5 = vcmask 1041408  }
  0xea   : > { %1132 = vmatpush.msra.mxu0 %v1114_v1  ;;  %1163 = vmatpush.msra.mxu1 %v1114_v1  ;;  %v1291_v19 = vld [vmem:[#allocation7] sm:$0xf]  ;;  %vm1292_vm10 = vcmask 31744   ;;  %s5696_s15 = sld [smem:[#allocation31_spill]]  ;;  %s4598_s10 = smov 116  }
  0xeb   : > { %s3821_s18 = sshll.u32 %s1101_s26, 4  ;;  %v1247_v14 = vcvt.s32.f32 %v5008_v13  ;;  %v1246_v16 = vadd.s32 8, %v5008_v13  ;;  %3606 = vmatpush.msk.msra.mxu2 %vm1201_vm1, %v1291_v19  ;;  %3609 = vmatpush.msk.msra.mxu3 %vm1201_vm1, %v1291_v19  ;;  %s5697_s8 = sld [smem:[#allocation32_spill]] }
  0xec   : > { %1133 = vmatpush.msra.mxu0 %v1113_v2  ;;  %1164 = vmatpush.msra.mxu1 %v1113_v2  ;;  %s5698_s11 = sld [smem:[#allocation33_spill]]  ;;  %s4599_s20 = smov 124  }
  0xed   : > { %s4986_s7 = scalar_lea.vmem %s5691_s5, %s3821_s18  ;;  %v1249_v15 = vadd.f32 1.0, %v1247_v14  ;;  %v1248_v18 = vcvt.s32.f32 %v1246_v16  ;;  %s5699_s22 = sld [smem:[#allocation34_spill]] }
  0xee   : > { %1134 = vmatpush.msra.mxu0 %v1112_v3  ;;  %1165 = vmatpush.msra.mxu1 %v1112_v3  ;;  %v4990_v6 = vld [vmem:[%s4986_s7] sm:$0xff]  ;;  %v5000_v10 = vld [vmem:[%s4986_s7 + $0x8] sm:$0xff]  ;;  %s5700_s16 = sld [smem:[#allocation35_spill]]  ;;  %s4600_s1 = smov 4  }
  0xef   : > { %v1146_v9 = vmul.f32 %v4990_v6, %v4990_v6  ;;  %v1147_v11 = vmul.f32 %v5000_v10, %v5000_v10  ;;  %v1251_v17 = vmul.f32 16.0, %v1249_v15  ;;  %v1250_v20 = vadd.f32 1.0, %v1248_v18  ;;  %v4058_v15 = vld [vmem:[#allocation8] ss:$0 sm:$0xff]  ;;  %s5701_s2 = sld [smem:[#allocation36_spill]]  ;;  %s4601_s28 = smov 100  }
  0xf0   : > { %1135 = vmatpush.msra.mxu0 %v1111_v4  ;;  %1166 = vmatpush.msra.mxu1 %v1111_v4  ;;  %s4602_s6 = smov 108   ;;  %s5646_s26 = smov 8  }
  0xf1   : > { %4071 = vrcp.f32 %v1251_v17  ;;  %v5014_v22 = vmul.f32 16.0, %v1250_v20  ;;  %vm1258_vm3 = vweird.f32 %v1251_v17  ;;  %v1264_v34 = vand.u32 2147483648, %v1251_v17  ;;  %s5702_s18 = sld [smem:[#allocation37_spill]] }
  0xf2   : > { %1136 = vmatpush.msra.mxu0 %v1110_v5  ;;  %1167 = vmatpush.msra.mxu1 %v1110_v5  ;;  %v1262_v38 = vand.u32 2147483647, %v1251_v17 }
  0xf3   : > { %4073 = vrcp.f32 %v5014_v22  ;;  %v1265_v43 = vor.u32 1.1754944e-38, %v1264_v34  ;;  %vm1273_vm8 = vweird.f32 %v5014_v22  ;;  %v1279_v4 = vand.u32 2147483648, %v5014_v22 }
  0xf4   : > { %1137 = vmatpush.msra.mxu0 %v1109_v7  ;;  %1168 = vmatpush.msra.mxu1 %v1109_v7  ;;  %vm1263_vm7 = vcmp.eq.f32.partialorder %v1262_v38, 8.507059e+37 }
  0xf5   : > { %v1280_v20 = vor.u32 1.1754944e-38, %v1279_v4 }
  0xf6   : > { %1138 = vmatpush.msra.mxu0 %v1108_v8  ;;  %1169 = vmatpush.msra.mxu1 %v1108_v8 }
  0xf7   : > { %3602 = vmatmul.msk.f32.vlgmr.msra.gmra.mxu0 %vm1116_vm0, %v4990_v6  ;;  %3604 = vmatmul.msk.f32.vlgmr.msra.gmra.mxu1 %vm1116_vm0, %v1146_v9  ;;  %v4072_v21 = vpop.eup %4071  ;;  %v1277_v9 = vand.u32 2147483647, %v5014_v22 }
  0xf8   : > { %v1254_v23 = vmul.f32 %v4072_v21, %v1251_v17  ;;  %vm1259_vm4 = vweird.f32 %v4072_v21 }
  0xf9   : > { %v5017_v25 = vpop.eup %4073  ;;  %vm5023_vm6 = vmor %vm1258_vm3, %vm1259_vm4  ;;  %vm1278_vm12 = vcmp.eq.f32.partialorder %v1277_v9, 8.507059e+37  ;;  %v3838_v9 = vld [vmem:[%s5698_s11] sm:$0xff] }
  0xfa   : > { %v1255_v24 = vsub.f32 1.0, %v1254_v23  ;;  %v1269_v31 = vmul.f32 %v5017_v25, %v5014_v22  ;;  %vm1274_vm9 = vweird.f32 %v5017_v25 }
  0xfb   : > { %vm5045_vm11 = vmor %vm1273_vm8, %vm1274_vm9  ;;  %vm1473_vm8 = vcmask 1044480   ;;  %vm1490_vm9 = vcmask 1045504  }
  0xfc   : > { %v1256_v28 = vmul.f32 %v4072_v21, %v1255_v24  ;;  %v1270_v42 = vsub.f32 1.0, %v1269_v31 }
  0xfe   : > { %v1257_v37 = vadd.f32 %v4072_v21, %v1256_v28  ;;  %v1271_v53 = vmul.f32 %v5017_v25, %v1270_v42 }
  0xff   : > { %3603 = vmatmul.msk.f32.gmra.mxu0 %vm1116_vm0, %v5000_v10  ;;  %3605 = vmatmul.msk.f32.gmra.mxu1 %vm1116_vm0, %v1147_v11 }
 0x100   : > { %v1261_v48 = vsel %vm5023_vm6, %v4072_v21, %v1257_v37  ;;  %v1272_v3 = vadd.f32 %v5017_v25, %v1271_v53  ;;  %v3824_v53 = vld [vmem:[%s5677_s3 + $0x10] sm:$0xff] }
 0x101   : > { %v1266_v60 = vsel %vm1263_vm7, %v1265_v43, %v1261_v48  ;;  %vm1440_vm7 = vcmask 1042432  }
 0x102   : > { %v1276_v23 = vsel %vm5045_vm11, %v5017_v25, %v1272_v3  ;;  %v3839_v3 = vld [vmem:[%s5698_s11 + $0x8] sm:$0xff]  ;;  %vm1507_vm11 = vcmask 1046528  }
 0x174   : > { %v1140_v26 = vpop.f32.mrf.mxu0  ;;  %v1171_v27 = vpop.f32.mrf.mxu1 }
 0x175   : > { %v1180_v29 = vrot.slane %v1140_v26, 7  ;;  %v1214_v30 = vrot.slane %v1171_v27, 7 }
 0x177   : > { %v1185_v32 = vsel %vm1179_vm2, 0.0, %v1180_v29  ;;  %v1219_v33 = vsel %vm1179_vm2, 0.0, %v1214_v30 }
 0x178   : > { %v1186_v35 = vadd.f32 %v1185_v32, %v1140_v26  ;;  %v1220_v36 = vadd.f32 %v1219_v33, %v1171_v27 }
 0x17a   : > { %v1191_v40 = vrot.slane %v1186_v35, 6  ;;  %v1224_v41 = vrot.slane %v1220_v36, 6 }
 0x17c   : > { %v1196_v44 = vsel %vm1190_vm5, 0.0, %v1191_v40  ;;  %v1229_v45 = vsel %vm1190_vm5, 0.0, %v1224_v41  ;;  %v1143_v46 = vpop.f32.mrf.mxu0  ;;  %v1174_v47 = vpop.f32.mrf.mxu1 }
 0x17d   : > { %v1197_v49 = vadd.f32 %v1196_v44, %v1186_v35  ;;  %v1230_v50 = vadd.f32 %v1229_v45, %v1220_v36  ;;  %v1181_v51 = vrot.slane %v1143_v46, 7  ;;  %v1215_v52 = vrot.slane %v1174_v47, 7 }
 0x17f   : > { %v1202_v54 = vrot.slane %v1197_v49, 4  ;;  %v1234_v55 = vrot.slane %v1230_v50, 4  ;;  %v1182_v56 = vsel %vm1179_vm2, %v1180_v29, %v1181_v51  ;;  %v1216_v57 = vsel %vm1179_vm2, %v1214_v30, %v1215_v52  ;;  %v3825_v52 = vld [vmem:[%s5677_s3 + $0x18] sm:$0xff] }
 0x180   : > { %v1187_v58 = vadd.f32 %v1182_v56, %v1143_v46  ;;  %v1221_v59 = vadd.f32 %v1216_v57, %v1174_v47  ;;  %v1281_v29 = vsel %vm1278_vm12, %v1280_v20, %v1276_v23  ;;  %1658 = vmatpush.bf16.msrb.mxu2 %v3825_v52  ;;  %v3829_v56 = vld [vmem:[%s4668_s14 + $0x18] sm:$0xff] }
 0x181   : > { %v1207_v61 = vsel %vm1201_vm1, 0.0, %v1202_v54  ;;  %v1239_v62 = vsel %vm1201_vm1, 0.0, %v1234_v55  ;;  %v3833_v57 = vld [vmem:[%s5696_s15 + $0x18] sm:$0xff]  ;;  %1751 = vmatpush.bf16.msrb.mxu3 %v3829_v56 }
 0x182   : > { %v1208_v63 = vadd.f32 %v1207_v61, %v1197_v49  ;;  %v1240_v0 = vadd.f32 %v1239_v62, %v1230_v50  ;;  %v1192_v1 = vrot.slane %v1187_v58, 6  ;;  %v1225_v2 = vrot.slane %v1221_v59, 6  ;;  %1839 = vmatpush.bf16.msrb.mxu0 %v3833_v57  ;;  %v3832_v61 = vld [vmem:[%s5696_s15 + $0x10] sm:$0xff] }
 0x183   : > { %v3836_v62 = vld [vmem:[%s5697_s8 + $0x10] sm:$0xff] }
 0x184   : > { %v1193_v5 = vsel %vm1190_vm5, %v1191_v40, %v1192_v1  ;;  %v1226_v7 = vsel %vm1190_vm5, %v1224_v41, %v1225_v2  ;;  %v1267_v8 = vmul.f32 %v1266_v60, %v1208_v63  ;;  %v1283_v16 = vmul.f32 %v1266_v60, %v1240_v0  ;;  %1659 = vmatpush.bf16.msrb.mxu2 %v3824_v53  ;;  %v3828_v60 = vld [vmem:[%s4668_s14 + $0x10] sm:$0xff]  ;;  %v3831_v1 = vld [vmem:[%s5696_s15 + $0x8] sm:$0xff] }
 0x185   : > { %v1198_v11 = vadd.f32 %v1193_v5, %v1187_v58  ;;  %v1231_v14 = vadd.f32 %v1226_v7, %v1221_v59  ;;  %v3837_v58 = vld [vmem:[%s5697_s8 + $0x18] sm:$0xff]  ;;  %1752 = vmatpush.bf16.msrb.mxu3 %v3828_v60  ;;  %v3835_v2 = vld [vmem:[%s5697_s8 + $0x8] sm:$0xff]  ;;  %v3826_v5 = vld [vmem:[%s4668_s14] sm:$0xff] }
 0x186   : > { %v1285_v17 = vmul.f32 %v1267_v8, %v1267_v8  ;;  %3607 = vmatmul.msk.f32.vlgmr.msra.gmra.mxu2 %vm1292_vm10, %v1267_v8  ;;  %v3841_v59 = vld [vmem:[%s5698_s11 + $0x18] sm:$0xff]  ;;  %1929 = vmatpush.bf16.msrb.mxu1 %v3837_v58  ;;  %v3830_v7 = vld [vmem:[%s5696_s15] sm:$0xff] }
 0x187   : > { %v1203_v18 = vrot.slane %v1198_v11, 4  ;;  %v1235_v19 = vrot.slane %v1231_v14, 4  ;;  %1840 = vmatpush.bf16.msrb.mxu0 %v3832_v61  ;;  %v3834_v8 = vld [vmem:[%s5697_s8] sm:$0xff] }
 0x188   : > { %v1287_v21 = vsub.f32 %v1283_v16, %v1285_v17  ;;  %v1394_v16 = vld [vmem:[#allocation5] sm:$0x1] }
 0x189   : > { %v1204_v24 = vsel %vm1201_vm1, %v1202_v54, %v1203_v18  ;;  %v1236_v22 = vsel %vm1201_vm1, %v1234_v55, %v1235_v19  ;;  %v3823_v54 = vld [vmem:[%s5677_s3 + $0x8] sm:$0xff]  ;;  %v3822_v55 = vld [vmem:[%s5677_s3] sm:$0xff] }
 0x18a   : > { %v1209_v26 = vadd.f32 %v1204_v24, %v1198_v11  ;;  %v1241_v27 = vadd.f32 %v1236_v22, %v1231_v14  ;;  %v1289_v28 = vmax.f32 %v1287_v21, 0.0  ;;  %1660 = vmatpush.bf16.msrb.mxu2 %v3823_v54  ;;  %1930 = vmatpush.bf16.msrb.mxu1 %v3836_v62  ;;  %v1392_v11 = vld [vmem:[#allocation2] sm:$0xff]  ;;  %v4059_v21 = vld [vmem:[#allocation10] ss:$0 sm:$0xff] }
 0x18b   : > { %1841 = vmatpush.bf16.msrb.mxu0 %v3831_v1  ;;  %v5079_v17 = vperm.slane %v1392_v11, 1  ;;  %v1417_v19 = vperm.slane %v1392_v11, 2  ;;  %v5081_v23 = vadd.f32 %v1394_v16, %v1392_v11  ;;  %v1433_v24 = vperm.slane %v1392_v11, 3 }
 0x18c   : > { %v1243_v30 = vadd.f32 %v1241_v27, %v1240_v0  ;;  %v1325_v31 = vadd.f32 1e-05, %v1289_v28  ;;  %v1211_v32 = vadd.f32 %v1209_v26, %v1208_v63  ;;  %v3840_v63 = vld [vmem:[%s5698_s11 + $0x10] sm:$0xff]  ;;  %v3827_v0 = vld [vmem:[%s4668_s14 + $0x8] sm:$0xff]  ;;  %v5084_v28 = vperm.slane %v1392_v11, 5 }
 0x18d   : > { %1753 = vmatpush.bf16.msrb.mxu3 %v3827_v0  ;;  %v1402_v26 = vmul.f32 0.0, %v5079_v17  ;;  %v1418_v27 = vmul.f32 0.0, %v1417_v19 }
 0x18e   : > { %4075 = vrsqrt.f32 %v1325_v31  ;;  %v1282_v33 = vmul.f32 %v1281_v29, %v1211_v32  ;;  %v1284_v34 = vmul.f32 %v1281_v29, %v1243_v30  ;;  %vm1333_vm14 = vweird.f32 %v1325_v31  ;;  %1661 = vmatpush.bf16.msrb.mxu2 %v3822_v55  ;;  %1931 = vmatpush.bf16.msrb.mxu1 %v3835_v2 }
 0x18f   : > { %1842 = vmatpush.bf16.msrb.mxu0 %v3830_v7  ;;  %v1434_v32 = vmul.f32 0.0, %v1433_v24 }
 0x190   : > { %v1286_v35 = vmul.f32 %v1282_v33, %v1282_v33  ;;  %3608 = vmatmul.msk.f32.gmra.mxu2 %vm1292_vm10, %v1282_v33  ;;  %v5089_v33 = vperm.slane %v1392_v11, 6 }
 0x191   : > { %1754 = vmatpush.bf16.msrb.mxu3 %v3826_v5 }
 0x192   : > { %v1288_v36 = vsub.f32 %v1284_v34, %v1286_v35  ;;  %2019 = vmatpush.bf16.msra.mxu2 %v3841_v59  ;;  %1932 = vmatpush.bf16.msrb.mxu1 %v3834_v8  ;;  %v1408_v35 = vrot.slane %v1402_v26, 7 }
 0x194   : > { %v4076_v25 = vpop.eup %4075  ;;  %v1290_v37 = vmax.f32 %v1288_v36, 0.0 }
 0x195   : > { %v1328_v38 = vmul.f32 %v4076_v25, %v1325_v31  ;;  %vm1334_vm13 = vweird.f32 %v4076_v25  ;;  %v1397_v31 = vperm.slane %v5081_v23, 0 }
 0x196   : > { %v1326_v39 = vadd.f32 1e-05, %v1290_v37  ;;  %vm1335_vm15 = vmor %vm1333_vm14, %vm1334_vm13  ;;  %2020 = vmatpush.bf16.msra.mxu2 %v3840_v63  ;;  %v1424_v37 = vrot.slane %v1418_v27, 6 }
 0x197   : > { %v1329_v40 = vmul.f32 %v4076_v25, %v1328_v38 }
 0x198   : > { %4077 = vrsqrt.f32 %v1326_v39  ;;  %vm1343_vm4 = vweird.f32 %v1326_v39 }
 0x199   : > { %v1330_v41 = vmul.f32 0.5, %v1329_v40 }
 0x19a   : > { %2021 = vmatpush.bf16.msra.mxu2 %v3839_v3 }
 0x19b   : > { %v1331_v42 = vsub.f32 1.5, %v1330_v41  ;;  %v5101_v41 = vld [vmem:[#allocation2 + $0x8] sm:$0xff] }
 0x19c   : > { %v1517_v54 = vperm.slane %v5101_v41, 0  ;;  %v1522_v55 = vperm.slane %v5101_v41, 1 }
 0x19d   : > { %v1332_v43 = vmul.f32 %v4076_v25, %v1331_v42 }
 0x19e   : > { %v4078_v44 = vpop.eup %4077  ;;  %2022 = vmatpush.bf16.msra.mxu2 %v3838_v9 }
 0x19f   : > { %v1336_v45 = vsel %vm1335_vm15, %v4076_v25, %v1332_v43  ;;  %v1338_v46 = vmul.f32 %v4078_v44, %v1326_v39  ;;  %vm1344_vm3 = vweird.f32 %v4078_v44  ;;  %v1467_v39 = vmul.f32 0.0, %v5084_v28 }
 0x1a0   : > { %3610 = vmatmul.msk.f32.vlgmr.msra.gmra.mxu3 %vm1292_vm10, %v1336_v45  ;;  %vm1345_vm6 = vmor %vm1343_vm4, %vm1344_vm3 }
 0x1a1   : > { %v1339_v47 = vmul.f32 %v4078_v44, %v1338_v46  ;;  %v1474_v61 = vrot.slane %v1467_v39, 3 }
 0x1a3   : > { %v1340_v48 = vmul.f32 0.5, %v1339_v47  ;;  %v1441_v47 = vrot.slane %v1434_v32, 5 }
 0x1a5   : > { %v1341_v49 = vsub.f32 1.5, %v1340_v48  ;;  %v1484_v48 = vmul.f32 0.0, %v5089_v33 }
 0x1a7   : > { %v1342_v50 = vmul.f32 %v4078_v44, %v1341_v49  ;;  %v1500_v49 = vperm.slane %v1392_v11, 7 }
 0x1a9   : > { %v1346_v51 = vsel %vm1345_vm6, %v4078_v44, %v1342_v50  ;;  %v1501_v63 = vmul.f32 0.0, %v1500_v49 }
 0x1aa   : > { %3611 = vmatmul.msk.f32.gmra.mxu3 %vm1292_vm10, %v1346_v51 }
 0x209   : > { %v1319_v4 = vpop.f32.mrf.mxu2 }
 0x20a   : > { %v1376_v14 = vsub.f32 %v4990_v6, %v1319_v4  ;;  %v1450_v6 = vperm.slane %v1392_v11, 4  ;;  %v1491_v4 = vrot.slane %v1484_v48, 2 }
 0x20c   : > { %v1451_v38 = vmul.f32 0.0, %v1450_v6 }
 0x20e   : > { %v1457_v58 = vrot.slane %v1451_v38, 4 }
 0x213   : > { %v1322_v30 = vpop.f32.mrf.mxu2 }
 0x214   : > { %v1377_v40 = vsub.f32 %v5000_v10, %v1322_v30 }
 0x223   : > { %v1370_v18 = vpop.f32.mrf.mxu3 }
 0x224   : > { %v1378_v20 = vmul.f32 %v1376_v14, %v1370_v18  ;;  %v1508_v18 = vrot.slane %v1501_v63, 1 }
 0x226   : > { %v1384_v22 = vmul.f32 %v4058_v15, %v1378_v20 }
 0x228   : > { %v5086_v29 = vadd.f32 %v4059_v21, %v1384_v22 }
 0x22a   : > { %v1403_v34 = vmul.f32 %v5079_v17, %v5086_v29  ;;  %v5094_v36 = vmul.f32 %v1417_v19, %v5086_v29  ;;  %v5097_v25 = vmul.f32 %v1433_v24, %v5086_v29  ;;  %v5105_v44 = vmul.f32 %v1450_v6, %v5086_v29 }
 0x22b   : > { %v1399_v46 = vmul.f32 %v1397_v31, %v5086_v29  ;;  %v5113_v52 = vmul.f32 %v5084_v28, %v5086_v29  ;;  %v5121_v62 = vmul.f32 %v5089_v33, %v5086_v29  ;;  %v1502_v5 = vmul.f32 %v1500_v49, %v5086_v29 }
 0x22c   : > { %v1409_v42 = vrot.slane %v1403_v34, 7  ;;  %v1425_v43 = vrot.slane %v5094_v36, 6  ;;  %v1442_v10 = vrot.slane %v5097_v25, 5  ;;  %v1458_v59 = vrot.slane %v5105_v44, 4 }
 0x22d   : > { %v1373_v45 = vpop.f32.mrf.mxu3  ;;  %v1475_v2 = vrot.slane %v5113_v52, 3  ;;  %v1492_v16 = vrot.slane %v5121_v62, 2  ;;  %v1509_v30 = vrot.slane %v1502_v5, 1  ;;  %v1518_v36 = vmul.f32 0.0, %v1517_v54 }
 0x22e   : > { %v1379_v50 = vmul.f32 %v1377_v40, %v1373_v45  ;;  %v1410_v51 = vsel %vm1179_vm2, %v1408_v35, %v1409_v42  ;;  %v1426_v57 = vsel %vm1190_vm5, %v1424_v37, %v1425_v43  ;;  %v1443_v1 = vsel %vm1440_vm7, %v1441_v47, %v1442_v10 }
 0x22f   : > { %v1415_v53 = vadd.f32 %v1410_v51, %v1399_v46  ;;  %v1459_v11 = vsel %vm1201_vm1, %v1457_v58, %v1458_v59  ;;  %v1476_v22 = vsel %vm1473_vm8, %v1474_v61, %v1475_v2  ;;  %v1493_v35 = vsel %vm1490_vm9, %v1491_v4, %v1492_v16 }
 0x230   : > { %v1385_v56 = vmul.f32 %v4058_v15, %v1379_v50  ;;  %v1510_v40 = vsel %vm1507_vm11, %v1508_v18, %v1509_v30  ;;  %v1574_v4 = vperm.slane %v5101_v41, 5 }
 0x231   : > { %v1431_v60 = vadd.f32 %v1426_v57, %v1415_v53  ;;  %v1561_v57 = vperm.slane %v5101_v41, 4 }
 0x232   : > { %v1391_v0 = vadd.f32 %v4059_v21, %v1385_v56 }
 0x233   : > { %v1448_v3 = vadd.f32 %v1443_v1, %v1431_v60 }
 0x234   : > { %v1613_v7 = vpack.c.bf16 %v1391_v0, %v5086_v29  ;;  %v1404_v8 = vmul.f32 %v5079_v17, %v1391_v0  ;;  %v1420_v9 = vmul.f32 %v1417_v19, %v1391_v0  ;;  %v1436_v14 = vmul.f32 %v1433_v24, %v1391_v0 }
 0x235   : > { %v1464_v15 = vadd.f32 %v1459_v11, %v1448_v3  ;;  %v1453_v23 = vmul.f32 %v1450_v6, %v1391_v0  ;;  %v1400_v26 = vmul.f32 %v1397_v31, %v1391_v0  ;;  %v1535_v17 = vperm.slane %v5101_v41, 2 }
 0x236   : > { %3628 = vmatmul.msk.bf16.vlgmr.msrb.gmra.mxu2 %vm1116_vm0, %v1613_v7  ;;  %v1411_v20 = vrot.slane %v1404_v8, 7  ;;  %v1427_v21 = vrot.slane %v1420_v9, 6  ;;  %v1444_v32 = vrot.slane %v1436_v14, 5  ;;  %v1469_v24 = vmul.f32 %v5084_v28, %v1391_v0 }
 0x237   : > { %v1481_v27 = vadd.f32 %v1476_v22, %v1464_v15  ;;  %v1523_v6 = vmul.f32 0.0, %v1522_v55  ;;  %v1460_v25 = vrot.slane %v1453_v23, 4  ;;  %v1486_v37 = vmul.f32 %v5089_v33, %v1391_v0 }
 0x238   : > { %v1412_v19 = vsel %vm1179_vm2, %v1409_v42, %v1411_v20  ;;  %v1428_v31 = vsel %vm1190_vm5, %v1425_v43, %v1427_v21  ;;  %v1536_v28 = vmul.f32 0.0, %v1535_v17  ;;  %v1548_v42 = vperm.slane %v5101_v41, 3 }
 0x239   : > { %v1416_v34 = vadd.f32 %v1412_v19, %v1400_v26  ;;  %v1498_v38 = vadd.f32 %v1493_v35, %v1481_v27  ;;  %v1445_v44 = vsel %vm1440_vm7, %v1442_v10, %v1444_v32  ;;  %v1477_v45 = vrot.slane %v1469_v24, 3 }
 0x23a   : > { %v1503_v46 = vmul.f32 %v1500_v49, %v1391_v0  ;;  %v1461_v50 = vsel %vm1201_vm1, %v1458_v59, %v1460_v25  ;;  %v1494_v51 = vrot.slane %v1486_v37, 2  ;;  %v1527_v52 = vrot.slane %v1523_v6, 7 }
 0x23b   : > { %v1432_v39 = vadd.f32 %v1428_v31, %v1416_v34  ;;  %v1515_v47 = vadd.f32 %v1510_v40, %v1498_v38  ;;  %v1540_v33 = vrot.slane %v1536_v28, 6  ;;  %v1549_v56 = vmul.f32 0.0, %v1548_v42 }
 0x23c   : > { %v1478_v58 = vsel %vm1473_vm8, %v1475_v2, %v1477_v45  ;;  %v1511_v60 = vrot.slane %v1503_v46, 1  ;;  %v1524_v10 = vmul.f32 %v1522_v55, %v5086_v29  ;;  %v1495_v62 = vsel %vm1490_vm9, %v1492_v16, %v1494_v51 }
 0x23d   : > { %v1449_v48 = vadd.f32 %v1445_v44, %v1432_v39  ;;  %v1520_v43 = vadd.f32 %v1518_v36, %v1515_v47  ;;  %v1537_v59 = vmul.f32 %v1535_v17, %v5086_v29  ;;  %v1553_v1 = vrot.slane %v1549_v56, 5 }
 0x23e   : > { %v1562_v3 = vmul.f32 0.0, %v1561_v57  ;;  %v1512_v5 = vsel %vm1507_vm11, %v1509_v30, %v1511_v60  ;;  %v1529_v2 = vrot.slane %v1524_v10, 7  ;;  %v1550_v7 = vmul.f32 %v1548_v42, %v5086_v29 }
 0x23f   : > { %v1465_v53 = vadd.f32 %v1461_v50, %v1449_v48  ;;  %v1533_v49 = vadd.f32 %v1527_v52, %v1520_v43  ;;  %v1519_v55 = vmul.f32 %v1517_v54, %v5086_v29  ;;  %v1542_v11 = vrot.slane %v1537_v59, 6 }
 0x240   : > { %v1563_v14 = vmul.f32 %v1561_v57, %v5086_v29  ;;  %v1587_v15 = vperm.slane %v5101_v41, 6  ;;  %v1566_v18 = vrot.slane %v1562_v3, 4  ;;  %v1575_v20 = vmul.f32 0.0, %v1574_v4 }
 0x241   : > { %v1482_v61 = vadd.f32 %v1478_v58, %v1465_v53  ;;  %v1546_v63 = vadd.f32 %v1540_v33, %v1533_v49  ;;  %v1530_v21 = vsel %vm1179_vm2, %v1527_v52, %v1529_v2  ;;  %v1555_v23 = vrot.slane %v1550_v7, 5  ;;  %v4060_v52 = vld [vmem:[#allocation11] ss:$0 sm:$0xff]  ;;  %v4061_v49 = vld [vmem:[#allocation14] ss:$0 sm:$0xff] }
 0x242   : > { %v1576_v22 = vmul.f32 %v1574_v4, %v5086_v29  ;;  %v1600_v26 = vperm.slane %v5101_v41, 7  ;;  %v1543_v54 = vsel %vm1190_vm5, %v1540_v33, %v1542_v11  ;;  %v1568_v17 = vrot.slane %v1563_v14, 4 }
 0x243   : > { %v1499_v0 = vadd.f32 %v1495_v62, %v1482_v61  ;;  %v1559_v9 = vadd.f32 %v1553_v1, %v1546_v63  ;;  %v1588_v19 = vmul.f32 0.0, %v1587_v15  ;;  %v1589_v32 = vmul.f32 %v1587_v15, %v5086_v29 }
 0x244   : > { %v1579_v34 = vrot.slane %v1575_v20, 3  ;;  %v1556_v35 = vsel %vm1440_vm7, %v1553_v1, %v1555_v23  ;;  %v1581_v36 = vrot.slane %v1576_v22, 3  ;;  %v1601_v6 = vmul.f32 0.0, %v1600_v26 }
 0x245   : > { %v1516_v8 = vadd.f32 %v1512_v5, %v1499_v0  ;;  %v1572_v30 = vadd.f32 %v1566_v18, %v1559_v9  ;;  %v1602_v31 = vmul.f32 %v1600_v26, %v5086_v29  ;;  %v1569_v41 = vsel %vm1201_vm1, %v1566_v18, %v1568_v17  ;;  %v2029_v17 = vld [vmem:[%s5699_s22] sm:$0x3]  ;;  %s4604_s22 = smov 16  }
 0x246   : > { %v1592_v38 = vrot.slane %v1588_v19, 2  ;;  %v1594_v39 = vrot.slane %v1589_v32, 2  ;;  %v1582_v28 = vsel %vm1473_vm8, %v1579_v34, %v1581_v36  ;;  %v1605_v42 = vrot.slane %v1601_v6, 1 }
 0x247   : > { %v1521_v16 = vadd.f32 %v1519_v55, %v1516_v8  ;;  %v1585_v37 = vadd.f32 %v1579_v34, %v1572_v30  ;;  %v1607_v44 = vrot.slane %v1602_v31, 1  ;;  %v2030_v34 = vld [vmem:[%s5700_s16] sm:$0x3]  ;;  %v2044_v36 = vperm.slane %v2029_v17, 1  ;;  %s4605_s16 = smov 24  }
 0x248   : > { %v1595_v47 = vsel %vm1490_vm9, %v1592_v38, %v1594_v39  ;;  %vm2102_vm9 = vcmask 64512  }
 0x249   : > { %v1534_v27 = vadd.f32 %v1530_v21, %v1521_v16  ;;  %v1598_v46 = vadd.f32 %v1592_v38, %v1585_v37  ;;  %v1608_v50 = vsel %vm1507_vm11, %v1605_v42, %v1607_v44  ;;  %v2047_v37 = vperm.slane %v2030_v34, 1 }
 0x24b   : > { %v1547_v24 = vadd.f32 %v1543_v54, %v1534_v27  ;;  %v1611_v51 = vadd.f32 %v1605_v42, %v1598_v46 }
 0x24d   : > { %v1560_v25 = vadd.f32 %v1556_v35, %v1547_v24 }
 0x24f   : > { %v1573_v40 = vadd.f32 %v1569_v41, %v1560_v25 }
 0x251   : > { %v1586_v45 = vadd.f32 %v1582_v28, %v1573_v40 }
 0x253   : > { %v1599_v48 = vadd.f32 %v1595_v47, %v1586_v45 }
 0x255   : > { %v1612_v29 = vadd.f32 %v1608_v50, %v1599_v48  ;;  %v2038_v50 = vperm.slane %v2029_v17, 0 }
 0x257   : > { %v1614_v43 = vpack.c.bf16 %v1612_v29, %v1611_v51  ;;  %v2041_v29 = vperm.slane %v2030_v34, 0 }
 0x259   : > { %3647 = vmatmul.msk.bf16.vlgmr.msrb.gmra.mxu3 %vm1116_vm0, %v1614_v43  ;;  %3666 = vmatmul.msk.bf16.vlgmr.msrb.gmra.mxu0 %vm1116_vm0, %v1614_v43 }
 0x25a   : > { %3685 = vmatmul.msk.bf16.vlgmr.msrb.gmra.mxu1 %vm1116_vm0, %v1614_v43  ;;  %3704 = vmatmul.msk.bf16.vlgmr.msra.gmra.mxu2 %vm1116_vm0, %v1614_v43 }
 0x2b9   : > { %v1663_v53 = vpop.f32.mrf.mxu2 }
 0x2ba   : > { %v5176_v33 = vadd.f32 %v4060_v52, %v1663_v53 }
 0x2c1   : > { %v1665_v56 = vpop.f32.mrf.mxu2 }
 0x2c2   : > { %v1666_v57 = vadd.f32 %v4060_v52, %v1665_v56 }
 0x2c4   : > { %v3630_v58 = vmul.f32 -1.442695, %v1666_v57 }
 0x2c6   : > { %4079 = vpow2.f32 %v3630_v58 }
 0x2cc   : > { %v4080_v60 = vpop.eup %4079 }
 0x2cd   : > { %v1675_v10 = vadd.f32 1.0, %v4080_v60 }
 0x2cf   : > { %4081 = vrcp.f32 %v1675_v10  ;;  %v1702_v1 = vand.u32 2147483648, %v1675_v10  ;;  %v1700_v5 = vand.u32 2147483647, %v1675_v10  ;;  %vm1696_vm2 = vweird.f32 %v1675_v10 }
 0x2d1   : > { %v1703_v7 = vor.u32 1.1754944e-38, %v1702_v1  ;;  %vm1701_vm12 = vcmp.eq.f32.partialorder %v1700_v5, 8.507059e+37 }
 0x2d5   : > { %v4082_v61 = vpop.eup %4081 }
 0x2d6   : > { %v1692_v62 = vmul.f32 %v4082_v61, %v1675_v10  ;;  %v1844_v59 = vpop.f32.mrf.mxu0  ;;  %vm1697_vm1 = vweird.f32 %v4082_v61 }
 0x2d7   : > { %v1845_v63 = vadd.f32 %v4061_v49, %v1844_v59  ;;  %vm1698_vm5 = vmor %vm1696_vm2, %vm1697_vm1 }
 0x2d8   : > { %v1693_v0 = vsub.f32 1.0, %v1692_v62  ;;  %v5225_v62 = vld [vmem:[%s5701_s2 + $0x8] sm:$0xff] }
 0x2d9   : > { %v3667_v3 = vmul.f32 -1.442695, %v1845_v63 }
 0x2da   : > { %v1694_v4 = vmul.f32 %v4082_v61, %v1693_v0 }
 0x2db   : > { %4083 = vpow2.f32 %v3667_v3 }
 0x2dc   : > { %v1695_v2 = vadd.f32 %v4082_v61, %v1694_v4 }
 0x2de   : > { %v1699_v8 = vsel %vm1698_vm5, %v4082_v61, %v1695_v2  ;;  %v1846_v55 = vpop.f32.mrf.mxu0  ;;  %v5217_v61 = vld [vmem:[%s5701_s2] sm:$0xff]  ;;  %v5266_v2 = vld [vmem:[%s5702_s18 + $0x8] sm:$0xff] }
 0x2df   : > { %v1704_v9 = vsel %vm1701_vm12, %v1703_v7, %v1699_v8  ;;  %v1847_v11 = vadd.f32 %v4061_v49, %v1846_v55 }
 0x2e0   : > { %v5178_v14 = vmul.f32 %v1704_v9, %v1666_v57 }
 0x2e1   : > { %v4084_v15 = vpop.eup %4083  ;;  %v3668_v16 = vmul.f32 -1.442695, %v1847_v11 }
 0x2e2   : > { %v1855_v18 = vadd.f32 1.0, %v4084_v15  ;;  %2248 = vmatpush.msrb.mxu2 %v5178_v14 }
 0x2e3   : > { %4085 = vpow2.f32 %v3668_v16 }
 0x2e4   : > { %4087 = vrcp.f32 %v1855_v18  ;;  %v1868_v27 = vand.u32 2147483648, %v1855_v18  ;;  %v1866_v54 = vand.u32 2147483647, %v1855_v18  ;;  %vm1862_vm14 = vweird.f32 %v1855_v18 }
 0x2e6   : > { %v1869_v24 = vor.u32 1.1754944e-38, %v1868_v27  ;;  %vm1867_vm3 = vcmp.eq.f32.partialorder %v1866_v54, 8.507059e+37 }
 0x2e9   : > { %v4086_v20 = vpop.eup %4085 }
 0x2ea   : > { %v4088_v21 = vpop.eup %4087  ;;  %v1856_v23 = vadd.f32 1.0, %v4086_v20 }
 0x2eb   : > { %v1858_v22 = vmul.f32 %v4088_v21, %v1855_v18  ;;  %vm1863_vm13 = vweird.f32 %v4088_v21 }
 0x2ec   : > { %4089 = vrcp.f32 %v1856_v23  ;;  %vm1864_vm15 = vmor %vm1862_vm14, %vm1863_vm13  ;;  %v1883_v38 = vand.u32 2147483648, %v1856_v23  ;;  %v1881_v28 = vand.u32 2147483647, %v1856_v23  ;;  %vm1877_vm6 = vweird.f32 %v1856_v23 }
 0x2ed   : > { %v1859_v26 = vsub.f32 1.0, %v1858_v22 }
 0x2ee   : > { %v1884_v45 = vor.u32 1.1754944e-38, %v1883_v38  ;;  %vm1882_vm8 = vcmp.eq.f32.partialorder %v1881_v28, 8.507059e+37 }
 0x2ef   : > { %v1860_v30 = vmul.f32 %v4088_v21, %v1859_v26 }
 0x2f1   : > { %v1861_v19 = vadd.f32 %v4088_v21, %v1860_v30 }
 0x2f2   : > { %v4090_v32 = vpop.eup %4089 }
 0x2f3   : > { %v1865_v35 = vsel %vm1864_vm15, %v4088_v21, %v1861_v19  ;;  %v1873_v6 = vmul.f32 %v4090_v32, %v1856_v23  ;;  %vm1878_vm4 = vweird.f32 %v4090_v32 }
 0x2f4   : > { %v1870_v31 = vsel %vm1867_vm3, %v1869_v24, %v1865_v35  ;;  %vm1879_vm7 = vmor %vm1877_vm6, %vm1878_vm4 }
 0x2f5   : > { %v1887_v25 = vmul.f32 %v1870_v31, %v1845_v63  ;;  %v1874_v41 = vsub.f32 1.0, %v1873_v6  ;;  %v5256_v63 = vld [vmem:[%s5702_s18] sm:$0xff] }
 0x2f7   : > { %v2045_v39 = vmul.f32 %v2044_v36, %v1887_v25  ;;  %v1875_v40 = vmul.f32 %v4090_v32, %v1874_v41  ;;  %v2039_v60 = vmul.f32 %v2038_v50, %v1887_v25 }
 0x2f9   : > { %v5183_v42 = vadd.f32 %v2047_v37, %v2045_v39  ;;  %v1876_v44 = vadd.f32 %v4090_v32, %v1875_v40  ;;  %v5197_v10 = vadd.f32 %v2041_v29, %v2039_v60 }
 0x2fb   : > { %v1880_v46 = vsel %vm1879_vm7, %v4090_v32, %v1876_v44  ;;  %v2070_v47 = vsub.f32 0.0, %v5183_v42  ;;  %v5200_v49 = vsub.f32 0.0, %v5197_v10 }
 0x2fc   : > { %v1885_v48 = vsel %vm1882_vm8, %v1884_v45, %v1880_v46 }
 0x2fd   : > { %v1888_v51 = vmul.f32 %v1885_v48, %v1847_v11  ;;  %2267 = vrot.lane.b32.xlu2 %v2070_v47, %s4598_s10 }
 0x2ff   : > { %v2040_v43 = vmul.f32 %v2038_v50, %v1888_v51  ;;  %v2046_v52 = vmul.f32 %v2044_v36, %v1888_v51 }
 0x301   : > { %v5187_v53 = vadd.f32 %v2041_v29, %v2040_v43  ;;  %v5189_v56 = vadd.f32 %v2047_v37, %v2046_v52 }
 0x303   : > { %v2071_v57 = vsub.f32 0.0, %v5189_v56  ;;  %v2051_v58 = vsub.f32 0.0, %v5187_v53  ;;  %v2097_v11 = vmul.f32 %v5189_v56, %v5225_v62  ;;  %v2091_v20 = vmul.f32 %v5187_v53, %v5225_v62 }
 0x305   : > { %2076 = vrot.lane.b32.xlu0 %v2071_v57, %s4599_s20  ;;  %2056 = vrot.lane.b32.xlu1 %v2051_v58, %s4599_s20 }
 0x306   : > { %2273 = vrot.lane.b32.xlu2 %v5183_v42, %s4599_s20 }
 0x30d   : > { %2084 = vrot.lane.b32.xlu0 %v5189_v56, %s4600_s1  ;;  %2064 = vrot.lane.b32.xlu1 %v5187_v53, %s4600_s1 }
 0x30e   : > { %2709 = vrot.lane.b32.xlu2 %v5200_v49, %s4601_s28 }
 0x315   : > { %2259 = vrot.lane.b32.xlu1 %v5197_v10, %s4599_s20  ;;  %2253 = vrot.lane.b32.xlu0 %v5200_v49, %s4598_s10 }
 0x316   : > { %2731 = vrot.lane.b32.xlu2 %v5189_v56, %s4602_s6 }
 0x31d   : > { %2275 = vrot.lane.b32.xlu1 %v5189_v56, %s4599_s20  ;;  %2497 = vrot.lane.b32.xlu0 %v2070_v47, %s4602_s6 }
 0x31e   : > { %2283 = vrot.lane.b32.xlu2 %v5217_v61, %s5646_s26 }
 0x325   : > { %2503 = vrot.lane.b32.xlu1 %v5183_v42, %s4598_s10  ;;  %2483 = vrot.lane.b32.xlu0 %v5200_v49, %s4602_s6 }
 0x326   : > { %2285 = vrot.lane.b32.xlu2 %v5225_v62, %s5646_s26 }
 0x32d   : > { %2261 = vrot.lane.b32.xlu1 %v5187_v53, %s4599_s20  ;;  %2723 = vrot.lane.b32.xlu0 %v2070_v47, %s4601_s28 }
 0x335   : > { %2489 = vrot.lane.b32.xlu1 %v5197_v10, %s4598_s10  ;;  %2715 = vrot.lane.b32.xlu0 %v5197_v10, %s4602_s6 }
 0x33d   : > { %2729 = vrot.lane.b32.xlu1 %v5183_v42, %s4602_s6  ;;  %2505 = vrot.lane.b32.xlu0 %v5189_v56, %s4598_s10 }
 0x345   : > { %2717 = vrot.lane.b32.xlu1 %v5187_v53, %s4602_s6  ;;  %2491 = vrot.lane.b32.xlu0 %v5187_v53, %s4598_s10 }
 0x34d   : > { %2511 = vrot.lane.b32.xlu1 %v5217_v61, %s4604_s22  ;;  %2269 = vrot.lane.b32.xlu0 %v2071_v57, %s4598_s10 }
 0x355   : > { %2737 = vrot.lane.b32.xlu1 %v5217_v61, %s4605_s16  ;;  %2255 = vrot.lane.b32.xlu0 %v2051_v58, %s4598_s10  ;;  %s4606_s10 = smov 120  }
 0x357   : > { %v2268_v59 = vpop.permute.xlu2 %2267 }
 0x35d   : > { %2513 = vrot.lane.b32.xlu1 %v5225_v62, %s4604_s22  ;;  %2711 = vrot.lane.b32.xlu0 %v2051_v58, %s4601_s28 }
 0x360   : > { %v2274_v0 = vpop.permute.xlu2 %2273 }
 0x361   : > { %v2279_v1 = vsel %vm1292_vm10, %v2268_v59, %v2274_v0 }
 0x362   : > { %v2305_v3 = vmul.f32 %v2279_v1, %v5256_v63 }
 0x365   : > { %2074 = vrot.lane.b32.xlu1 %v2070_v47, %s4599_s20  ;;  %2309 = vrot.lane.b32.xlu0 %v2305_v3, %s5646_s26 }
 0x368   : > { %v2710_v40 = vpop.permute.xlu2 %2709 }
 0x36d   : > { %2499 = vrot.lane.b32.xlu1 %v2071_v57, %s4602_s6 }
 0x375   : > { %2485 = vrot.lane.b32.xlu1 %v2051_v58, %s4602_s6  ;;  %s4610_s6 = smov 96  }
 0x377   : > { %v2077_v4 = vpop.permute.xlu0 %2076  ;;  %v2057_v5 = vpop.permute.xlu1 %2056 }
 0x37d   : > { %2725 = vrot.lane.b32.xlu1 %v2071_v57, %s4601_s28  ;;  %s4608_s28 = smov 104  }
 0x37f   : > { %v2085_v7 = vpop.permute.xlu0 %2084  ;;  %v2065_v8 = vpop.permute.xlu1 %2064 }
 0x380   : > { %v2089_v55 = vsel %vm1292_vm10, %v2077_v4, %v2085_v7  ;;  %v2069_v9 = vsel %vm1292_vm10, %v2057_v5, %v2065_v8 }
 0x381   : > { %v2099_v15 = vmul.f32 %v2089_v55, %v5266_v2  ;;  %v2093_v16 = vmul.f32 %v2069_v9, %v5266_v2  ;;  %v2732_v9 = vpop.permute.xlu2 %2731 }
 0x383   : > { %v2101_v18 = vadd.f32 %v2099_v15, %v2097_v11  ;;  %v2095_v21 = vadd.f32 %v2093_v16, %v2091_v20 }
 0x385   : > { %3708 = vmatpush.xpose.msk.msra.mxu0 %vm2102_vm9, %v2101_v18 }
 0x387   : > { %v2260_v23 = vpop.permute.xlu1 %2259  ;;  %v2254_v22 = vpop.permute.xlu0 %2253 }
 0x388   : > { %v2265_v26 = vsel %vm1292_vm10, %v2254_v22, %v2260_v23  ;;  %3709 = vmatmul.msk.f32.vlgmr.msra.gmra.mxu0 %vm2102_vm9, %v2095_v21 }
 0x389   : > { %v2291_v27 = vmul.f32 %v2265_v26, %v5256_v63  ;;  %v2284_v16 = vpop.permute.xlu2 %2283 }
 0x38a   : > { %v2303_v20 = vmul.f32 %v2284_v16, %v5183_v42  ;;  %v2289_v23 = vmul.f32 %v2284_v16, %v5197_v10 }
 0x38b   : > { %2295 = vrot.lane.b32.xlu1 %v2291_v27, %s5646_s26  ;;  %v2036_v27 = vand.u32 127, %v1244_v12 }
 0x38d   : > { %vm5330_vm11 = vcmp.ge.s32.totalorder %v5008_v13, %v2036_v27  ;;  %v3629_v13 = vmul.f32 -1.442695, %v5176_v33 }
 0x38f   : > { %v2276_v30 = vpop.permute.xlu1 %2275  ;;  %v2498_v54 = vpop.permute.xlu0 %2497  ;;  %4091 = vpow2.f32 %v3629_v13 }
 0x397   : > { %v2504_v17 = vpop.permute.xlu1 %2503  ;;  %v2484_v19 = vpop.permute.xlu0 %2483 }
 0x398   : > { %v2509_v32 = vsel %vm1292_vm10, %v2498_v54, %v2504_v17 }
 0x399   : > { %v2533_v24 = vmul.f32 %v2509_v32, %v5256_v63 }
 0x39b   : > { %2537 = vrot.lane.b32.xlu0 %v2533_v24, %s4604_s22 }
 0x39f   : > { %v2262_v34 = vpop.permute.xlu1 %2261  ;;  %v2724_v35 = vpop.permute.xlu0 %2723 }
 0x3a7   : > { %v2490_v36 = vpop.permute.xlu1 %2489  ;;  %v2716_v6 = vpop.permute.xlu0 %2715 }
 0x3a8   : > { %v2495_v31 = vsel %vm1292_vm10, %v2484_v19, %v2490_v36  ;;  %v2721_v28 = vsel %vm1292_vm10, %v2710_v40, %v2716_v6 }
 0x3a9   : > { %v2519_v25 = vmul.f32 %v2495_v31, %v5256_v63  ;;  %v2745_v46 = vmul.f32 %v2721_v28, %v5256_v63 }
 0x3ab   : > { %2523 = vrot.lane.b32.xlu0 %v2519_v25, %s4604_s22 }
 0x3af   : > { %v2730_v37 = vpop.permute.xlu1 %2729  ;;  %v2506_v41 = vpop.permute.xlu0 %2505 }
 0x3b0   : > { %v2735_v38 = vsel %vm1292_vm10, %v2724_v35, %v2730_v37 }
 0x3b1   : > { %v2759_v39 = vmul.f32 %v2735_v38, %v5256_v63 }
 0x3b3   : > { %2763 = vrot.lane.b32.xlu0 %v2759_v39, %s4605_s16 }
 0x3b7   : > { %v2718_v44 = vpop.permute.xlu1 %2717  ;;  %v2492_v45 = vpop.permute.xlu0 %2491 }
 0x3bb   : > { %2749 = vrot.lane.b32.xlu0 %v2745_v46, %s4605_s16 }
 0x3bf   : > { %v5293_v47 = vpop.permute.xlu1 %2511  ;;  %v2270_v48 = vpop.permute.xlu0 %2269 }
 0x3c0   : > { %v2280_v50 = vsel %vm1292_vm10, %v2270_v48, %v2276_v30  ;;  %v2531_v32 = vmul.f32 %v5293_v47, %v5183_v42 }
 0x3c1   : > { %v2306_v51 = vmul.f32 %v2280_v50, %v5266_v2 }
 0x3c3   : > { %2311 = vrot.lane.b32.xlu0 %v2306_v51, %s5646_s26 }
 0x3c7   : > { %v2738_v29 = vpop.permute.xlu1 %2737  ;;  %v2256_v43 = vpop.permute.xlu0 %2255 }
 0x3c8   : > { %v2266_v52 = vsel %vm1292_vm10, %v2256_v43, %v2262_v34  ;;  %v4092_v34 = vpop.eup %4091  ;;  %v2757_v6 = vmul.f32 %v2738_v29, %v5183_v42  ;;  %v2743_v38 = vmul.f32 %v2738_v29, %v5197_v10  ;;  %v2517_v29 = vmul.f32 %v5293_v47, %v5197_v10 }
 0x3c9   : > { %v2292_v57 = vmul.f32 %v2266_v52, %v5266_v2  ;;  %v1674_v36 = vadd.f32 1.0, %v4092_v34 }
 0x3cb   : > { %2082 = vrot.lane.b32.xlu0 %v5183_v42, %s4600_s1  ;;  %2297 = vrot.lane.b32.xlu1 %v2292_v57, %s5646_s26  ;;  %4093 = vrcp.f32 %v1674_v36  ;;  %v1687_v51 = vand.u32 2147483648, %v1674_v36  ;;  %vm1681_vm2 = vweird.f32 %v1674_v36  ;;  %v1685_v43 = vand.u32 2147483647, %v1674_v36  ;;  %s3862_s26 = sshll.u32 %s4801_s0, 4 }
 0x3cd   : > { %v1688_v57 = vor.u32 1.1754944e-38, %v1687_v51  ;;  %vm1686_vm12 = vcmp.eq.f32.partialorder %v1685_v43, 8.507059e+37 }
 0x3cf   : > { %v5303_v58 = vpop.permute.xlu1 %2513  ;;  %v2712_v59 = vpop.permute.xlu0 %2711 }
 0x3d0   : > { %v2722_v0 = vsel %vm1292_vm10, %v2712_v59, %v2718_v44  ;;  %v2286_v44 = vpop.permute.xlu2 %2285 }
 0x3d1   : > { %v2746_v4 = vmul.f32 %v2722_v0, %v5266_v2  ;;  %v4094_v37 = vpop.eup %4093 }
 0x3d2   : > { %vm1682_vm1 = vweird.f32 %v4094_v37 }
 0x3d3   : > { %2062 = vrot.lane.b32.xlu0 %v5197_v10, %s4600_s1  ;;  %s4607_s1 = smov 112   ;;  %vm1683_vm5 = vmor %vm1681_vm2, %vm1682_vm1 }
 0x3d7   : > { %v5307_v60 = vpop.permute.xlu1 %2074  ;;  %v2310_v18 = vpop.permute.xlu0 %2309 }
 0x3d8   : > { %v2315_v21 = vadd.f32 %v2310_v18, %v2303_v20 }
 0x3db   : > { %2739 = vrot.lane.b32.xlu0 %v5225_v62, %s4605_s16 }
 0x3df   : > { %v2500_v1 = vpop.permute.xlu1 %2499 }
 0x3e0   : > { %v2510_v3 = vsel %vm1292_vm10, %v2500_v1, %v2506_v41  ;;  %v1677_v41 = vmul.f32 %v4094_v37, %v1674_v36 }
 0x3e1   : > { %v2534_v5 = vmul.f32 %v2510_v3, %v5266_v2 }
 0x3e2   : > { %v1678_v28 = vsub.f32 1.0, %v1677_v41 }
 0x3e3   : > { %2539 = vrot.lane.b32.xlu1 %v2534_v5, %s4604_s22  ;;  %2751 = vrot.lane.b32.xlu0 %v2746_v4, %s4605_s16  ;;  %v2096_v4 = vmul.f32 %v5183_v42, %v5217_v61 }
 0x3e7   : > { %v2486_v7 = vpop.permute.xlu1 %2485 }
 0x3e8   : > { %v2496_v8 = vsel %vm1292_vm10, %v2486_v7, %v2492_v45  ;;  %v1679_v45 = vmul.f32 %v4094_v37, %v1678_v28 }
 0x3e9   : > { %v2520_v55 = vmul.f32 %v2496_v8, %v5266_v2 }
 0x3ea   : > { %v1680_v50 = vadd.f32 %v4094_v37, %v1679_v45 }
 0x3eb   : > { %2525 = vrot.lane.b32.xlu1 %v2520_v55, %s4604_s22 }
 0x3ec   : > { %v1684_v52 = vsel %vm1683_vm5, %v4094_v37, %v1680_v50 }
 0x3ed   : > { %v1689_v3 = vsel %vm1686_vm12, %v1688_v57, %v1684_v52 }
 0x3ee   : > { %v5362_v8 = vmul.f32 %v1689_v3, %v5176_v33  ;;  %v5409_v3 = vpop.f32.mrf.mxu2 }
 0x3ef   : > { %v2726_v62 = vpop.permute.xlu1 %2725 }
 0x3f0   : > { %v2736_v11 = vsel %vm1292_vm10, %v2726_v62, %v2732_v9 }
 0x3f1   : > { %v2760_v15 = vmul.f32 %v2736_v11, %v5266_v2 }
 0x3f3   : > { %2765 = vrot.lane.b32.xlu1 %v2760_v15, %s4605_s16  ;;  %v2518_v15 = vmul.f32 %v5303_v58, %v5187_v53  ;;  %s5705_s16 = sld [smem:[#allocation38_spill]] }
 0x3fb   : > { %2321 = vrot.lane.b32.xlu1 %v2315_v21, %s4606_s10 }
 0x3fd   : > { %v2296_v22 = vpop.permute.xlu1 %2295 }
 0x3fe   : > { %v5326_v26 = vadd.f32 %v2296_v22, %v2289_v23 }
 0x405   : > { %v2201_v30 = vpop.f32.mrf.mxu0 }
 0x406   : > { %v2204_v54 = vmul.f32 0.35355338, %v2201_v30 }
 0x408   : > { %v5336_v17 = vsel %vm5330_vm11, %v2204_v54, -1e+30 }
 0x409   : > { %v2206_v19 = vsel %vm2102_vm9, %v5336_v17, -inf }
 0x40a   : > { %2207 = vmax.xlane.f32.xlu2 %v2206_v19 }
 0x40d   : > { %v2538_v24 = vpop.permute.xlu0 %2537 }
 0x40e   : > { %v2543_v12 = vadd.f32 %v2538_v24, %v2531_v32  ;;  %v2090_v24 = vmul.f32 %v5197_v10, %v5217_v61 }
 0x410   : > { %2549 = vrot.lane.b32.xlu1 %v2543_v12, %s4607_s1 }
 0x41d   : > { %v2524_v35 = vpop.permute.xlu0 %2523 }
 0x41e   : > { %v2529_v0 = vadd.f32 %v2524_v35, %v2517_v29 }
 0x422   : > { %2054 = vrot.lane.b32.xlu2 %v5200_v49, %s4599_s20  ;;  %v2304_v49 = vmul.f32 %v2286_v44, %v5189_v56  ;;  %s4609_s20 = smov 80  }
 0x425   : > { %v2764_v31 = vpop.permute.xlu0 %2763 }
 0x426   : > { %v2769_v25 = vadd.f32 %v2764_v31, %v2757_v6 }
 0x428   : > { %2775 = vrot.lane.b32.xlu1 %v2769_v25, %s4608_s28 }
 0x42d   : > { %v2750_v39 = vpop.permute.xlu0 %2749 }
 0x42e   : > { %v5349_v40 = vadd.f32 %v2750_v39, %v2743_v38 }
 0x435   : > { %v2312_v46 = vpop.permute.xlu0 %2311 }
 0x436   : > { %v2316_v48 = vadd.f32 %v2312_v46, %v2304_v49 }
 0x438   : > { %2404 = vrot.lane.b32.xlu0 %v2316_v48, %s4606_s10 }
 0x43d   : > { %v2083_v59 = vpop.permute.xlu0 %2082  ;;  %v2298_v55 = vpop.permute.xlu1 %2297 }
 0x43e   : > { %v2088_v1 = vsel %vm1292_vm10, %v5307_v60, %v2083_v59  ;;  %v2532_v60 = vmul.f32 %v5303_v58, %v5189_v56 }
 0x43f   : > { %v2098_v5 = vmul.f32 %v2088_v1, %v5256_v63 }
 0x440   : > { %2546 = vrot.lane.b32.xlu0 %v2529_v0, %s4607_s1 }
 0x441   : > { %v2100_v7 = vadd.f32 %v2098_v5, %v2096_v4  ;;  %v5411_v5 = vpop.f32.mrf.mxu2 }
 0x443   : > { %3705 = vmatpush.xpose.msk.msra.mxu3 %vm2102_vm9, %v2100_v7 }
 0x445   : > { %v2063_v47 = vpop.permute.xlu0 %2062 }
 0x447   : > { %2173 = vmatpush.msrb.mxu3 %v5362_v8 }
 0x44d   : > { %v2740_v9 = vpop.permute.xlu0 %2739 }
 0x44e   : > { %v2744_v33 = vmul.f32 %v2740_v9, %v5187_v53  ;;  %v2758_v21 = vmul.f32 %v2740_v9, %v5189_v56 }
 0x455   : > { %v2540_v62 = vpop.permute.xlu1 %2539  ;;  %v2752_v11 = vpop.permute.xlu0 %2751 }
 0x456   : > { %v2544_v42 = vadd.f32 %v2540_v62, %v2532_v60  ;;  %v2756_v18 = vadd.f32 %v2752_v11, %v2744_v33 }
 0x458   : > { %2631 = vrot.lane.b32.xlu0 %v2544_v42, %s4607_s1 }
 0x45d   : > { %v2526_v16 = vpop.permute.xlu1 %2525 }
 0x45e   : > { %v2530_v20 = vadd.f32 %v2526_v16, %v2518_v15 }
 0x460   : > { %2628 = vrot.lane.b32.xlu1 %v2530_v20, %s4607_s1  ;;  %2854 = vrot.lane.b32.xlu0 %v2756_v18, %s4608_s28 }
 0x465   : > { %v2766_v23 = vpop.permute.xlu1 %2765 }
 0x466   : > { %v2770_v22 = vadd.f32 %v2766_v23, %v2758_v21 }
 0x46d   : > { %v2322_v27 = vpop.permute.xlu1 %2321 }
 0x46e   : > { %3711 = vmatpush.xpose.msk.msra.mxu2 %vm2102_vm9, %v2322_v27 }
 0x47d   : > { %v2208_v30 = vpop.xlane.xlu2 %2207 }
 0x47e   : > { %v2209_v54 = vsub.f32 %v5336_v17, %v2208_v30  ;;  %v2290_v17 = vmul.f32 %v2286_v44, %v5187_v53 }
 0x480   : > { %v2210_v58 = vmul.f32 1.442695, %v2209_v54  ;;  %v2302_v35 = vadd.f32 %v2298_v55, %v2290_v17 }
 0x482   : > { %4095 = vpow2.f32 %v2210_v58  ;;  %v2550_v6 = vpop.permute.xlu1 %2549 }
 0x485   : > { %v2055_v19 = vpop.permute.xlu2 %2054 }
 0x486   : > { %v2068_v32 = vsel %vm1292_vm10, %v2055_v19, %v2063_v47 }
 0x487   : > { %v2092_v12 = vmul.f32 %v2068_v32, %v5256_v63  ;;  %v5392_v63 = vpop.f32.mrf.mxu3 }
 0x488   : > { %v4096_v13 = vpop.eup %4095 }
 0x489   : > { %v2094_v56 = vadd.f32 %v2092_v12, %v2090_v24  ;;  %v2212_v34 = vsel %vm2102_vm9, %v4096_v13, 0.0 }
 0x48a   : > { %2213 = vadd.xlane.f32.xlu2 %v2212_v34 }
 0x48b   : > { %3706 = vmatmul.msk.f32.vlgmr.msra.gmra.mxu3 %vm2102_vm9, %v2094_v56 }
 0x48f   : > { %v5394_v37 = vpop.f32.mrf.mxu3 }
 0x49a   : > { %v2776_v45 = vpop.permute.xlu1 %2775 }
 0x4a2   : > { %2318 = vrot.lane.b32.xlu2 %v5326_v26, %s4606_s10 }
 0x4aa   : > { %2401 = vrot.lane.b32.xlu2 %v2302_v35, %s4606_s10  ;;  %v2405_v36 = vpop.permute.xlu0 %2404  ;;  %s4611_s10 = smov 32  }
 0x4ab   : > { %3714 = vmatpush.xpose.msk.msrb.mxu0 %vm2102_vm9, %v2405_v36  ;;  %v4053_v36 = vpack.i.bf16 %v5178_v14, %v5362_v8 }
 0x4b2   : > { %2772 = vrot.lane.b32.xlu2 %v5349_v40, %s4608_s28  ;;  %v2547_v10 = vpop.permute.xlu0 %2546 }
 0x4ba   : > { %2857 = vrot.lane.b32.xlu2 %v2770_v22, %s4608_s28  ;;  %s5708_s28 = sld [smem:[#allocation44_spill]] }
 0x4ca   : > { %v2632_v61 = vpop.permute.xlu0 %2631 }
 0x4cb   : > { %3720 = vmatpush.xpose.msk.msra.mxu0 %vm2102_vm9, %v2632_v61 }
 0x4d2   : > { %v2629_v57 = vpop.permute.xlu1 %2628  ;;  %v2855_v1 = vpop.permute.xlu0 %2854 }
 0x4fd   : > { %v2214_v26 = vpop.xlane.xlu2 %2213 }
 0x4fe   : > { %4097 = vrcp.f32 %v2214_v26  ;;  %v2226_v38 = vand.u32 2147483648, %v2214_v26  ;;  %v2224_v40 = vand.u32 2147483647, %v2214_v26  ;;  %vm2220_vm13 = vweird.f32 %v2214_v26 }
 0x500   : > { %v2227_v44 = vor.u32 1.1754944e-38, %v2226_v38  ;;  %vm2225_vm15 = vcmp.eq.f32.partialorder %v2224_v40, 8.507059e+37 }
 0x504   : > { %v4098_v53 = vpop.eup %4097 }
 0x505   : > { %v2216_v31 = vmul.f32 %v4098_v53, %v2214_v26  ;;  %v2319_v25 = vpop.permute.xlu2 %2318  ;;  %vm2221_vm10 = vweird.f32 %v4098_v53 }
 0x506   : > { %vm2222_vm14 = vmor %vm2220_vm13, %vm2221_vm10 }
 0x507   : > { %v2217_v41 = vsub.f32 1.0, %v2216_v31 }
 0x509   : > { %v2218_v39 = vmul.f32 %v4098_v53, %v2217_v41 }
 0x50b   : > { %v2219_v28 = vadd.f32 %v4098_v53, %v2218_v39 }
 0x50d   : > { %v2223_v49 = vsel %vm2222_vm14, %v4098_v53, %v2219_v28  ;;  %v2402_v46 = vpop.permute.xlu2 %2401 }
 0x50e   : > { %v2228_v48 = vsel %vm2225_vm15, %v2227_v44, %v2223_v49  ;;  %v2126_v50 = vpop.f32.mrf.mxu3  ;;  %3715 = vmatmul.msk.f32.vlgmr.msrb.gmra.mxu0 %vm2102_vm9, %v2402_v46 }
 0x50f   : > { %v2129_v51 = vmul.f32 0.35355338, %v2126_v50  ;;  %v2229_v43 = vmul.f32 %v4096_v13, %v2228_v48 }
 0x511   : > { %3710 = vmatmul.msk.f32.vlgmr.msrb.gmra.mxu2 %vm2102_vm9, %v2229_v43  ;;  %v2130_v52 = vsel %vm5330_vm11, %v2129_v51, -1e+30 }
 0x512   : > { %3717 = vmatpush.xpose.msk.msrb.mxu2 %vm2102_vm9, %v2550_v6  ;;  %v2131_v29 = vsel %vm2102_vm9, %v2130_v52, -inf }
 0x513   : > { %2132 = vmax.xlane.f32.xlu1 %v2131_v29 }
 0x515   : > { %v2773_v59 = vpop.permute.xlu2 %2772 }
 0x516   : > { %3721 = vmatmul.msk.f32.vlgmr.msra.gmra.mxu0 %vm2102_vm9, %v2629_v57 }
 0x519   : > { %3712 = vmatmul.msk.f32.vlgmr.msra.gmra.mxu2 %vm2102_vm9, %v2319_v25 }
 0x51a   : > { %3723 = vmatpush.xpose.msk.msra.mxu2 %vm2102_vm9, %v2776_v45 }
 0x51d   : > { %v2858_v0 = vpop.permute.xlu2 %2857 }
 0x51e   : > { %3726 = vmatpush.xpose.msk.msrb.mxu0 %vm2102_vm9, %v2858_v0 }
 0x521   : > { %3718 = vmatmul.msk.f32.vlgmr.msrb.gmra.mxu2 %vm2102_vm9, %v2547_v10  ;;  %3727 = vmatmul.msk.f32.vlgmr.msrb.gmra.mxu0 %vm2102_vm9, %v2855_v1 }
 0x529   : > { %3724 = vmatmul.msk.f32.vlgmr.msra.gmra.mxu2 %vm2102_vm9, %v2773_v59 }
 0x586   : > { %v2133_v62 = vpop.xlane.xlu1 %2132 }
 0x587   : > { %v2134_v33 = vsub.f32 %v2130_v52, %v2133_v62 }
 0x589   : > { %v2135_v20 = vmul.f32 1.442695, %v2134_v33 }
 0x58b   : > { %v2427_v4 = vpop.f32.mrf.mxu0  ;;  %4099 = vpow2.f32 %v2135_v20 }
 0x58c   : > { %v2430_v7 = vmul.f32 0.35355338, %v2427_v4 }
 0x58e   : > { %v2431_v47 = vsel %vm5330_vm11, %v2430_v7, -1e+30 }
 0x58f   : > { %v2432_v55 = vsel %vm2102_vm9, %v2431_v47, -inf }
 0x590   : > { %2433 = vmax.xlane.f32.xlu0 %v2432_v55 }
 0x591   : > { %v5429_v13 = vpop.eup %4099 }
 0x592   : > { %v2137_v35 = vsel %vm2102_vm9, %v5429_v13, 0.0 }
 0x593   : > { %v2654_v11 = vpop.f32.mrf.mxu0 }
 0x594   : > { %v5416_v9 = vpop.f32.mrf.mxu2  ;;  %v2657_v18 = vmul.f32 0.35355338, %v2654_v11 }
 0x596   : > { %v2658_v22 = vsel %vm5330_vm11, %v2657_v18, -1e+30 }
 0x597   : > { %v2659_v54 = vsel %vm2102_vm9, %v2658_v22, -inf }
 0x59c   : > { %v2344_v60 = vpop.f32.mrf.mxu2 }
 0x59d   : > { %v2347_v42 = vmul.f32 0.35355338, %v2344_v60 }
 0x59e   : > { %v2880_v27 = vpop.f32.mrf.mxu0 }
 0x59f   : > { %v2348_v15 = vsel %vm5330_vm11, %v2347_v42, -1e+30  ;;  %v2883_v19 = vmul.f32 0.35355338, %v2880_v27 }
 0x5a0   : > { %v2349_v16 = vsel %vm2102_vm9, %v2348_v15, -inf }
 0x5a1   : > { %2350 = vmax.xlane.f32.xlu2 %v2349_v16  ;;  %v2884_v12 = vsel %vm5330_vm11, %v2883_v19, -1e+30 }
 0x5a2   : > { %v2885_v17 = vsel %vm2102_vm9, %v2884_v12, -inf }
 0x5a4   : > { %v2572_v21 = vpop.f32.mrf.mxu2 }
 0x5a5   : > { %v2575_v23 = vmul.f32 0.35355338, %v2572_v21 }
 0x5a7   : > { %v2576_v30 = vsel %vm5330_vm11, %v2575_v23, -1e+30 }
 0x5a8   : > { %v2577_v58 = vsel %vm2102_vm9, %v2576_v30, -inf }
 0x5a9   : > { %2660 = vmax.xlane.f32.xlu2 %v2659_v54  ;;  %2578 = vmax.xlane.f32.xlu1 %v2577_v58 }
 0x5ac   : > { %v2798_v32 = vpop.f32.mrf.mxu2 }
 0x5ad   : > { %v2801_v24 = vmul.f32 0.35355338, %v2798_v32 }
 0x5af   : > { %v2802_v56 = vsel %vm5330_vm11, %v2801_v24, -1e+30 }
 0x5b0   : > { %v2803_v34 = vsel %vm2102_vm9, %v2802_v56, -inf }
 0x5b1   : > { %2804 = vmax.xlane.f32.xlu0 %v2803_v34  ;;  %2886 = vmax.xlane.f32.xlu1 %v2885_v17 }
 0x5b2   : > { %2138 = vadd.xlane.f32.xlu2 %v2137_v35 }
 0x5c5   : > { %4054 = vrot.lane.b32.xlu0 %v4053_v36, %s4607_s1  ;;  %s4612_s1 = smov 48  }
 0x603   : > { %v2434_v10 = vpop.xlane.xlu0 %2433 }
 0x604   : > { %v2435_v61 = vsub.f32 %v2431_v47, %v2434_v10 }
 0x606   : > { %v2436_v26 = vmul.f32 1.442695, %v2435_v61 }
 0x608   : > { %4101 = vpow2.f32 %v2436_v26 }
 0x60e   : > { %v5440_v2 = vpop.eup %4101 }
 0x60f   : > { %v2438_v53 = vsel %vm2102_vm9, %v5440_v2, 0.0 }
 0x610   : > { %2439 = vadd.xlane.f32.xlu1 %v2438_v53 }
 0x614   : > { %v2351_v6 = vpop.xlane.xlu2 %2350 }
 0x615   : > { %v2352_v31 = vsub.f32 %v2348_v15, %v2351_v6 }
 0x617   : > { %v2353_v25 = vmul.f32 1.442695, %v2352_v31 }
 0x619   : > { %4103 = vpow2.f32 %v2353_v25 }
 0x61c   : > { %v2661_v41 = vpop.xlane.xlu2 %2660  ;;  %v2579_v38 = vpop.xlane.xlu1 %2578 }
 0x61d   : > { %v2662_v39 = vsub.f32 %v2658_v22, %v2661_v41  ;;  %v2580_v40 = vsub.f32 %v2576_v30, %v2579_v38 }
 0x61f   : > { %v5444_v28 = vpop.eup %4103  ;;  %v2663_v44 = vmul.f32 1.442695, %v2662_v39  ;;  %v2581_v45 = vmul.f32 1.442695, %v2580_v40 }
 0x620   : > { %v2355_v49 = vsel %vm2102_vm9, %v5444_v28, 0.0 }
 0x621   : > { %4105 = vpow2.f32 %v2663_v44  ;;  %2356 = vadd.xlane.f32.xlu0 %v2355_v49 }
 0x622   : > { %4107 = vpow2.f32 %v2581_v45 }
 0x624   : > { %v2805_v46 = vpop.xlane.xlu0 %2804  ;;  %v2887_v48 = vpop.xlane.xlu1 %2886 }
 0x625   : > { %v2806_v50 = vsub.f32 %v2802_v56, %v2805_v46  ;;  %v2139_v51 = vpop.xlane.xlu2 %2138  ;;  %v2888_v43 = vsub.f32 %v2884_v12, %v2887_v48 }
 0x626   : > { %4109 = vrcp.f32 %v2139_v51  ;;  %v2151_v62 = vand.u32 2147483648, %v2139_v51  ;;  %v2149_v15 = vand.u32 2147483647, %v2139_v51  ;;  %vm2145_vm4 = vweird.f32 %v2139_v51 }
 0x627   : > { %v5448_v52 = vpop.eup %4105  ;;  %v2807_v29 = vmul.f32 1.442695, %v2806_v50  ;;  %v2889_v57 = vmul.f32 1.442695, %v2888_v43 }
 0x628   : > { %v5450_v59 = vpop.eup %4107  ;;  %v2665_v0 = vsel %vm2102_vm9, %v5448_v52, 0.0  ;;  %v2152_v18 = vor.u32 1.1754944e-38, %v2151_v62  ;;  %vm2150_vm7 = vcmp.eq.f32.partialorder %v2149_v15, 8.507059e+37 }
 0x629   : > { %4111 = vpow2.f32 %v2807_v29  ;;  %2666 = vadd.xlane.f32.xlu1 %v2665_v0  ;;  %v2583_v1 = vsel %vm2102_vm9, %v5450_v59, 0.0 }
 0x62a   : > { %4113 = vpow2.f32 %v2889_v57  ;;  %2584 = vadd.xlane.f32.xlu2 %v2583_v1 }
 0x62c   : > { %v4110_v4 = vpop.eup %4109 }
 0x62d   : > { %v2141_v7 = vmul.f32 %v4110_v4, %v2139_v51  ;;  %vm2146_vm3 = vweird.f32 %v4110_v4 }
 0x62e   : > { %vm2147_vm6 = vmor %vm2145_vm4, %vm2146_vm3 }
 0x62f   : > { %v5456_v47 = vpop.eup %4111  ;;  %v2142_v55 = vsub.f32 1.0, %v2141_v7 }
 0x630   : > { %v5458_v60 = vpop.eup %4113  ;;  %v2809_v42 = vsel %vm2102_vm9, %v5456_v47, 0.0 }
 0x631   : > { %v2143_v11 = vmul.f32 %v4110_v4, %v2142_v55  ;;  %v2891_v33 = vsel %vm2102_vm9, %v5458_v60, 0.0 }
 0x632   : > { %2810 = vadd.xlane.f32.xlu2 %v2809_v42  ;;  %2892 = vadd.xlane.f32.xlu1 %v2891_v33 }
 0x633   : > { %v2144_v16 = vadd.f32 %v4110_v4, %v2143_v11 }
 0x635   : > { %v2148_v20 = vsel %vm2147_vm6, %v4110_v4, %v2144_v16  ;;  %2827 = vrot.lane.b32.xlu0 %v5362_v8, %s4609_s20 }
 0x636   : > { %v2153_v21 = vsel %vm2150_vm7, %v2152_v18, %v2148_v20 }
 0x637   : > { %v4055_v23 = vpop.permute.xlu0 %4054  ;;  %v2154_v22 = vmul.f32 %v5429_v13, %v2153_v21 }
 0x638   : > { %v4057_v27 = vunpack.i.h.bf16 %v4055_v23  ;;  %v4056_v30 = vunpack.i.l.bf16 %v4055_v23 }
 0x639   : > { %3707 = vmatmul.msk.f32.vlgmr.msrb.gmra.mxu3 %vm2102_vm9, %v2154_v22 }
 0x63a   : > { %2395 = vmatpush.msra.mxu3 %v4056_v30 }
 0x63c   : > { %2478 = vmatpush.msrb.mxu3 %v4057_v27 }
 0x63d   : > { %2909 = vrot.lane.b32.xlu0 %v5178_v14, %s4609_s20  ;;  %s5709_s20 = smov %s5708_s28 }
 0x64a   : > { %2601 = vrot.lane.b32.xlu2 %v5362_v8, %s4610_s6 }
 0x64b   : > { %2683 = vrot.lane.b32.xlu1 %v5178_v14, %s4610_s6  ;;  %s5710_s6 = sld [smem:[#allocation40_spill]] }
 0x683   : > { %v2440_v54 = vpop.xlane.xlu1 %2439 }
 0x684   : > { %4115 = vrcp.f32 %v2440_v54  ;;  %v2452_v45 = vand.u32 2147483648, %v2440_v54  ;;  %vm2446_vm12 = vweird.f32 %v2440_v54  ;;  %v2450_v49 = vand.u32 2147483647, %v2440_v54 }
 0x686   : > { %v2453_v29 = vor.u32 1.1754944e-38, %v2452_v45  ;;  %vm2451_vm13 = vcmp.eq.f32.partialorder %v2450_v49, 8.507059e+37  ;;  %v4062_v45 = vld [vmem:[#allocation16] ss:$0 sm:$0xff] }
 0x68a   : > { %v4116_v19 = vpop.eup %4115 }
 0x68b   : > { %v2442_v24 = vmul.f32 %v4116_v19, %v2440_v54  ;;  %vm2447_vm5 = vweird.f32 %v4116_v19 }
 0x68c   : > { %vm2448_vm10 = vmor %vm2446_vm12, %vm2447_vm5 }
 0x68d   : > { %v2443_v8 = vsub.f32 1.0, %v2442_v24 }
 0x68f   : > { %v2444_v61 = vmul.f32 %v4116_v19, %v2443_v8 }
 0x691   : > { %v2445_v39 = vadd.f32 %v4116_v19, %v2444_v61 }
 0x693   : > { %v2449_v48 = vsel %vm2448_vm10, %v4116_v19, %v2445_v39 }
 0x694   : > { %v2357_v58 = vpop.xlane.xlu0 %2356  ;;  %v2454_v4 = vsel %vm2451_vm13, %v2453_v29, %v2449_v48  ;;  %v3844_v29 = vld [vmem:[%s5705_s16 + $0x10] sm:$0xff] }
 0x695   : > { %4117 = vrcp.f32 %v2357_v58  ;;  %v2369_v14 = vand.u32 2147483648, %v2357_v58  ;;  %v2367_v35 = vand.u32 2147483647, %v2357_v58  ;;  %vm2363_vm11 = vweird.f32 %v2357_v58 }
 0x696   : > { %v2455_v15 = vmul.f32 %v5440_v2, %v2454_v4 }
 0x697   : > { %v2370_v6 = vor.u32 1.1754944e-38, %v2369_v14  ;;  %vm2368_vm2 = vcmp.eq.f32.partialorder %v2367_v35, 8.507059e+37 }
 0x69b   : > { %v4118_v32 = vpop.eup %4117 }
 0x69c   : > { %v2359_v12 = vmul.f32 %v4118_v32, %v2357_v58  ;;  %v5470_v13 = vpop.xlane.xlu1 %2666  ;;  %vm2364_vm8 = vweird.f32 %v4118_v32 }
 0x69d   : > { %v5472_v56 = vpop.xlane.xlu2 %2584  ;;  %4119 = vrcp.f32 %v5470_v13  ;;  %vm2365_vm1 = vmor %vm2363_vm11, %vm2364_vm8  ;;  %v2679_v22 = vand.u32 2147483648, %v5470_v13  ;;  %vm2673_vm7 = vweird.f32 %v5470_v13  ;;  %v2677_v2 = vand.u32 2147483647, %v5470_v13 }
 0x69e   : > { %v2360_v34 = vsub.f32 1.0, %v2359_v12  ;;  %4121 = vrcp.f32 %v5472_v56  ;;  %v2597_v42 = vand.u32 2147483648, %v5472_v56  ;;  %vm2591_vm15 = vweird.f32 %v5472_v56 }
 0x69f   : > { %v2595_v11 = vand.u32 2147483647, %v5472_v56  ;;  %v2680_v19 = vor.u32 1.1754944e-38, %v2679_v22 }
 0x6a0   : > { %v2361_v17 = vmul.f32 %v4118_v32, %v2360_v34  ;;  %v2598_v23 = vor.u32 1.1754944e-38, %v2597_v42 }
 0x6a1   : > { %vm2596_vm6 = vcmp.eq.f32.partialorder %v2595_v11, 8.507059e+37 }
 0x6a2   : > { %v2362_v36 = vadd.f32 %v4118_v32, %v2361_v17 }
 0x6a3   : > { %v5476_v10 = vpop.eup %4119 }
 0x6a4   : > { %v4122_v26 = vpop.eup %4121  ;;  %v2366_v53 = vsel %vm2365_vm1, %v4118_v32, %v2362_v36  ;;  %v2669_v44 = vmul.f32 %v5476_v10, %v5470_v13  ;;  %vm2674_vm4 = vweird.f32 %v5476_v10  ;;  %vm2678_vm1 = vcmp.eq.f32.partialorder %v2677_v2, 8.507059e+37 }
 0x6a5   : > { %v2587_v31 = vmul.f32 %v4122_v26, %v5472_v56  ;;  %v5479_v25 = vpop.xlane.xlu2 %2810  ;;  %v5481_v41 = vpop.xlane.xlu1 %2892  ;;  %v2371_v38 = vsel %vm2368_vm2, %v2370_v6, %v2366_v53  ;;  %vm2592_vm14 = vweird.f32 %v4122_v26  ;;  %vm2675_vm8 = vmor %vm2673_vm7, %vm2674_vm4 }
 0x6a6   : > { %4123 = vrcp.f32 %v5479_v25  ;;  %v2372_v46 = vmul.f32 %v5444_v28, %v2371_v38  ;;  %v2670_v51 = vsub.f32 1.0, %v2669_v44  ;;  %vm2593_vm3 = vmor %vm2591_vm15, %vm2592_vm14  ;;  %v2823_v32 = vand.u32 2147483648, %v5479_v25 }
 0x6a7   : > { %v2588_v40 = vsub.f32 1.0, %v2587_v31  ;;  %4125 = vrcp.f32 %v5481_v41  ;;  %v2828_v21 = vpop.permute.xlu0 %2827  ;;  %vm2817_vm2 = vweird.f32 %v5479_v25  ;;  %v2821_v24 = vand.u32 2147483647, %v5479_v25 }
 0x6a8   : > { %3713 = vmatmul.msk.f32.vlgmr.msra.gmra.mxu3 %vm2102_vm9, %v2372_v46  ;;  %v2671_v28 = vmul.f32 %v5476_v10, %v2670_v51  ;;  %v2824_v8 = vor.u32 1.1754944e-38, %v2823_v32  ;;  %v2905_v17 = vand.u32 2147483648, %v5481_v41  ;;  %vm2899_vm13 = vweird.f32 %v5481_v41  ;;  %v3845_v51 = vld [vmem:[%s5705_s16 + $0x18] sm:$0xff] }
 0x6a9   : > { %v2589_v50 = vmul.f32 %v4122_v26, %v2588_v40  ;;  %vm2822_vm10 = vcmp.eq.f32.partialorder %v2821_v24, 8.507059e+37  ;;  %v2903_v14 = vand.u32 2147483647, %v5481_v41  ;;  %3014 = vmatpush.bf16.msrb.mxu2 %v3845_v51 }
 0x6aa   : > { %v2672_v16 = vadd.f32 %v5476_v10, %v2671_v28 }
 0x6ab   : > { %v2590_v7 = vadd.f32 %v4122_v26, %v2589_v50  ;;  %vm2904_vm15 = vcmp.eq.f32.partialorder %v2903_v14, 8.507059e+37 }
 0x6ac   : > { %v4124_v43 = vpop.eup %4123  ;;  %v2676_v30 = vsel %vm2675_vm8, %v5476_v10, %v2672_v16 }
 0x6ad   : > { %v5489_v57 = vpop.eup %4125  ;;  %v2813_v0 = vmul.f32 %v4124_v43, %v5479_v25  ;;  %v2602_v1 = vpop.permute.xlu2 %2601  ;;  %v2594_v33 = vsel %vm2593_vm3, %v4122_v26, %v2590_v7  ;;  %vm2818_vm11 = vweird.f32 %v4124_v43  ;;  %v2681_v56 = vsel %vm2678_vm1, %v2680_v19, %v2676_v30  ;;  %3015 = vmatpush.bf16.msrb.mxu2 %v3844_v29  ;;  %v3842_v7 = vld [vmem:[%s5705_s16] sm:$0xff] }
 0x6ae   : > { %2622 = vmatpush.msra.mxu3 %v2602_v1  ;;  %v2895_v62 = vmul.f32 %v5489_v57, %v5481_v41  ;;  %v2599_v27 = vsel %vm2596_vm6, %v2598_v23, %v2594_v33  ;;  %vm2819_vm5 = vmor %vm2817_vm2, %vm2818_vm11  ;;  %vm2900_vm12 = vweird.f32 %v5489_v57  ;;  %v2906_v26 = vor.u32 1.1754944e-38, %v2905_v17  ;;  %v1934_v25 = vpop.f32.mrf.mxu1 }
 0x6af   : > { %v2814_v55 = vsub.f32 1.0, %v2813_v0  ;;  %v2600_v12 = vmul.f32 %v5450_v59, %v2599_v27  ;;  %v2682_v59 = vmul.f32 %v5448_v52, %v2681_v56  ;;  %vm2901_vm14 = vmor %vm2899_vm13, %vm2900_vm12  ;;  %v2910_v61 = vpop.permute.xlu0 %2909  ;;  %v1935_v49 = vadd.f32 %v4062_v45, %v1934_v25  ;;  %v3843_v0 = vld [vmem:[%s5705_s16 + $0x8] sm:$0xff] }
 0x6b0   : > { %v2896_v20 = vsub.f32 1.0, %v2895_v62  ;;  %3716 = vmatmul.msk.f32.vlgmr.msrb.gmra.mxu3 %vm2102_vm9, %v2455_v15  ;;  %vm2959_vm2 = vcmask 130048   ;;  %vm2965_vm12 = vcmask 392192  }
 0x6b1   : > { %v2815_v18 = vmul.f32 %v4124_v43, %v2814_v55  ;;  %2848 = vmatpush.msrb.mxu3 %v2828_v21  ;;  %v3686_v48 = vmul.f32 -1.442695, %v1935_v49  ;;  %3016 = vmatpush.bf16.msrb.mxu2 %v3843_v0 }
 0x6b2   : > { %v2897_v58 = vmul.f32 %v5489_v57, %v2896_v20 }
 0x6b3   : > { %v2816_v54 = vadd.f32 %v4124_v43, %v2815_v18  ;;  %4127 = vpow2.f32 %v3686_v48 }
 0x6b4   : > { %v2898_v34 = vadd.f32 %v5489_v57, %v2897_v58 }
 0x6b5   : > { %v2820_v13 = vsel %vm2819_vm5, %v4124_v43, %v2816_v54  ;;  %3017 = vmatpush.bf16.msrb.mxu2 %v3842_v7  ;;  %vm2962_vm5 = vcmask 261120  }
 0x6b6   : > { %v2825_v36 = vsel %vm2822_vm10, %v2824_v8, %v2820_v13  ;;  %v2902_v10 = vsel %vm2901_vm14, %v5489_v57, %v2898_v34  ;;  %v1936_v38 = vpop.f32.mrf.mxu1 }
 0x6b7   : > { %v2826_v53 = vmul.f32 %v5456_v47, %v2825_v36  ;;  %v2907_v6 = vsel %vm2904_vm15, %v2906_v26, %v2902_v10  ;;  %v1937_v46 = vadd.f32 %v4062_v45, %v1936_v38  ;;  %v4064_v38 = vld [vmem:[#allocation17] ss:$0 sm:$0xff] }
 0x6b8   : > { %3719 = vmatmul.msk.f32.vlgmr.msra.gmra.mxu3 %vm2102_vm9, %v2600_v12  ;;  %v2908_v31 = vmul.f32 %v5458_v60, %v2907_v6  ;;  %v2027_v51 = vadd.f32 %v4064_v38, %v5411_v5 }
 0x6b9   : > { %v3687_v50 = vmul.f32 -1.442695, %v1937_v46  ;;  %v4128_v43 = vpop.eup %4127 }
 0x6ba   : > { %v1945_v1 = vadd.f32 1.0, %v4128_v43 }
 0x6bb   : > { %4129 = vpow2.f32 %v3687_v50 }
 0x6bc   : > { %v5524_v52 = vpop.f32.mrf.mxu3  ;;  %4131 = vrcp.f32 %v1945_v1  ;;  %vm1952_vm4 = vweird.f32 %v1945_v1  ;;  %v1958_v21 = vand.u32 2147483648, %v1945_v1  ;;  %v1956_v2 = vand.u32 2147483647, %v1945_v1 }
 0x6bd   : > { %v2684_v35 = vpop.permute.xlu1 %2683 }
 0x6be   : > { %2704 = vmatpush.msra.mxu1 %v2684_v35  ;;  %v1959_v32 = vor.u32 1.1754944e-38, %v1958_v21  ;;  %vm1957_vm11 = vcmp.eq.f32.partialorder %v1956_v2, 8.507059e+37 }
 0x6bf   : > { %3722 = vmatmul.msk.f32.vlgmr.msra.gmra.mxu1 %vm2102_vm9, %v2682_v59 }
 0x6c0   : > { %2930 = vmatpush.msrb.mxu1 %v2910_v61  ;;  %3725 = vmatmul.msk.f32.vlgmr.msrb.gmra.mxu3 %vm2102_vm9, %v2826_v53 }
 0x6c1   : > { %v4130_v57 = vpop.eup %4129 }
 0x6c2   : > { %v1946_v4 = vadd.f32 1.0, %v4130_v57  ;;  %v4132_v28 = vpop.eup %4131 }
 0x6c3   : > { %v1948_v62 = vmul.f32 %v4132_v28, %v1945_v1 }
 0x6c4   : > { %4133 = vrcp.f32 %v1946_v4  ;;  %v1973_v23 = vand.u32 2147483648, %v1946_v4  ;;  %vm1967_vm7 = vweird.f32 %v1946_v4  ;;  %v1971_v27 = vand.u32 2147483647, %v1946_v4 }
 0x6c5   : > { %v1949_v11 = vsub.f32 1.0, %v1948_v62 }
 0x6c6   : > { %v1974_v24 = vor.u32 1.1754944e-38, %v1973_v23  ;;  %vm1972_vm1 = vcmp.eq.f32.partialorder %v1971_v27, 8.507059e+37 }
 0x6c7   : > { %3728 = vmatmul.msk.f32.vlgmr.msrb.gmra.mxu1 %vm2102_vm9, %v2908_v31  ;;  %v1950_v33 = vmul.f32 %v4132_v28, %v1949_v11  ;;  %vm1953_vm9 = vweird.f32 %v4132_v28 }
 0x6c8   : > { %vm1954_vm6 = vmor %vm1952_vm4, %vm1953_vm9 }
 0x6c9   : > { %v1951_v18 = vadd.f32 %v4132_v28, %v1950_v33 }
 0x6ca   : > { %v4134_v55 = vpop.eup %4133 }
 0x6cb   : > { %v1963_v42 = vmul.f32 %v4134_v55, %v1946_v4  ;;  %vm1968_vm3 = vweird.f32 %v4134_v55  ;;  %v1955_v58 = vsel %vm1954_vm6, %v4132_v28, %v1951_v18 }
 0x6cc   : > { %vm1969_vm8 = vmor %vm1967_vm7, %vm1968_vm3  ;;  %v1960_v12 = vsel %vm1957_vm11, %v1959_v32, %v1955_v58 }
 0x6cd   : > { %v1964_v15 = vsub.f32 1.0, %v1963_v42  ;;  %v1977_v17 = vmul.f32 %v1960_v12, %v1935_v49 }
 0x6cf   : > { %v1965_v16 = vmul.f32 %v4134_v55, %v1964_v15 }
 0x6d1   : > { %v1966_v20 = vadd.f32 %v4134_v55, %v1965_v16 }
 0x6d3   : > { %v1970_v19 = vsel %vm1969_vm8, %v4134_v55, %v1966_v20 }
 0x6d4   : > { %v1975_v56 = vsel %vm1972_vm1, %v1974_v24, %v1970_v19 }
 0x6d5   : > { %v1978_v14 = vmul.f32 %v1975_v56, %v1937_v46 }
 0x72b   : > { %v2397_v41 = vpop.f32.mrf.mxu3 }
 0x72c   : > { %2937 = vrot.lane.b32.xlu2 %v2397_v41, %s4604_s22 }
 0x733   : > { %v2480_v39 = vpop.f32.mrf.mxu3 }
 0x734   : > { %2939 = vrot.lane.b32.xlu0 %v2480_v39, %s4604_s22  ;;  %s5706_s22 = sld [smem:[#allocation39_spill]] }
 0x73b   : > { %v2624_v47 = vpop.f32.mrf.mxu3 }
 0x73c   : > { %v2706_v40 = vpop.f32.mrf.mxu1  ;;  %2945 = vrot.lane.b32.xlu1 %v2624_v47, %s4611_s10 }
 0x73d   : > { %2947 = vrot.lane.b32.xlu2 %v2706_v40, %s4611_s10  ;;  %v4065_v40 = vld [vmem:[%s5706_s22] ss:$0 sm:$0xff]  ;;  %s5711_s10 = sld [smem:[#allocation41_spill]] }
 0x73e   : > { %s5713_s22 = sld [smem:[#allocation46_spill]] }
 0x743   : > { %v2850_v44 = vpop.f32.mrf.mxu3 }
 0x744   : > { %v2932_v60 = vpop.f32.mrf.mxu1  ;;  %2953 = vrot.lane.b32.xlu0 %v2850_v44, %s4612_s1  ;;  %v2025_v44 = vadd.f32 %v4064_v38, %v5409_v3 }
 0x745   : > { %2955 = vrot.lane.b32.xlu1 %v2932_v60, %s4612_s1  ;;  %s5712_s1 = sld [smem:[#allocation43_spill]] }
 0x786   : > { %v2938_v22 = vpop.permute.xlu2 %2937 }
 0x787   : > { %v2960_v34 = vsel %vm2959_vm2, %v5524_v52, %v2938_v22 }
 0x797   : > { %v2948_v8 = vpop.permute.xlu2 %2947 }
 0x7a6   : > { %v2940_v30 = vpop.permute.xlu0 %2939 }
 0x7a7   : > { %v2961_v13 = vsel %vm2959_vm2, %v5416_v9, %v2940_v30  ;;  %v4063_v9 = vld [vmem:[#allocation13] ss:$0 sm:$0xff] }
 0x7a8   : > { %v2964_v36 = vsel %vm2962_vm5, %v2961_v13, %v2948_v8  ;;  %v1757_v25 = vadd.f32 %v4063_v9, %v5392_v63  ;;  %v1759_v52 = vadd.f32 %v4063_v9, %v5394_v37 }
 0x7aa   : > { %v3648_v41 = vmul.f32 -1.442695, %v1757_v25  ;;  %v3649_v39 = vmul.f32 -1.442695, %v1759_v52 }
 0x7ac   : > { %4135 = vpow2.f32 %v3648_v41 }
 0x7ad   : > { %4137 = vpow2.f32 %v3649_v39 }
 0x7ae   : > { %v2946_v54 = vpop.permute.xlu1 %2945 }
 0x7af   : > { %v2963_v35 = vsel %vm2962_vm5, %v2960_v34, %v2946_v54 }
 0x7b2   : > { %v4136_v60 = vpop.eup %4135 }
 0x7b3   : > { %v1767_v46 = vadd.f32 1.0, %v4136_v60  ;;  %v4138_v50 = vpop.eup %4137 }
 0x7b4   : > { %v5540_v43 = vadd.f32 1.0, %v4138_v50 }
 0x7b5   : > { %v1778_v30 = vand.u32 2147483647, %v1767_v46  ;;  %v1780_v54 = vand.u32 2147483648, %v1767_v46  ;;  %vm1774_vm3 = vweird.f32 %v1767_v46 }
 0x7b6   : > { %v2954_v59 = vpop.permute.xlu0 %2953  ;;  %vm1789_vm2 = vweird.f32 %v5540_v43  ;;  %v1793_v25 = vand.u32 2147483647, %v5540_v43 }
 0x7b7   : > { %v2956_v10 = vpop.permute.xlu1 %2955  ;;  %v2966_v61 = vsel %vm2965_vm12, %v2963_v35, %v2954_v59  ;;  %vm1779_vm6 = vcmp.eq.f32.partialorder %v1778_v30, 8.507059e+37  ;;  %v1781_v8 = vor.u32 1.1754944e-38, %v1780_v54  ;;  %v5553_v35 = vld [vmem:[%s4986_s7] sm:$0xff] }
 0x7b8   : > { %v2967_v26 = vsel %vm2965_vm12, %v2964_v36, %v2956_v10  ;;  %v2968_v53 = vmul.f32 %v2966_v61, %v1977_v17 }
 0x7b9   : > { %v2969_v6 = vmul.f32 %v2967_v26, %v1978_v14 }
 0x7bb   : > { %v2970_v31 = vpack.c.bf16 %v2969_v6, %v2968_v53  ;;  %v1795_v6 = vand.u32 2147483648, %v5540_v43 }
 0x7bd   : > { %3745 = vmatmul.msk.bf16.vlgmr.msrb.gmra.mxu2 %vm1116_vm0, %v2970_v31 }
 0x840   : > { %v3019_v47 = vpop.f32.mrf.mxu2 }
 0x841   : > { %v3020_v45 = vadd.f32 %v4065_v40, %v3019_v47  ;;  %v5566_v47 = vld [vmem:[%s4986_s7 + $0x8] sm:$0xff]  ;;  %s5707_s7 = sld [smem:[#allocation42_spill]] }
 0x843   : > { %v3024_v49 = vadd.f32 %v3020_v45, %v2025_v44 }
 0x845   : > { %v3746_v48 = vmul.f32 -1.442695, %v3024_v49 }
 0x847   : > { %4139 = vpow2.f32 %v3746_v48  ;;  %v4613_v48 = vmov 64.0  }
 0x848   : > { %4141 = vrcp.f32 %v1767_v46  ;;  %v3021_v63 = vpop.f32.mrf.mxu2 }
 0x849   : > { %v3022_v37 = vadd.f32 %v4065_v40, %v3021_v63  ;;  %4143 = vrcp.f32 %v5540_v43  ;;  %v1796_v40 = vor.u32 1.1754944e-38, %v1795_v6 }
 0x84b   : > { %v5542_v29 = vadd.f32 %v3022_v37, %v2027_v51 }
 0x84d   : > { %v4140_v57 = vpop.eup %4139  ;;  %v3747_v0 = vmul.f32 -1.442695, %v5542_v29 }
 0x84e   : > { %v4142_v3 = vpop.eup %4141  ;;  %v3032_v1 = vadd.f32 1.0, %v4140_v57 }
 0x84f   : > { %4145 = vpow2.f32 %v3747_v0  ;;  %v1770_v4 = vmul.f32 %v4142_v3, %v1767_v46  ;;  %v5546_v7 = vpop.eup %4143  ;;  %vm1775_vm13 = vweird.f32 %v4142_v3 }
 0x850   : > { %4147 = vrcp.f32 %v3032_v1  ;;  %v1785_v11 = vmul.f32 %v5546_v7, %v5540_v43  ;;  %v3045_v16 = vand.u32 2147483648, %v3032_v1  ;;  %v3043_v20 = vand.u32 2147483647, %v3032_v1  ;;  %vm1776_vm4 = vmor %vm1774_vm3, %vm1775_vm13 }
 0x851   : > { %v1771_v55 = vsub.f32 1.0, %v1770_v4  ;;  %vm3039_vm14 = vweird.f32 %v3032_v1  ;;  %vm1790_vm8 = vweird.f32 %v5546_v7 }
 0x852   : > { %v1786_v22 = vsub.f32 1.0, %v1785_v11  ;;  %v3046_v27 = vor.u32 1.1754944e-38, %v3045_v16  ;;  %vm3044_vm9 = vcmp.eq.f32.partialorder %v3043_v20, 8.507059e+37  ;;  %vm1791_vm12 = vmor %vm1789_vm2, %vm1790_vm8  ;;  %v3853_v16 = vld [vmem:[%s5708_s28 + $0x18] sm:$0xff]  ;;  %v3852_v20 = vld [vmem:[%s5709_s20 + $0x10] sm:$0xff]  ;;  %s5714_s28 = sld [smem:[#allocation47_spill]] }
 0x853   : > { %v1772_v33 = vmul.f32 %v4142_v3, %v1771_v55  ;;  %3269 = vmatpush.bf16.msra.mxu0 %v3853_v16 }
 0x854   : > { %v1787_v13 = vmul.f32 %v5546_v7, %v1786_v22  ;;  %v3847_v22 = vld [vmem:[%s5707_s7 + $0x8] sm:$0xff] }
 0x855   : > { %v4146_v28 = vpop.eup %4145  ;;  %v1773_v23 = vadd.f32 %v4142_v3, %v1772_v33  ;;  %v3849_v33 = vld [vmem:[%s5707_s7 + $0x18] sm:$0xff] }
 0x856   : > { %v4148_v5 = vpop.eup %4147  ;;  %v3033_v62 = vadd.f32 1.0, %v4146_v28  ;;  %v1788_v26 = vadd.f32 %v5546_v7, %v1787_v13  ;;  %3179 = vmatpush.bf16.msra.mxu3 %v3849_v33 }
 0x857   : > { %v3035_v42 = vmul.f32 %v4148_v5, %v3032_v1  ;;  %vm3040_vm10 = vweird.f32 %v4148_v5  ;;  %v1777_v56 = vsel %vm1776_vm4, %v4142_v3, %v1773_v23  ;;  %3270 = vmatpush.bf16.msra.mxu0 %v3852_v20 }
 0x858   : > { %4149 = vrcp.f32 %v3033_v62  ;;  %vm3041_vm15 = vmor %vm3039_vm14, %vm3040_vm10  ;;  %v3060_v34 = vand.u32 2147483648, %v3033_v62  ;;  %v3058_v14 = vand.u32 2147483647, %v3033_v62  ;;  %v1782_v36 = vsel %vm1779_vm6, %v1781_v8, %v1777_v56 }
 0x859   : > { %v3036_v15 = vsub.f32 1.0, %v3035_v42  ;;  %vm3054_vm11 = vweird.f32 %v3033_v62  ;;  %v1792_v39 = vsel %vm1791_vm12, %v5546_v7, %v1788_v26  ;;  %vm1794_vm10 = vcmp.eq.f32.partialorder %v1793_v25, 8.507059e+37 }
 0x85a   : > { %v3061_v53 = vor.u32 1.1754944e-38, %v3060_v34  ;;  %vm3059_vm5 = vcmp.eq.f32.partialorder %v3058_v14, 8.507059e+37  ;;  %v1797_v44 = vsel %vm1794_vm10, %v1796_v40, %v1792_v39  ;;  %4151 = vrcp.f32 %v4613_v48  ;;  %v4069_v39 = vld [vmem:[%s5712_s1] ss:$0 sm:$0xff]  ;;  %v3860_v40 = vld [vmem:[%s5676_s4 + $0x30] sm:$0xff] }
 0x85b   : > { %v3037_v18 = vmul.f32 %v4148_v5, %v3036_v15 }
 0x85d   : > { %v3038_v21 = vadd.f32 %v4148_v5, %v3037_v18  ;;  %v3848_v18 = vld [vmem:[%s5707_s7 + $0x10] sm:$0xff] }
 0x85e   : > { %v4150_v2 = vpop.eup %4149  ;;  %3180 = vmatpush.bf16.msra.mxu3 %v3848_v18 }
 0x85f   : > { %v3042_v58 = vsel %vm3041_vm15, %v4148_v5, %v3038_v21  ;;  %v3050_v19 = vmul.f32 %v4150_v2, %v3033_v62  ;;  %vm3055_vm7 = vweird.f32 %v4150_v2 }
 0x860   : > { %v3047_v32 = vsel %vm3044_vm9, %v3046_v27, %v3042_v58  ;;  %vm3056_vm1 = vmor %vm3054_vm11, %vm3055_vm7  ;;  %v4152_v50 = vpop.eup %4151  ;;  %v3846_v58 = vld [vmem:[%s5707_s7] sm:$0xff] }
 0x861   : > { %v3064_v24 = vmul.f32 %v3047_v32, %v3024_v49  ;;  %v3051_v12 = vsub.f32 1.0, %v3050_v19  ;;  %v3079_v63 = vmul.f32 64.0, %v4152_v50  ;;  %vm3083_vm13 = vweird.f32 %v4152_v50  ;;  %v3850_v19 = vld [vmem:[%s5709_s20] sm:$0xff] }
 0x862   : > { %3181 = vmatpush.bf16.msra.mxu3 %v3847_v22 }
 0x863   : > { %v3052_v17 = vmul.f32 %v4150_v2, %v3051_v12  ;;  %v3066_v59 = vsub.f32 %v3064_v24, %v5553_v35  ;;  %v3080_v51 = vsub.f32 1.0, %v3079_v63 }
 0x865   : > { %v3053_v10 = vadd.f32 %v4150_v2, %v3052_v17  ;;  %v3068_v61 = vmul.f32 %v3066_v59, %v1782_v36  ;;  %v3081_v37 = vmul.f32 %v4152_v50, %v3080_v51  ;;  %v4066_v36 = vld [vmem:[%s5710_s6] ss:$0 sm:$0xff]  ;;  %s5715_s6 = smov %s5714_s28 }
 0x866   : > { %3182 = vmatpush.bf16.msra.mxu3 %v3846_v58 }
 0x867   : > { %v3057_v31 = vsel %vm3056_vm1, %v4150_v2, %v3053_v10  ;;  %v3070_v9 = vadd.f32 %v5553_v35, %v3068_v61  ;;  %v3082_v43 = vadd.f32 %v4152_v50, %v3081_v37  ;;  %v3851_v2 = vld [vmem:[%s5709_s20 + $0x8] sm:$0xff]  ;;  %v3857_v37 = vld [vmem:[%s5676_s4 + $0x18] sm:$0xff] }
 0x868   : > { %v3062_v41 = vsel %vm3059_vm5, %v3061_v53, %v3057_v31  ;;  %3271 = vmatpush.bf16.msra.mxu0 %v3851_v2  ;;  %v4067_v53 = vld [vmem:[%s5711_s10] ss:$0 sm:$0xff]  ;;  %s1097_s10 = sand.u32 1, %s4545_s23  }
 0x869   : > { %v3065_v52 = vmul.f32 %v3062_v41, %v5542_v29  ;;  %v3072_v38 = vsel %vm1116_vm0, %v3070_v9, 0.0  ;;  %v3084_v29 = vsel %vm3083_vm13, %v4152_v50, %v3082_v43  ;;  %s3599_s1 = sshll.u32 %s1097_s10, 4  ;;  %s3369_s0 = scalar_lea.sflag [#allocation4], %s1097_s10 }
 0x86a   : > { %3073 = vadd.xlane.f32.xlu2 %v3072_v38  ;;  %v3861_v38 = vld [vmem:[%s5676_s4 + $0x38] sm:$0xff]  ;;  %s1099_s2 = scalar_lea.vmem [#allocation19], %s3599_s1 }
 0x86b   : > { %v3067_v60 = vsub.f32 %v3065_v52, %v5566_v47  ;;  %3350 = vmatpush.bf16.msra.mxu1 %v3861_v38  ;;  %s3381_s5 = sshll.u32 %s1099_s2, 4  ;;  %s3382_s5 = int_to_ptr.vmem [resolvable:$true] %s3381_s5 }
 0x86c   : > { %3272 = vmatpush.bf16.msra.mxu0 %v3850_v19 }
 0x86d   : > { %v3069_v45 = vmul.f32 %v3067_v60, %v1797_v44 }
 0x86f   : > { %v3071_v49 = vadd.f32 %v5566_v47, %v3069_v45  ;;  %3351 = vmatpush.bf16.msra.mxu1 %v3860_v40 }
 0x871   : > { %v3075_v46 = vsel %vm1116_vm0, %v3071_v49, 0.0 }
 0x872   : > { %3076 = vadd.xlane.f32.xlu0 %v3075_v46  ;;  %v3858_v46 = vld [vmem:[%s5676_s4 + $0x20] sm:$0xff] }
 0x8dd   : > { %v3074_v57 = vpop.xlane.xlu2 %3073 }
 0x8de   : > { %v3085_v0 = vmul.f32 %v3084_v29, %v3074_v57  ;;  %v3855_v57 = vld [vmem:[%s5676_s4 + $0x8] sm:$0xff] }
 0x8e0   : > { %v3087_v3 = vsub.f32 %v3070_v9, %v3085_v0 }
 0x8e2   : > { %v3089_v1 = vmul.f32 %v3087_v3, %v3087_v3 }
 0x8e4   : > { %v3091_v4 = vsel %vm1116_vm0, %v3089_v1, 0.0 }
 0x8e5   : > { %v3077_v7 = vpop.xlane.xlu0 %3076  ;;  %3092 = vadd.xlane.f32.xlu1 %v3091_v4 }
 0x8e6   : > { %v3086_v28 = vmul.f32 %v3084_v29, %v3077_v7  ;;  %v3854_v7 = vld [vmem:[%s5676_s4] sm:$0xff] }
 0x8e8   : > { %v3088_v55 = vsub.f32 %v3071_v49, %v3086_v28  ;;  %v3859_v49 = vld [vmem:[%s5676_s4 + $0x28] sm:$0xff] }
 0x8e9   : > { %3352 = vmatpush.bf16.msra.mxu1 %v3859_v49 }
 0x8ea   : > { %v3090_v5 = vmul.f32 %v3088_v55, %v3088_v55 }
 0x8ec   : > { %v3094_v62 = vsel %vm1116_vm0, %v3090_v5, 0.0 }
 0x8ed   : > { %3095 = vadd.xlane.f32.xlu2 %v3094_v62  ;;  %3353 = vmatpush.bf16.msra.mxu1 %v3858_v46 }
 0x8f1   : > { %3354 = vmatpush.bf16.msra.mxu1 %v3857_v37 }
 0x958   : > { %v3093_v42 = vpop.xlane.xlu1 %3092 }
 0x959   : > { %v3097_v11 = vmul.f32 %v3093_v42, %v3084_v29 }
 0x95b   : > { %v3099_v15 = vadd.f32 1e-05, %v3097_v11 }
 0x95d   : > { %4153 = vrsqrt.f32 %v3099_v15  ;;  %vm3107_vm15 = vweird.f32 %v3099_v15 }
 0x960   : > { %v3096_v21 = vpop.xlane.xlu2 %3095 }
 0x961   : > { %v3098_v23 = vmul.f32 %v3096_v21, %v3084_v29  ;;  %v3856_v29 = vld [vmem:[%s5676_s4 + $0x10] sm:$0xff]  ;;  %s3380_s4 = scalar_lea.hbm %s5714_s28, %s3862_s26  ;;  %s4487_s26 = scalar_lea.hbm %s5715_s6, 32 }
 0x962   : > { %3355 = vmatpush.bf16.msra.mxu1 %v3856_v29  ;;  %s3383_s7 = sshll.u32 %s3380_s4, 4  ;;  %s3384_s7 = int_to_ptr.hbm [resolvable:$true] %s3383_s7 }
 0x963   : > { %v4154_v27 = vpop.eup %4153  ;;  %v3100_v30 = vadd.f32 1e-05, %v3098_v23 }
 0x964   : > { %v3102_v54 = vmul.f32 %v4154_v27, %v3099_v15  ;;  %vm3108_vm14 = vweird.f32 %v4154_v27 }
 0x965   : > { %4155 = vrsqrt.f32 %v3100_v30  ;;  %vm3109_vm9 = vmor %vm3107_vm15, %vm3108_vm14  ;;  %vm3117_vm4 = vweird.f32 %v3100_v30 }
 0x966   : > { %v3103_v32 = vmul.f32 %v4154_v27, %v3102_v54  ;;  %3356 = vmatpush.bf16.msra.mxu1 %v3855_v57 }
 0x968   : > { %v3104_v24 = vmul.f32 0.5, %v3103_v32 }
 0x96a   : > { %v3105_v12 = vsub.f32 1.5, %v3104_v24  ;;  %3357 = vmatpush.bf16.msra.mxu1 %v3854_v7 }
 0x96b   : > { %v4156_v56 = vpop.eup %4155 }
 0x96c   : > { %v3106_v13 = vmul.f32 %v4154_v27, %v3105_v12  ;;  %v3112_v34 = vmul.f32 %v4156_v56, %v3100_v30  ;;  %vm3118_vm3 = vweird.f32 %v4156_v56 }
 0x96d   : > { %vm3119_vm6 = vmor %vm3117_vm4, %vm3118_vm3 }
 0x96e   : > { %v3113_v8 = vmul.f32 %v4156_v56, %v3112_v34  ;;  %v3110_v17 = vsel %vm3109_vm9, %v4154_v27, %v3106_v13  ;;  %v4068_v27 = vld [vmem:[%s4763_s24] ss:$0 sm:$0xff] }
 0x96f   : > { %v3121_v10 = vmul.f32 %v3110_v17, %v3087_v3 }
 0x970   : > { %v3114_v14 = vmul.f32 0.5, %v3113_v8 }
 0x971   : > { %v3127_v6 = vmul.f32 %v4066_v36, %v3121_v10 }
 0x972   : > { %v3115_v59 = vsub.f32 1.5, %v3114_v14  ;;  %v4070_v14 = vld [vmem:[%s5713_s22] ss:$0 sm:$0xff]  ;;  %s4481_s22 = sshra.s32 %s3384_s7, 4  ;;  %s4482_s22 = int_to_ptr.hbm [resolvable:$true] %s4481_s22 }
 0x973   : > { %v3133_v25 = vadd.f32 %v4067_v53, %v3127_v6  ;;  %s4483_s1 = scalar_lea.hbm %s4482_s22, 16  ;;  %p4488_p8 = scmp.lt.s32.totalorder %s4482_s22, %s5715_s6 }
 0x974   : > { %v3116_v61 = vmul.f32 %v4156_v56, %v3115_v59  ;;  %p4484_p9 = scmp.ne.s32.totalorder %s4482_s22, %s4483_s1  ;;  %p4489_p11 = scmp.lt.s32.totalorder %s4487_s26, %s4483_s1 }
 0x976   : > { %v3120_v26 = vsel %vm3119_vm6, %v4156_v56, %v3116_v61  ;;  %p4485_p12 = pnand %p4484_p9, %p4818_p5  ;;  %p4490_p13 = por %p4489_p11, %p4488_p8 }
 0x977   : > { %v3122_v31 = vmul.f32 %v3120_v26, %v3088_v55 }
 0x978   : > { %p4486_p0 = pneg %p4485_p12 }
 0x979   : > { %v3128_v9 = vmul.f32 %v4066_v36, %v3122_v31 }
 0x97a   : > { %p4491_p1 = pnand %p4490_p13, %p4486_p0 }
 0x97b   : > { %v3134_v41 = vadd.f32 %v4067_v53, %v3128_v9 }
 0x97d   : > { %v3135_v52 = vpack.c.bf16 %v3134_v41, %v3133_v25 }
 0x97f   : > { %3764 = vmatmul.msk.bf16.vlgmr.msra.gmra.mxu3 %vm1116_vm0, %v3135_v52  ;;  %3783 = vmatmul.msk.bf16.vlgmr.msra.gmra.mxu0 %vm1116_vm0, %v3135_v52 }
 0x9fc   : > { %v3274_v5 = vpop.f32.mrf.mxu0 }
 0x9fd   : > { %v3275_v12 = vadd.f32 %v4068_v27, %v3274_v5 }
 0xa02   : > { %v3184_v60 = vpop.f32.mrf.mxu3 }
 0xa03   : > { %v3185_v44 = vadd.f32 %v4069_v39, %v3184_v60 }
 0xa04   : > { %v3276_v54 = vpop.f32.mrf.mxu0 }
 0xa05   : > { %v3765_v45 = vmul.f32 -1.442695, %v3185_v44  ;;  %v3277_v56 = vadd.f32 %v4068_v27, %v3276_v54 }
 0xa07   : > { %4157 = vpow2.f32 %v3765_v45 }
 0xa0a   : > { %v3186_v48 = vpop.f32.mrf.mxu3 }
 0xa0b   : > { %v3187_v50 = vadd.f32 %v4069_v39, %v3186_v48 }
 0xa0d   : > { %v4158_v63 = vpop.eup %4157  ;;  %v3766_v51 = vmul.f32 -1.442695, %v3187_v50 }
 0xa0e   : > { %v3195_v43 = vadd.f32 1.0, %v4158_v63 }
 0xa0f   : > { %4159 = vpow2.f32 %v3766_v51 }
 0xa10   : > { %4161 = vrcp.f32 %v3195_v43  ;;  %v3208_v11 = vand.u32 2147483648, %v3195_v43  ;;  %vm3202_vm8 = vweird.f32 %v3195_v43  ;;  %v3206_v15 = vand.u32 2147483647, %v3195_v43 }
 0xa12   : > { %v3209_v20 = vor.u32 1.1754944e-38, %v3208_v11  ;;  %vm3207_vm1 = vcmp.eq.f32.partialorder %v3206_v15, 8.507059e+37 }
 0xa15   : > { %v4160_v0 = vpop.eup %4159 }
 0xa16   : > { %v4162_v3 = vpop.eup %4161  ;;  %v3196_v1 = vadd.f32 1.0, %v4160_v0 }
 0xa17   : > { %v3198_v4 = vmul.f32 %v4162_v3, %v3195_v43  ;;  %vm3203_vm7 = vweird.f32 %v4162_v3 }
 0xa18   : > { %4163 = vrcp.f32 %v3196_v1  ;;  %vm3204_vm11 = vmor %vm3202_vm8, %vm3203_vm7  ;;  %v3223_v21 = vand.u32 2147483648, %v3196_v1  ;;  %v3221_v22 = vand.u32 2147483647, %v3196_v1  ;;  %vm3217_vm5 = vweird.f32 %v3196_v1 }
 0xa19   : > { %v3199_v28 = vsub.f32 1.0, %v3198_v4 }
 0xa1a   : > { %v3224_v58 = vor.u32 1.1754944e-38, %v3223_v21  ;;  %vm3222_vm10 = vcmp.eq.f32.partialorder %v3221_v22, 8.507059e+37 }
 0xa1b   : > { %v3200_v55 = vmul.f32 %v4162_v3, %v3199_v28 }
 0xa1d   : > { %v3201_v62 = vadd.f32 %v4162_v3, %v3200_v55 }
 0xa1e   : > { %v4164_v42 = vpop.eup %4163 }
 0xa1f   : > { %v3213_v33 = vmul.f32 %v4164_v42, %v3196_v1  ;;  %v3205_v16 = vsel %vm3204_vm11, %v4162_v3, %v3201_v62  ;;  %vm3218_vm2 = vweird.f32 %v4164_v42 }
 0xa20   : > { %v3210_v2 = vsel %vm3207_vm1, %v3209_v20, %v3205_v16  ;;  %vm3219_vm12 = vmor %vm3217_vm5, %vm3218_vm2 }
 0xa21   : > { %v3214_v18 = vsub.f32 1.0, %v3213_v33  ;;  %v3227_v19 = vmul.f32 %v3210_v2, %v3185_v44 }
 0xa23   : > { %v3215_v23 = vmul.f32 %v4164_v42, %v3214_v18  ;;  %v3279_v34 = vmul.f32 %v3275_v12, %v3227_v19 }
 0xa25   : > { %v3216_v30 = vadd.f32 %v4164_v42, %v3215_v23 }
 0xa27   : > { %v3220_v32 = vsel %vm3219_vm12, %v4164_v42, %v3216_v30 }
 0xa28   : > { %v3225_v24 = vsel %vm3222_vm10, %v3224_v58, %v3220_v32 }
 0xa29   : > { %v3228_v13 = vmul.f32 %v3225_v24, %v3187_v50 }
 0xa2b   : > { %v3280_v8 = vmul.f32 %v3277_v56, %v3228_v13 }
 0xa2d   : > { %v3281_v17 = vpack.c.bf16 %v3280_v8, %v3279_v34 }
 0xa2f   : > { %3358 = vmatmul.bf16.vlgmr.msra.gmra.mxu1 %v3281_v17 }
 0xaac   : > { %v3359_v59 = vpop.f32.mrf.mxu1 }
 0xaad   : > { %v3360_v36 = vadd.f32 %v4070_v14, %v3359_v59 }
 0xaaf   : > { %v3364_v10 = vadd.f32 %v5553_v35, %v3360_v36 }
 0xab1   : > { %3366 = vst.msk [vmem:[%s1099_s2] sm:$0xff] %vm1116_vm0, %v3364_v10 }
 0xab4   : > { %v3361_v61 = vpop.f32.mrf.mxu1 }
 0xab5   : > { %v3362_v26 = vadd.f32 %v4070_v14, %v3361_v61 }
 0xab7   : > { %v3365_v53 = vadd.f32 %v5566_v47, %v3362_v26 }
 0xab9   : > { %3367 = vst.msk [vmem:[%s1099_s2 + $0x8] sm:$0xff] %vm1116_vm0, %v3365_v53 }
 0xaba   : > { %4494 = shalt.err (!%p4491_p1)
}
 0xabb   : > { %s4614_s4 = smov 128   ;;  %s5717_s28 = smov 8  }
 0xabc   : > { %3903 = dma.vmem_to_hbm [thread:$0]  (%p4818_p5), %s3382_s5, 256, %s3384_s7, %s3369_s0, %s4614_s4, %s4614_s4, %s5717_s28  }
 0xabd PF: > { %s5718_s2 = sld [smem:[#allocation50_spill]] }
 0xabe   : > { %s5719_s10 = sld [smem:[#allocation48_spill]] }
 0xac3   : > { %p3960_p2 = scmp.ge.s32.totalorder %s5718_s2, 2 }
 0xac4   : > { %s3398_s9 = sand.u32 1, %s5719_s10  }
 0xac5   : > { %p3937_p3 = pnand %p3960_p2, %p4822_p6  ;;  %s3399_s11 = scalar_lea.sflag [#allocation4], %s3398_s9 }
 0xac7   : > { %p3938_p4 = pneg %p3937_p3 }
 0xac9   : > { %4536 = dma.done.wait (%p3938_p4), %s3399_s11, 256  }
 0xaca   : > { %4538 = vsyncadd (%p3938_p4), %s3399_s11, 4294967040  ;;  %s5721_s28 = sld [smem:[#allocation51_spill]]  ;;  %s5724_s22 = smov %s4545_s23 }
 0xacb   : > { %s5722_s1 = sld [smem:[#allocation49_spill]] }
 0xacc   : > { %s5723_s26 = sld [smem:[#allocation52_spill]] }
 0xad0   : > { %p79_p7 = scmp.ge.s32.totalorder %s5721_s28, 4  }
 0xad1   : > { %s5725_s23 = smov %s5722_s1 }
 0xad2   :  { %81 = sbr.rel (!%p79_p7) target bundleno = 66 (0x42), region = 251 }
 0xad7   :  { %3405 = vsyncpa [#allocation3], 1 }
 0xad8   :  { %3407 = vsyncpa [#allocation3 + $0x1], 1 }
 0xad9   :  { %3408 = vsyncpa [#allocation6], 1 }
 0xada   :  { %3409 = vsyncpa [#allocation9], 1 }
 0xadb   :  { %3410 = vsyncpa [#allocation12], 1 }
 0xadc   :  { %3411 = vsyncpa [#allocation15], 1 }
 0xadd   :  { %3412 = vsyncpa [#allocation18], 1 }
 0xade   :  { %3413 = vsyncpa [#allocation4], 1 }
 0xadf   :  { %3415 = vsyncpa [#allocation4 + $0x1], 1 }

</bundles_post_ra>
